<compile_context>
chip_gen: v6e
topology: v6e:2x2x1
jax: 0.10.0
libtpu: 0.0.40
codegen_flags: <defaults>
</compile_context>

<pallas_src>
import functools

import jax
import jax.numpy as jnp
from jax.experimental import pallas as pl
from jax.experimental.pallas import tpu as pltpu

EPS_BN = 1e-5
SIMAM_LAMBDA = 1e-4


# ----------------------------------------------------------------------------
# Fused DenseBlock kernel (one image per grid step, everything VMEM-resident)
# ----------------------------------------------------------------------------
def _dense_block_kernel(
    x_ref, masks_ref, bn1s_ref, bn1b_ref, w1_ref, bn2s_ref, bn2b_ref,
    w2_ref, basew_ref, baseb_ref, basesc_ref, wtw_ref, wtsc_ref,
    out_ref, pad_mid_ref, pad_g_ref,
    *, H, W, cin, cmid, cg, padl):
    HW = H * W
    HWP = HW + 2 * padl
    f32 = jnp.float32

    # Precomputed column-validity masks (1.0 = valid), shape (1, HW) each.
    m_xm1 = masks_ref[0:1, :]     # x-1 >= 0
    m_xp1 = masks_ref[1:2, :]     # x+1 <  W
    m_xm2 = masks_ref[2:3, :]     # x-2 >= 0
    m_xp2 = masks_ref[3:4, :]     # x+2 <  W
    m_even = masks_ref[4:5, :]    # (y even) & (x even)   -> DWT/IDWT anchors
    xmask1 = {-1: m_xm1, 0: None, 1: m_xp1}
    xmask2 = {-1: m_xm2, 0: None, 1: m_xp2}

    def shifted(pref, k):
        # window[p] = centered_value[p + k]; out-of-range rows come back as zeros
        # from the scratch padding, out-of-range columns are masked at call sites.
        return pref[:, padl + k: padl + k + HW]

    # ---- (1) BN1 -> ReLU -> 1x1 conv -> BN2 -> ReLU -------------------------
    x = x_ref[0]                                                   # (cin, HW)
    h = jnp.maximum(x * bn1s_ref[...] + bn1b_ref[...], 0.0)
    h = jnp.dot(w1_ref[...], h, preferred_element_type=f32)        # (cmid, HW)
    h = jnp.maximum(h * bn2s_ref[...] + bn2b_ref[...], 0.0)

    # ---- (2) dense 3x3 conv (stride 1, pad 1, no bias) ----------------------
    pad_mid_ref[...] = jnp.zeros((cmid, HWP), f32)
    pad_mid_ref[:, padl:padl + HW] = h
    f = jnp.zeros((cg, HW), f32)
    t = 0
    for di in (-1, 0, 1):
        for dj in (-1, 0, 1):
            s = shifted(pad_mid_ref, di * W + dj)
            if xmask1[dj] is not None:
                s = s * xmask1[dj]
            f = f + jnp.dot(w2_ref[t], s, preferred_element_type=f32)
            t += 1                                                 # (cg, HW)

    # ---- (3) WTConv2d(cg, cg, k=3, stride=1), 1-level Haar ------------------
    pad_g_ref[...] = jnp.zeros((cg, HWP), f32)
    pad_g_ref[:, padl:padl + HW] = f

    # base branch: depthwise 3x3 (+bias) * scale(=1.0)
    xb = jnp.zeros((cg, HW), f32)
    t = 0
    for di in (-1, 0, 1):
        for dj in (-1, 0, 1):
            s = shifted(pad_g_ref, di * W + dj)
            if xmask1[dj] is not None:
                s = s * xmask1[dj]
            xb = xb + basew_ref[t] * s
            t += 1
    xb = (xb + baseb_ref[...]) * basesc_ref[...]

    # Haar DWT (band values are only consumed at even-even anchor positions)
    f01 = shifted(pad_g_ref, 1)        # f[y,   x+1]
    f10 = shifted(pad_g_ref, W)        # f[y+1, x  ]
    f11 = shifted(pad_g_ref, W + 1)    # f[y+1, x+1]
    ll = 0.5 * (f + f01 + f10 + f11)
    lh = 0.5 * (f + f01 - f10 - f11)
    hl = 0.5 * (f - f01 + f10 - f11)
    hh = 0.5 * (f - f01 - f10 + f11)

    # wavelet-domain depthwise 3x3 conv on the half-res grid
    # (== dilation-2 taps at full resolution), then the 0.1 per-channel scale.
    cbands = []
    for bi, band in enumerate((ll, lh, hl, hh)):
        pad_g_ref[:, padl:padl + HW] = band
        cb = jnp.zeros((cg, HW), f32)
        t = 0
        for di in (-1, 0, 1):
            for dj in (-1, 0, 1):
                s = shifted(pad_g_ref, 2 * di * W + 2 * dj)
                if xmask2[dj] is not None:
                    s = s * xmask2[dj]
                cb = cb + wtw_ref[bi * 9 + t] * s
                t += 1
        cbands.append(cb * wtsc_ref[bi])
    cll, clh, chl, chh = cbands

    # inverse Haar: the four output phases at the even-even anchors, scattered to
    # their 2x2 positions via zero-padded shifts (even-masking guarantees the
    # shifted copies never overlap and wrap-around contributions are zero).
    pa = 0.5 * (cll + clh + chl + chh) * m_even   # -> (2i,   2j)
    pb = 0.5 * (cll + clh - chl - chh) * m_even   # -> (2i,   2j+1)
    pc = 0.5 * (cll - clh + chl - chh) * m_even   # -> (2i+1, 2j)
    pd = 0.5 * (cll - clh - chl + chh) * m_even   # -> (2i+1, 2j+1)
    x_tag = pa
    for val, k in ((pb, 1), (pc, W), (pd, W + 1)):
        pad_g_ref[:, padl:padl + HW] = val
        x_tag = x_tag + shifted(pad_g_ref, -k)
    wt_out = xb + x_tag                                            # (cg, HW)

    # ---- (4) SimAM attention -------------------------------------------------
    mu = jnp.mean(wt_out, axis=1, keepdims=True)
    d2 = (wt_out - mu) ** 2
    v = jnp.sum(d2, axis=1, keepdims=True) / float(HW - 1)
    e_inv = d2 / (4.0 * (v + SIMAM_LAMBDA)) + 0.5
    feat = wt_out * jax.nn.sigmoid(e_inv)

    # ---- (5) dropout p == 0 -> identity; (6) concat([x, features]) ----------
    out_ref[0, 0:cin, :] = x
    out_ref[0, cin:cin + cg, :] = feat


# ----------------------------------------------------------------------------
# Wrapper
# ----------------------------------------------------------------------------
def _make_masks(H, W):
    HW = H * W
    pos = jnp.arange(HW, dtype=jnp.int32)
    xi = pos % W
    yi = pos // W
    rows = [
        xi >= 1,                                   # x-1 valid
        xi <= W - 2,                               # x+1 valid
        xi >= 2,                                   # x-2 valid
        xi <= W - 3,                               # x+2 valid
        ((xi % 2) == 0) & ((yi % 2) == 0),         # even-even anchor
    ]
    return jnp.stack(rows, axis=0).astype(jnp.float32)   # (5, HW)


def dense_block_forward(x_nchw, params):
    N, Cin, H, W = x_nchw.shape
    assert H % 2 == 0 and W % 2 == 0, "Haar DWT needs even spatial dims"
    # TODO(synk): odd H/W would need WTConv2d's pre-transform padding; not handled.
    HW = H * W
    Cmid = params["w1"].shape[0]
    Cg = params["w2"].shape[1]
    Cout = Cin + Cg
    padl = ((2 * W + 2 + 127) // 128) * 128        # row padding for shifted windows
    masks = _make_masks(H, W)

    x = x_nchw.reshape(N, Cin, HW).astype(jnp.float32)   # NCHW flat, lane-dense

    kernel = functools.partial(
        _dense_block_kernel, H=H, W=W, cin=Cin, cmid=Cmid, cg=Cg, padl=padl)

    out = pl.pallas_call(
        kernel,
        out_shape=jax.ShapeDtypeStruct((N, Cout, HW), jnp.float32),
        grid=(N,),
        in_specs=[
            pl.BlockSpec((1, Cin, HW), lambda n: (n, 0, 0)),      # x
            pl.BlockSpec((5, HW), lambda n: (0, 0)),              # masks
            pl.BlockSpec((Cin, 1), lambda n: (0, 0)),             # bn1 scale
            pl.BlockSpec((Cin, 1), lambda n: (0, 0)),             # bn1 shift
            pl.BlockSpec((Cmid, Cin), lambda n: (0, 0)),          # w1 (1x1)
            pl.BlockSpec((Cmid, 1), lambda n: (0, 0)),            # bn2 scale
            pl.BlockSpec((Cmid, 1), lambda n: (0, 0)),            # bn2 shift
            pl.BlockSpec((9, Cg, Cmid), lambda n: (0, 0, 0)),     # w2 (3x3)
            pl.BlockSpec((9, Cg, 1), lambda n: (0, 0, 0)),        # base dw weights
            pl.BlockSpec((Cg, 1), lambda n: (0, 0)),              # base bias
            pl.BlockSpec((Cg, 1), lambda n: (0, 0)),              # base scale
            pl.BlockSpec((36, Cg, 1), lambda n: (0, 0, 0)),       # wavelet dw weights
            pl.BlockSpec((4, Cg, 1), lambda n: (0, 0, 0)),        # wavelet scales
        ],
        out_specs=pl.BlockSpec((1, Cout, HW), lambda n: (n, 0, 0)),
        scratch_shapes=[
            pltpu.VMEM((Cmid, HW + 2 * padl), jnp.float32),
            pltpu.VMEM((Cg, HW + 2 * padl), jnp.float32),
        ],
        compiler_params=pltpu.CompilerParams(
            dimension_semantics=("parallel",)),
    )(x, masks,
      params["bn1_scale"], params["bn1_shift"], params["w1"],
      params["bn2_scale"], params["bn2_shift"], params["w2"],
      params["base_w"], params["base_b"], params["base_scale"],
      params["wt_w"], params["wt_scale"])
    return out.reshape(N, Cout, H, W)


# ----------------------------------------------------------------------------
# Deterministic parameter construction
# ----------------------------------------------------------------------------
def make_params(key, in_channels, growth_rate, bn_size):
    cmid = bn_size * growth_rate
    cg = growth_rate
    ks = jax.random.split(key, 7)

    def bn_affine(c, k):
        gamma = 1.0 + 0.1 * jax.random.normal(k, (c,), jnp.float32)
        beta = 0.05 * jnp.arange(c, dtype=jnp.float32)
        running_mean = 0.01 * jnp.arange(c, dtype=jnp.float32)
        running_var = 1.0 + 0.02 * jnp.arange(c, dtype=jnp.float32)
        scale = gamma / jnp.sqrt(running_var + EPS_BN)
        shift = beta - running_mean * scale
        return scale.reshape(c, 1), shift.reshape(c, 1)

    bn1_scale, bn1_shift = bn_affine(in_channels, ks[0])
    bn2_scale, bn2_shift = bn_affine(cmid, ks[1])

    return {
        "bn1_scale": bn1_scale, "bn1_shift": bn1_shift,
        "bn2_scale": bn2_scale, "bn2_shift": bn2_shift,
        # 1x1 conv: (Cmid, Cin)
        "w1": 0.1 * jax.random.normal(ks[2], (cmid, in_channels), jnp.float32),
        # 3x3 conv: (9 taps [t = ky*3+kx], Cg, Cmid)  <-> torch weight [g, c, ky, kx]
        "w2": 0.1 * jax.random.normal(ks[3], (9, cg, cmid), jnp.float32),
        # WTConv base depthwise 3x3 (bias=True, scale init 1.0): (9, Cg, 1)
        "base_w": 0.1 * jax.random.normal(ks[4], (9, cg, 1), jnp.float32),
        "base_b": 0.01 * jax.random.normal(ks[5], (cg, 1), jnp.float32),
        "base_scale": jnp.ones((cg, 1), jnp.float32),
        # WTConv wavelet-domain depthwise 3x3 (no bias, scale init 0.1):
        # 4 bands (ll, lh, hl, hh) x 9 taps, laid out band-major: (36, Cg, 1)
        "wt_w": 0.1 * jax.random.normal(ks[6], (36, cg, 1), jnp.float32),
        "wt_scale": 0.1 * jnp.ones((4, cg, 1), jnp.float32),
    }


if __name__ == "__main__":
    key = jax.random.PRNGKey(0)
    kx, kp = jax.random.split(key)

    N, Cin, H, W = 2, 4, 16, 16
    growth_rate, bn_size, dropout_p = 4, 2, 0.0

    x = jax.random.normal(kx, (N, Cin, H, W), jnp.float32)   # NCHW like PyTorch
    params = make_params(kp, Cin, growth_rate, bn_size)

    fwd = jax.jit(functools.partial(dense_block_forward, params=params))
    y = fwd(x)
    jax.block_until_ready(y)

    assert y.shape == (N, Cin + growth_rate, H, W), y.shape
    assert y.dtype == jnp.float32
    print("KERNEL_OK")
</pallas_src>

<mosaic_0001>
module attributes {stable_mosaic.version = 11 : i64} {
  func.func @_dense_block_kernel(%arg0: i32, %arg1: memref<1x4x256xf32, #tpu.memory_space<vmem>>, %arg2: memref<5x256xf32, #tpu.memory_space<vmem>>, %arg3: memref<4x1xf32, #tpu.memory_space<vmem>>, %arg4: memref<4x1xf32, #tpu.memory_space<vmem>>, %arg5: memref<8x4xf32, #tpu.memory_space<vmem>>, %arg6: memref<8x1xf32, #tpu.memory_space<vmem>>, %arg7: memref<8x1xf32, #tpu.memory_space<vmem>>, %arg8: memref<9x4x8xf32, #tpu.memory_space<vmem>>, %arg9: memref<9x4x1xf32, #tpu.memory_space<vmem>>, %arg10: memref<4x1xf32, #tpu.memory_space<vmem>>, %arg11: memref<4x1xf32, #tpu.memory_space<vmem>>, %arg12: memref<36x4x1xf32, #tpu.memory_space<vmem>>, %arg13: memref<4x4x1xf32, #tpu.memory_space<vmem>>, %arg14: memref<1x8x256xf32, #tpu.memory_space<vmem>>, %arg15: memref<8x512xf32, #tpu.memory_space<vmem>>, %arg16: memref<4x512xf32, #tpu.memory_space<vmem>>) attributes {dimension_semantics = [#tpu.dimension_semantics<parallel>], iteration_bounds = array<i64: 2>, scalar_prefetch = 0 : i64, scratch_operands = 2 : i64, tpu.core_type = #tpu.core_type<tc>, window_params = [{transform_indices = @transform_0, window_bounds = array<i64: 1, 4, 256>}, {pipeline_mode = #tpu.pipeline_mode<synchronous>, transform_indices = @transform_1, window_bounds = array<i64: 5, 256>}, {pipeline_mode = #tpu.pipeline_mode<synchronous>, transform_indices = @transform_2, window_bounds = array<i64: 4, 1>}, {pipeline_mode = #tpu.pipeline_mode<synchronous>, transform_indices = @transform_3, window_bounds = array<i64: 4, 1>}, {pipeline_mode = #tpu.pipeline_mode<synchronous>, transform_indices = @transform_4, window_bounds = array<i64: 8, 4>}, {pipeline_mode = #tpu.pipeline_mode<synchronous>, transform_indices = @transform_5, window_bounds = array<i64: 8, 1>}, {pipeline_mode = #tpu.pipeline_mode<synchronous>, transform_indices = @transform_6, window_bounds = array<i64: 8, 1>}, {pipeline_mode = #tpu.pipeline_mode<synchronous>, transform_indices = @transform_7, window_bounds = array<i64: 9, 4, 8>}, {pipeline_mode = #tpu.pipeline_mode<synchronous>, transform_indices = @transform_8, window_bounds = array<i64: 9, 4, 1>}, {pipeline_mode = #tpu.pipeline_mode<synchronous>, transform_indices = @transform_9, window_bounds = array<i64: 4, 1>}, {pipeline_mode = #tpu.pipeline_mode<synchronous>, transform_indices = @transform_10, window_bounds = array<i64: 4, 1>}, {pipeline_mode = #tpu.pipeline_mode<synchronous>, transform_indices = @transform_11, window_bounds = array<i64: 36, 4, 1>}, {pipeline_mode = #tpu.pipeline_mode<synchronous>, transform_indices = @transform_12, window_bounds = array<i64: 4, 4, 1>}, {transform_indices = @transform_13, window_bounds = array<i64: 1, 8, 256>}]} {
    %c0 = arith.constant 0 : index
    %c0_0 = arith.constant 0 : index
    %0 = vector.load %arg2[%c0, %c0_0] : memref<5x256xf32, #tpu.memory_space<vmem>>, vector<1x256xf32>
    %c1 = arith.constant 1 : index
    %c0_1 = arith.constant 0 : index
    %1 = vector.load %arg2[%c1, %c0_1] : memref<5x256xf32, #tpu.memory_space<vmem>>, vector<1x256xf32>
    %c2 = arith.constant 2 : index
    %c0_2 = arith.constant 0 : index
    %2 = vector.load %arg2[%c2, %c0_2] : memref<5x256xf32, #tpu.memory_space<vmem>>, vector<1x256xf32>
    %c3 = arith.constant 3 : index
    %c0_3 = arith.constant 0 : index
    %3 = vector.load %arg2[%c3, %c0_3] : memref<5x256xf32, #tpu.memory_space<vmem>>, vector<1x256xf32>
    %c4 = arith.constant 4 : index
    %c0_4 = arith.constant 0 : index
    %4 = vector.load %arg2[%c4, %c0_4] : memref<5x256xf32, #tpu.memory_space<vmem>>, vector<1x256xf32>
    %c0_5 = arith.constant 0 : index
    %c0_6 = arith.constant 0 : index
    %c0_7 = arith.constant 0 : index
    %5 = vector.load %arg1[%c0_5, %c0_6, %c0_7] : memref<1x4x256xf32, #tpu.memory_space<vmem>>, vector<1x4x256xf32>
    %6 = vector.shape_cast %5 : vector<1x4x256xf32> to vector<4x256xf32>
    %c0_8 = arith.constant 0 : index
    %c0_9 = arith.constant 0 : index
    %7 = vector.load %arg3[%c0_8, %c0_9] : memref<4x1xf32, #tpu.memory_space<vmem>>, vector<4x1xf32>
    %8 = vector.broadcast %7 : vector<4x1xf32> to vector<4x256xf32>
    %9 = arith.mulf %6, %8 : vector<4x256xf32>
    %c0_10 = arith.constant 0 : index
    %c0_11 = arith.constant 0 : index
    %10 = vector.load %arg4[%c0_10, %c0_11] : memref<4x1xf32, #tpu.memory_space<vmem>>, vector<4x1xf32>
    %11 = vector.broadcast %10 : vector<4x1xf32> to vector<4x256xf32>
    %12 = arith.addf %9, %11 : vector<4x256xf32>
    %cst = arith.constant 0.000000e+00 : f32
    %13 = vector.broadcast %cst : f32 to vector<4x256xf32>
    %14 = arith.maximumf %12, %13 : vector<4x256xf32>
    %c0_12 = arith.constant 0 : index
    %c0_13 = arith.constant 0 : index
    %15 = vector.load %arg5[%c0_12, %c0_13] : memref<8x4xf32, #tpu.memory_space<vmem>>, vector<8x4xf32>
    %cst_14 = arith.constant dense<0.000000e+00> : vector<8x256xf32>
    %16 = tpu.matmul %15, %14, %cst_14 {dimension_numbers = #tpu.dot_dimension_numbers<[1], [0], [0], [1], [0, 0, 1, 1], [], []>} : vector<8x4xf32>, vector<4x256xf32>, vector<8x256xf32> -> vector<8x256xf32>
    %c0_15 = arith.constant 0 : index
    %c0_16 = arith.constant 0 : index
    %17 = vector.load %arg6[%c0_15, %c0_16] : memref<8x1xf32, #tpu.memory_space<vmem>>, vector<8x1xf32>
    %18 = vector.broadcast %17 : vector<8x1xf32> to vector<8x256xf32>
    %19 = arith.mulf %16, %18 : vector<8x256xf32>
    %c0_17 = arith.constant 0 : index
    %c0_18 = arith.constant 0 : index
    %20 = vector.load %arg7[%c0_17, %c0_18] : memref<8x1xf32, #tpu.memory_space<vmem>>, vector<8x1xf32>
    %21 = vector.broadcast %20 : vector<8x1xf32> to vector<8x256xf32>
    %22 = arith.addf %19, %21 : vector<8x256xf32>
    %cst_19 = arith.constant 0.000000e+00 : f32
    %23 = vector.broadcast %cst_19 : f32 to vector<8x256xf32>
    %24 = arith.maximumf %22, %23 : vector<8x256xf32>
    %cst_20 = arith.constant 0.000000e+00 : f32
    %25 = vector.broadcast %cst_20 : f32 to vector<8x512xf32>
    %c0_21 = arith.constant 0 : index
    %c0_22 = arith.constant 0 : index
    %26 = vector.load %arg15[%c0_21, %c0_22] : memref<8x512xf32, #tpu.memory_space<vmem>>, vector<8x512xf32>
    tpu.vector_store %arg15[%c0_21, %c0_22], %25 {strides = array<i32>} : memref<8x512xf32, #tpu.memory_space<vmem>>, vector<8x512xf32>,
    %c0_23 = arith.constant 0 : index
    %c128 = arith.constant 128 : index
    %27 = vector.load %arg15[%c0_23, %c128] : memref<8x512xf32, #tpu.memory_space<vmem>>, vector<8x256xf32>
    tpu.vector_store %arg15[%c0_23, %c128], %24 {strides = array<i32>} : memref<8x512xf32, #tpu.memory_space<vmem>>, vector<8x256xf32>,
    %cst_24 = arith.constant 0.000000e+00 : f32
    %28 = vector.broadcast %cst_24 : f32 to vector<4x256xf32>
    %c0_25 = arith.constant 0 : index
    %c111 = arith.constant 111 : index
    %29 = vector.load %arg15[%c0_25, %c111] : memref<8x512xf32, #tpu.memory_space<vmem>>, vector<8x256xf32>
    %30 = vector.broadcast %0 : vector<1x256xf32> to vector<8x256xf32>
    %31 = arith.mulf %29, %30 : vector<8x256xf32>
    %c0_26 = arith.constant 0 : index
    %c0_27 = arith.constant 0 : index
    %c0_28 = arith.constant 0 : index
    %32 = vector.load %arg8[%c0_26, %c0_27, %c0_28] : memref<9x4x8xf32, #tpu.memory_space<vmem>>, vector<1x4x8xf32>
    %33 = vector.shape_cast %32 : vector<1x4x8xf32> to vector<4x8xf32>
    %cst_29 = arith.constant dense<0.000000e+00> : vector<4x256xf32>
    %34 = tpu.matmul %33, %31, %cst_29 {dimension_numbers = #tpu.dot_dimension_numbers<[1], [0], [0], [1], [0, 0, 1, 1], [], []>} : vector<4x8xf32>, vector<8x256xf32>, vector<4x256xf32> -> vector<4x256xf32>
    %35 = arith.addf %28, %34 : vector<4x256xf32>
    %c0_30 = arith.constant 0 : index
    %c112 = arith.constant 112 : index
    %36 = vector.load %arg15[%c0_30, %c112] : memref<8x512xf32, #tpu.memory_space<vmem>>, vector<8x256xf32>
    %c1_31 = arith.constant 1 : index
    %c0_32 = arith.constant 0 : index
    %c0_33 = arith.constant 0 : index
    %37 = vector.load %arg8[%c1_31, %c0_32, %c0_33] : memref<9x4x8xf32, #tpu.memory_space<vmem>>, vector<1x4x8xf32>
    %38 = vector.shape_cast %37 : vector<1x4x8xf32> to vector<4x8xf32>
    %cst_34 = arith.constant dense<0.000000e+00> : vector<4x256xf32>
    %39 = tpu.matmul %38, %36, %cst_34 {dimension_numbers = #tpu.dot_dimension_numbers<[1], [0], [0], [1], [0, 0, 1, 1], [], []>} : vector<4x8xf32>, vector<8x256xf32>, vector<4x256xf32> -> vector<4x256xf32>
    %40 = arith.addf %35, %39 : vector<4x256xf32>
    %c0_35 = arith.constant 0 : index
    %c113 = arith.constant 113 : index
    %41 = vector.load %arg15[%c0_35, %c113] : memref<8x512xf32, #tpu.memory_space<vmem>>, vector<8x256xf32>
    %42 = vector.broadcast %1 : vector<1x256xf32> to vector<8x256xf32>
    %43 = arith.mulf %41, %42 : vector<8x256xf32>
    %c2_36 = arith.constant 2 : index
    %c0_37 = arith.constant 0 : index
    %c0_38 = arith.constant 0 : index
    %44 = vector.load %arg8[%c2_36, %c0_37, %c0_38] : memref<9x4x8xf32, #tpu.memory_space<vmem>>, vector<1x4x8xf32>
    %45 = vector.shape_cast %44 : vector<1x4x8xf32> to vector<4x8xf32>
    %cst_39 = arith.constant dense<0.000000e+00> : vector<4x256xf32>
    %46 = tpu.matmul %45, %43, %cst_39 {dimension_numbers = #tpu.dot_dimension_numbers<[1], [0], [0], [1], [0, 0, 1, 1], [], []>} : vector<4x8xf32>, vector<8x256xf32>, vector<4x256xf32> -> vector<4x256xf32>
    %47 = arith.addf %40, %46 : vector<4x256xf32>
    %c0_40 = arith.constant 0 : index
    %c127 = arith.constant 127 : index
    %48 = vector.load %arg15[%c0_40, %c127] : memref<8x512xf32, #tpu.memory_space<vmem>>, vector<8x256xf32>
    %49 = vector.broadcast %0 : vector<1x256xf32> to vector<8x256xf32>
    %50 = arith.mulf %48, %49 : vector<8x256xf32>
    %c3_41 = arith.constant 3 : index
    %c0_42 = arith.constant 0 : index
    %c0_43 = arith.constant 0 : index
    %51 = vector.load %arg8[%c3_41, %c0_42, %c0_43] : memref<9x4x8xf32, #tpu.memory_space<vmem>>, vector<1x4x8xf32>
    %52 = vector.shape_cast %51 : vector<1x4x8xf32> to vector<4x8xf32>
    %cst_44 = arith.constant dense<0.000000e+00> : vector<4x256xf32>
    %53 = tpu.matmul %52, %50, %cst_44 {dimension_numbers = #tpu.dot_dimension_numbers<[1], [0], [0], [1], [0, 0, 1, 1], [], []>} : vector<4x8xf32>, vector<8x256xf32>, vector<4x256xf32> -> vector<4x256xf32>
    %54 = arith.addf %47, %53 : vector<4x256xf32>
    %c0_45 = arith.constant 0 : index
    %c128_46 = arith.constant 128 : index
    %55 = vector.load %arg15[%c0_45, %c128_46] : memref<8x512xf32, #tpu.memory_space<vmem>>, vector<8x256xf32>
    %c4_47 = arith.constant 4 : index
    %c0_48 = arith.constant 0 : index
    %c0_49 = arith.constant 0 : index
    %56 = vector.load %arg8[%c4_47, %c0_48, %c0_49] : memref<9x4x8xf32, #tpu.memory_space<vmem>>, vector<1x4x8xf32>
    %57 = vector.shape_cast %56 : vector<1x4x8xf32> to vector<4x8xf32>
    %cst_50 = arith.constant dense<0.000000e+00> : vector<4x256xf32>
    %58 = tpu.matmul %57, %55, %cst_50 {dimension_numbers = #tpu.dot_dimension_numbers<[1], [0], [0], [1], [0, 0, 1, 1], [], []>} : vector<4x8xf32>, vector<8x256xf32>, vector<4x256xf32> -> vector<4x256xf32>
    %59 = arith.addf %54, %58 : vector<4x256xf32>
    %c0_51 = arith.constant 0 : index
    %c129 = arith.constant 129 : index
    %60 = vector.load %arg15[%c0_51, %c129] : memref<8x512xf32, #tpu.memory_space<vmem>>, vector<8x256xf32>
    %61 = vector.broadcast %1 : vector<1x256xf32> to vector<8x256xf32>
    %62 = arith.mulf %60, %61 : vector<8x256xf32>
    %c5 = arith.constant 5 : index
    %c0_52 = arith.constant 0 : index
    %c0_53 = arith.constant 0 : index
    %63 = vector.load %arg8[%c5, %c0_52, %c0_53] : memref<9x4x8xf32, #tpu.memory_space<vmem>>, vector<1x4x8xf32>
    %64 = vector.shape_cast %63 : vector<1x4x8xf32> to vector<4x8xf32>
    %cst_54 = arith.constant dense<0.000000e+00> : vector<4x256xf32>
    %65 = tpu.matmul %64, %62, %cst_54 {dimension_numbers = #tpu.dot_dimension_numbers<[1], [0], [0], [1], [0, 0, 1, 1], [], []>} : vector<4x8xf32>, vector<8x256xf32>, vector<4x256xf32> -> vector<4x256xf32>
    %66 = arith.addf %59, %65 : vector<4x256xf32>
    %c0_55 = arith.constant 0 : index
    %c143 = arith.constant 143 : index
    %67 = vector.load %arg15[%c0_55, %c143] : memref<8x512xf32, #tpu.memory_space<vmem>>, vector<8x256xf32>
    %68 = vector.broadcast %0 : vector<1x256xf32> to vector<8x256xf32>
    %69 = arith.mulf %67, %68 : vector<8x256xf32>
    %c6 = arith.constant 6 : index
    %c0_56 = arith.constant 0 : index
    %c0_57 = arith.constant 0 : index
    %70 = vector.load %arg8[%c6, %c0_56, %c0_57] : memref<9x4x8xf32, #tpu.memory_space<vmem>>, vector<1x4x8xf32>
    %71 = vector.shape_cast %70 : vector<1x4x8xf32> to vector<4x8xf32>
    %cst_58 = arith.constant dense<0.000000e+00> : vector<4x256xf32>
    %72 = tpu.matmul %71, %69, %cst_58 {dimension_numbers = #tpu.dot_dimension_numbers<[1], [0], [0], [1], [0, 0, 1, 1], [], []>} : vector<4x8xf32>, vector<8x256xf32>, vector<4x256xf32> -> vector<4x256xf32>
    %73 = arith.addf %66, %72 : vector<4x256xf32>
    %c0_59 = arith.constant 0 : index
    %c144 = arith.constant 144 : index
    %74 = vector.load %arg15[%c0_59, %c144] : memref<8x512xf32, #tpu.memory_space<vmem>>, vector<8x256xf32>
    %c7 = arith.constant 7 : index
    %c0_60 = arith.constant 0 : index
    %c0_61 = arith.constant 0 : index
    %75 = vector.load %arg8[%c7, %c0_60, %c0_61] : memref<9x4x8xf32, #tpu.memory_space<vmem>>, vector<1x4x8xf32>
    %76 = vector.shape_cast %75 : vector<1x4x8xf32> to vector<4x8xf32>
    %cst_62 = arith.constant dense<0.000000e+00> : vector<4x256xf32>
    %77 = tpu.matmul %76, %74, %cst_62 {dimension_numbers = #tpu.dot_dimension_numbers<[1], [0], [0], [1], [0, 0, 1, 1], [], []>} : vector<4x8xf32>, vector<8x256xf32>, vector<4x256xf32> -> vector<4x256xf32>
    %78 = arith.addf %73, %77 : vector<4x256xf32>
    %c0_63 = arith.constant 0 : index
    %c145 = arith.constant 145 : index
    %79 = vector.load %arg15[%c0_63, %c145] : memref<8x512xf32, #tpu.memory_space<vmem>>, vector<8x256xf32>
    %80 = vector.broadcast %1 : vector<1x256xf32> to vector<8x256xf32>
    %81 = arith.mulf %79, %80 : vector<8x256xf32>
    %c8 = arith.constant 8 : index
    %c0_64 = arith.constant 0 : index
    %c0_65 = arith.constant 0 : index
    %82 = vector.load %arg8[%c8, %c0_64, %c0_65] : memref<9x4x8xf32, #tpu.memory_space<vmem>>, vector<1x4x8xf32>
    %83 = vector.shape_cast %82 : vector<1x4x8xf32> to vector<4x8xf32>
    %cst_66 = arith.constant dense<0.000000e+00> : vector<4x256xf32>
    %84 = tpu.matmul %83, %81, %cst_66 {dimension_numbers = #tpu.dot_dimension_numbers<[1], [0], [0], [1], [0, 0, 1, 1], [], []>} : vector<4x8xf32>, vector<8x256xf32>, vector<4x256xf32> -> vector<4x256xf32>
    %85 = arith.addf %78, %84 : vector<4x256xf32>
    %cst_67 = arith.constant 0.000000e+00 : f32
    %86 = vector.broadcast %cst_67 : f32 to vector<4x512xf32>
    %c0_68 = arith.constant 0 : index
    %c0_69 = arith.constant 0 : index
    %87 = vector.load %arg16[%c0_68, %c0_69] : memref<4x512xf32, #tpu.memory_space<vmem>>, vector<4x512xf32>
    tpu.vector_store %arg16[%c0_68, %c0_69], %86 {strides = array<i32>} : memref<4x512xf32, #tpu.memory_space<vmem>>, vector<4x512xf32>,
    %c0_70 = arith.constant 0 : index
    %c128_71 = arith.constant 128 : index
    %88 = vector.load %arg16[%c0_70, %c128_71] : memref<4x512xf32, #tpu.memory_space<vmem>>, vector<4x256xf32>
    tpu.vector_store %arg16[%c0_70, %c128_71], %85 {strides = array<i32>} : memref<4x512xf32, #tpu.memory_space<vmem>>, vector<4x256xf32>,
    %cst_72 = arith.constant 0.000000e+00 : f32
    %89 = vector.broadcast %cst_72 : f32 to vector<4x256xf32>
    %c0_73 = arith.constant 0 : index
    %c111_74 = arith.constant 111 : index
    %90 = vector.load %arg16[%c0_73, %c111_74] : memref<4x512xf32, #tpu.memory_space<vmem>>, vector<4x256xf32>
    %91 = vector.broadcast %0 : vector<1x256xf32> to vector<4x256xf32>
    %92 = arith.mulf %90, %91 : vector<4x256xf32>
    %c0_75 = arith.constant 0 : index
    %c0_76 = arith.constant 0 : index
    %c0_77 = arith.constant 0 : index
    %93 = vector.load %arg9[%c0_75, %c0_76, %c0_77] : memref<9x4x1xf32, #tpu.memory_space<vmem>>, vector<1x4x1xf32>
    %94 = vector.shape_cast %93 : vector<1x4x1xf32> to vector<4x1xf32>
    %95 = vector.broadcast %94 : vector<4x1xf32> to vector<4x256xf32>
    %96 = arith.mulf %95, %92 : vector<4x256xf32>
    %97 = arith.addf %89, %96 : vector<4x256xf32>
    %c0_78 = arith.constant 0 : index
    %c112_79 = arith.constant 112 : index
    %98 = vector.load %arg16[%c0_78, %c112_79] : memref<4x512xf32, #tpu.memory_space<vmem>>, vector<4x256xf32>
    %c1_80 = arith.constant 1 : index
    %c0_81 = arith.constant 0 : index
    %c0_82 = arith.constant 0 : index
    %99 = vector.load %arg9[%c1_80, %c0_81, %c0_82] : memref<9x4x1xf32, #tpu.memory_space<vmem>>, vector<1x4x1xf32>
    %100 = vector.shape_cast %99 : vector<1x4x1xf32> to vector<4x1xf32>
    %101 = vector.broadcast %100 : vector<4x1xf32> to vector<4x256xf32>
    %102 = arith.mulf %101, %98 : vector<4x256xf32>
    %103 = arith.addf %97, %102 : vector<4x256xf32>
    %c0_83 = arith.constant 0 : index
    %c113_84 = arith.constant 113 : index
    %104 = vector.load %arg16[%c0_83, %c113_84] : memref<4x512xf32, #tpu.memory_space<vmem>>, vector<4x256xf32>
    %105 = vector.broadcast %1 : vector<1x256xf32> to vector<4x256xf32>
    %106 = arith.mulf %104, %105 : vector<4x256xf32>
    %c2_85 = arith.constant 2 : index
    %c0_86 = arith.constant 0 : index
    %c0_87 = arith.constant 0 : index
    %107 = vector.load %arg9[%c2_85, %c0_86, %c0_87] : memref<9x4x1xf32, #tpu.memory_space<vmem>>, vector<1x4x1xf32>
    %108 = vector.shape_cast %107 : vector<1x4x1xf32> to vector<4x1xf32>
    %109 = vector.broadcast %108 : vector<4x1xf32> to vector<4x256xf32>
    %110 = arith.mulf %109, %106 : vector<4x256xf32>
    %111 = arith.addf %103, %110 : vector<4x256xf32>
    %c0_88 = arith.constant 0 : index
    %c127_89 = arith.constant 127 : index
    %112 = vector.load %arg16[%c0_88, %c127_89] : memref<4x512xf32, #tpu.memory_space<vmem>>, vector<4x256xf32>
    %113 = vector.broadcast %0 : vector<1x256xf32> to vector<4x256xf32>
    %114 = arith.mulf %112, %113 : vector<4x256xf32>
    %c3_90 = arith.constant 3 : index
    %c0_91 = arith.constant 0 : index
    %c0_92 = arith.constant 0 : index
    %115 = vector.load %arg9[%c3_90, %c0_91, %c0_92] : memref<9x4x1xf32, #tpu.memory_space<vmem>>, vector<1x4x1xf32>
    %116 = vector.shape_cast %115 : vector<1x4x1xf32> to vector<4x1xf32>
    %117 = vector.broadcast %116 : vector<4x1xf32> to vector<4x256xf32>
    %118 = arith.mulf %117, %114 : vector<4x256xf32>
    %119 = arith.addf %111, %118 : vector<4x256xf32>
    %c0_93 = arith.constant 0 : index
    %c128_94 = arith.constant 128 : index
    %120 = vector.load %arg16[%c0_93, %c128_94] : memref<4x512xf32, #tpu.memory_space<vmem>>, vector<4x256xf32>
    %c4_95 = arith.constant 4 : index
    %c0_96 = arith.constant 0 : index
    %c0_97 = arith.constant 0 : index
    %121 = vector.load %arg9[%c4_95, %c0_96, %c0_97] : memref<9x4x1xf32, #tpu.memory_space<vmem>>, vector<1x4x1xf32>
    %122 = vector.shape_cast %121 : vector<1x4x1xf32> to vector<4x1xf32>
    %123 = vector.broadcast %122 : vector<4x1xf32> to vector<4x256xf32>
    %124 = arith.mulf %123, %120 : vector<4x256xf32>
    %125 = arith.addf %119, %124 : vector<4x256xf32>
    %c0_98 = arith.constant 0 : index
    %c129_99 = arith.constant 129 : index
    %126 = vector.load %arg16[%c0_98, %c129_99] : memref<4x512xf32, #tpu.memory_space<vmem>>, vector<4x256xf32>
    %127 = vector.broadcast %1 : vector<1x256xf32> to vector<4x256xf32>
    %128 = arith.mulf %126, %127 : vector<4x256xf32>
    %c5_100 = arith.constant 5 : index
    %c0_101 = arith.constant 0 : index
    %c0_102 = arith.constant 0 : index
    %129 = vector.load %arg9[%c5_100, %c0_101, %c0_102] : memref<9x4x1xf32, #tpu.memory_space<vmem>>, vector<1x4x1xf32>
    %130 = vector.shape_cast %129 : vector<1x4x1xf32> to vector<4x1xf32>
    %131 = vector.broadcast %130 : vector<4x1xf32> to vector<4x256xf32>
    %132 = arith.mulf %131, %128 : vector<4x256xf32>
    %133 = arith.addf %125, %132 : vector<4x256xf32>
    %c0_103 = arith.constant 0 : index
    %c143_104 = arith.constant 143 : index
    %134 = vector.load %arg16[%c0_103, %c143_104] : memref<4x512xf32, #tpu.memory_space<vmem>>, vector<4x256xf32>
    %135 = vector.broadcast %0 : vector<1x256xf32> to vector<4x256xf32>
    %136 = arith.mulf %134, %135 : vector<4x256xf32>
    %c6_105 = arith.constant 6 : index
    %c0_106 = arith.constant 0 : index
    %c0_107 = arith.constant 0 : index
    %137 = vector.load %arg9[%c6_105, %c0_106, %c0_107] : memref<9x4x1xf32, #tpu.memory_space<vmem>>, vector<1x4x1xf32>
    %138 = vector.shape_cast %137 : vector<1x4x1xf32> to vector<4x1xf32>
    %139 = vector.broadcast %138 : vector<4x1xf32> to vector<4x256xf32>
    %140 = arith.mulf %139, %136 : vector<4x256xf32>
    %141 = arith.addf %133, %140 : vector<4x256xf32>
    %c0_108 = arith.constant 0 : index
    %c144_109 = arith.constant 144 : index
    %142 = vector.load %arg16[%c0_108, %c144_109] : memref<4x512xf32, #tpu.memory_space<vmem>>, vector<4x256xf32>
    %c7_110 = arith.constant 7 : index
    %c0_111 = arith.constant 0 : index
    %c0_112 = arith.constant 0 : index
    %143 = vector.load %arg9[%c7_110, %c0_111, %c0_112] : memref<9x4x1xf32, #tpu.memory_space<vmem>>, vector<1x4x1xf32>
    %144 = vector.shape_cast %143 : vector<1x4x1xf32> to vector<4x1xf32>
    %145 = vector.broadcast %144 : vector<4x1xf32> to vector<4x256xf32>
    %146 = arith.mulf %145, %142 : vector<4x256xf32>
    %147 = arith.addf %141, %146 : vector<4x256xf32>
    %c0_113 = arith.constant 0 : index
    %c145_114 = arith.constant 145 : index
    %148 = vector.load %arg16[%c0_113, %c145_114] : memref<4x512xf32, #tpu.memory_space<vmem>>, vector<4x256xf32>
    %149 = vector.broadcast %1 : vector<1x256xf32> to vector<4x256xf32>
    %150 = arith.mulf %148, %149 : vector<4x256xf32>
    %c8_115 = arith.constant 8 : index
    %c0_116 = arith.constant 0 : index
    %c0_117 = arith.constant 0 : index
    %151 = vector.load %arg9[%c8_115, %c0_116, %c0_117] : memref<9x4x1xf32, #tpu.memory_space<vmem>>, vector<1x4x1xf32>
    %152 = vector.shape_cast %151 : vector<1x4x1xf32> to vector<4x1xf32>
    %153 = vector.broadcast %152 : vector<4x1xf32> to vector<4x256xf32>
    %154 = arith.mulf %153, %150 : vector<4x256xf32>
    %155 = arith.addf %147, %154 : vector<4x256xf32>
    %c0_118 = arith.constant 0 : index
    %c0_119 = arith.constant 0 : index
    %156 = vector.load %arg10[%c0_118, %c0_119] : memref<4x1xf32, #tpu.memory_space<vmem>>, vector<4x1xf32>
    %157 = vector.broadcast %156 : vector<4x1xf32> to vector<4x256xf32>
    %158 = arith.addf %155, %157 : vector<4x256xf32>
    %c0_120 = arith.constant 0 : index
    %c0_121 = arith.constant 0 : index
    %159 = vector.load %arg11[%c0_120, %c0_121] : memref<4x1xf32, #tpu.memory_space<vmem>>, vector<4x1xf32>
    %160 = vector.broadcast %159 : vector<4x1xf32> to vector<4x256xf32>
    %161 = arith.mulf %158, %160 : vector<4x256xf32>
    %c0_122 = arith.constant 0 : index
    %c129_123 = arith.constant 129 : index
    %162 = vector.load %arg16[%c0_122, %c129_123] : memref<4x512xf32, #tpu.memory_space<vmem>>, vector<4x256xf32>
    %c0_124 = arith.constant 0 : index
    %c144_125 = arith.constant 144 : index
    %163 = vector.load %arg16[%c0_124, %c144_125] : memref<4x512xf32, #tpu.memory_space<vmem>>, vector<4x256xf32>
    %c0_126 = arith.constant 0 : index
    %c145_127 = arith.constant 145 : index
    %164 = vector.load %arg16[%c0_126, %c145_127] : memref<4x512xf32, #tpu.memory_space<vmem>>, vector<4x256xf32>
    %165 = arith.addf %85, %162 : vector<4x256xf32>
    %166 = arith.addf %165, %163 : vector<4x256xf32>
    %167 = arith.addf %166, %164 : vector<4x256xf32>
    %cst_128 = arith.constant 5.000000e-01 : f32
    %168 = vector.broadcast %cst_128 : f32 to vector<4x256xf32>
    %169 = arith.mulf %168, %167 : vector<4x256xf32>
    %170 = arith.addf %85, %162 : vector<4x256xf32>
    %171 = arith.subf %170, %163 : vector<4x256xf32>
    %172 = arith.subf %171, %164 : vector<4x256xf32>
    %cst_129 = arith.constant 5.000000e-01 : f32
    %173 = vector.broadcast %cst_129 : f32 to vector<4x256xf32>
    %174 = arith.mulf %173, %172 : vector<4x256xf32>
    %175 = arith.subf %85, %162 : vector<4x256xf32>
    %176 = arith.addf %175, %163 : vector<4x256xf32>
    %177 = arith.subf %176, %164 : vector<4x256xf32>
    %cst_130 = arith.constant 5.000000e-01 : f32
    %178 = vector.broadcast %cst_130 : f32 to vector<4x256xf32>
    %179 = arith.mulf %178, %177 : vector<4x256xf32>
    %180 = arith.subf %85, %162 : vector<4x256xf32>
    %181 = arith.subf %180, %163 : vector<4x256xf32>
    %182 = arith.addf %181, %164 : vector<4x256xf32>
    %cst_131 = arith.constant 5.000000e-01 : f32
    %183 = vector.broadcast %cst_131 : f32 to vector<4x256xf32>
    %184 = arith.mulf %183, %182 : vector<4x256xf32>
    %c0_132 = arith.constant 0 : index
    %c128_133 = arith.constant 128 : index
    %185 = vector.load %arg16[%c0_132, %c128_133] : memref<4x512xf32, #tpu.memory_space<vmem>>, vector<4x256xf32>
    tpu.vector_store %arg16[%c0_132, %c128_133], %169 {strides = array<i32>} : memref<4x512xf32, #tpu.memory_space<vmem>>, vector<4x256xf32>,
    %cst_134 = arith.constant 0.000000e+00 : f32
    %186 = vector.broadcast %cst_134 : f32 to vector<4x256xf32>
    %c0_135 = arith.constant 0 : index
    %c94 = arith.constant 94 : index
    %187 = vector.load %arg16[%c0_135, %c94] : memref<4x512xf32, #tpu.memory_space<vmem>>, vector<4x256xf32>
    %188 = vector.broadcast %2 : vector<1x256xf32> to vector<4x256xf32>
    %189 = arith.mulf %187, %188 : vector<4x256xf32>
    %c0_136 = arith.constant 0 : index
    %c0_137 = arith.constant 0 : index
    %c0_138 = arith.constant 0 : index
    %190 = vector.load %arg12[%c0_136, %c0_137, %c0_138] : memref<36x4x1xf32, #tpu.memory_space<vmem>>, vector<1x4x1xf32>
    %191 = vector.shape_cast %190 : vector<1x4x1xf32> to vector<4x1xf32>
    %192 = vector.broadcast %191 : vector<4x1xf32> to vector<4x256xf32>
    %193 = arith.mulf %192, %189 : vector<4x256xf32>
    %194 = arith.addf %186, %193 : vector<4x256xf32>
    %c0_139 = arith.constant 0 : index
    %c96 = arith.constant 96 : index
    %195 = vector.load %arg16[%c0_139, %c96] : memref<4x512xf32, #tpu.memory_space<vmem>>, vector<4x256xf32>
    %c1_140 = arith.constant 1 : index
    %c0_141 = arith.constant 0 : index
    %c0_142 = arith.constant 0 : index
    %196 = vector.load %arg12[%c1_140, %c0_141, %c0_142] : memref<36x4x1xf32, #tpu.memory_space<vmem>>, vector<1x4x1xf32>
    %197 = vector.shape_cast %196 : vector<1x4x1xf32> to vector<4x1xf32>
    %198 = vector.broadcast %197 : vector<4x1xf32> to vector<4x256xf32>
    %199 = arith.mulf %198, %195 : vector<4x256xf32>
    %200 = arith.addf %194, %199 : vector<4x256xf32>
    %c0_143 = arith.constant 0 : index
    %c98 = arith.constant 98 : index
    %201 = vector.load %arg16[%c0_143, %c98] : memref<4x512xf32, #tpu.memory_space<vmem>>, vector<4x256xf32>
    %202 = vector.broadcast %3 : vector<1x256xf32> to vector<4x256xf32>
    %203 = arith.mulf %201, %202 : vector<4x256xf32>
    %c2_144 = arith.constant 2 : index
    %c0_145 = arith.constant 0 : index
    %c0_146 = arith.constant 0 : index
    %204 = vector.load %arg12[%c2_144, %c0_145, %c0_146] : memref<36x4x1xf32, #tpu.memory_space<vmem>>, vector<1x4x1xf32>
    %205 = vector.shape_cast %204 : vector<1x4x1xf32> to vector<4x1xf32>
    %206 = vector.broadcast %205 : vector<4x1xf32> to vector<4x256xf32>
    %207 = arith.mulf %206, %203 : vector<4x256xf32>
    %208 = arith.addf %200, %207 : vector<4x256xf32>
    %c0_147 = arith.constant 0 : index
    %c126 = arith.constant 126 : index
    %209 = vector.load %arg16[%c0_147, %c126] : memref<4x512xf32, #tpu.memory_space<vmem>>, vector<4x256xf32>
    %210 = vector.broadcast %2 : vector<1x256xf32> to vector<4x256xf32>
    %211 = arith.mulf %209, %210 : vector<4x256xf32>
    %c3_148 = arith.constant 3 : index
    %c0_149 = arith.constant 0 : index
    %c0_150 = arith.constant 0 : index
    %212 = vector.load %arg12[%c3_148, %c0_149, %c0_150] : memref<36x4x1xf32, #tpu.memory_space<vmem>>, vector<1x4x1xf32>
    %213 = vector.shape_cast %212 : vector<1x4x1xf32> to vector<4x1xf32>
    %214 = vector.broadcast %213 : vector<4x1xf32> to vector<4x256xf32>
    %215 = arith.mulf %214, %211 : vector<4x256xf32>
    %216 = arith.addf %208, %215 : vector<4x256xf32>
    %c0_151 = arith.constant 0 : index
    %c128_152 = arith.constant 128 : index
    %217 = vector.load %arg16[%c0_151, %c128_152] : memref<4x512xf32, #tpu.memory_space<vmem>>, vector<4x256xf32>
    %c4_153 = arith.constant 4 : index
    %c0_154 = arith.constant 0 : index
    %c0_155 = arith.constant 0 : index
    %218 = vector.load %arg12[%c4_153, %c0_154, %c0_155] : memref<36x4x1xf32, #tpu.memory_space<vmem>>, vector<1x4x1xf32>
    %219 = vector.shape_cast %218 : vector<1x4x1xf32> to vector<4x1xf32>
    %220 = vector.broadcast %219 : vector<4x1xf32> to vector<4x256xf32>
    %221 = arith.mulf %220, %217 : vector<4x256xf32>
    %222 = arith.addf %216, %221 : vector<4x256xf32>
    %c0_156 = arith.constant 0 : index
    %c130 = arith.constant 130 : index
    %223 = vector.load %arg16[%c0_156, %c130] : memref<4x512xf32, #tpu.memory_space<vmem>>, vector<4x256xf32>
    %224 = vector.broadcast %3 : vector<1x256xf32> to vector<4x256xf32>
    %225 = arith.mulf %223, %224 : vector<4x256xf32>
    %c5_157 = arith.constant 5 : index
    %c0_158 = arith.constant 0 : index
    %c0_159 = arith.constant 0 : index
    %226 = vector.load %arg12[%c5_157, %c0_158, %c0_159] : memref<36x4x1xf32, #tpu.memory_space<vmem>>, vector<1x4x1xf32>
    %227 = vector.shape_cast %226 : vector<1x4x1xf32> to vector<4x1xf32>
    %228 = vector.broadcast %227 : vector<4x1xf32> to vector<4x256xf32>
    %229 = arith.mulf %228, %225 : vector<4x256xf32>
    %230 = arith.addf %222, %229 : vector<4x256xf32>
    %c0_160 = arith.constant 0 : index
    %c158 = arith.constant 158 : index
    %231 = vector.load %arg16[%c0_160, %c158] : memref<4x512xf32, #tpu.memory_space<vmem>>, vector<4x256xf32>
    %232 = vector.broadcast %2 : vector<1x256xf32> to vector<4x256xf32>
    %233 = arith.mulf %231, %232 : vector<4x256xf32>
    %c6_161 = arith.constant 6 : index
    %c0_162 = arith.constant 0 : index
    %c0_163 = arith.constant 0 : index
    %234 = vector.load %arg12[%c6_161, %c0_162, %c0_163] : memref<36x4x1xf32, #tpu.memory_space<vmem>>, vector<1x4x1xf32>
    %235 = vector.shape_cast %234 : vector<1x4x1xf32> to vector<4x1xf32>
    %236 = vector.broadcast %235 : vector<4x1xf32> to vector<4x256xf32>
    %237 = arith.mulf %236, %233 : vector<4x256xf32>
    %238 = arith.addf %230, %237 : vector<4x256xf32>
    %c0_164 = arith.constant 0 : index
    %c160 = arith.constant 160 : index
    %239 = vector.load %arg16[%c0_164, %c160] : memref<4x512xf32, #tpu.memory_space<vmem>>, vector<4x256xf32>
    %c7_165 = arith.constant 7 : index
    %c0_166 = arith.constant 0 : index
    %c0_167 = arith.constant 0 : index
    %240 = vector.load %arg12[%c7_165, %c0_166, %c0_167] : memref<36x4x1xf32, #tpu.memory_space<vmem>>, vector<1x4x1xf32>
    %241 = vector.shape_cast %240 : vector<1x4x1xf32> to vector<4x1xf32>
    %242 = vector.broadcast %241 : vector<4x1xf32> to vector<4x256xf32>
    %243 = arith.mulf %242, %239 : vector<4x256xf32>
    %244 = arith.addf %238, %243 : vector<4x256xf32>
    %c0_168 = arith.constant 0 : index
    %c162 = arith.constant 162 : index
    %245 = vector.load %arg16[%c0_168, %c162] : memref<4x512xf32, #tpu.memory_space<vmem>>, vector<4x256xf32>
    %246 = vector.broadcast %3 : vector<1x256xf32> to vector<4x256xf32>
    %247 = arith.mulf %245, %246 : vector<4x256xf32>
    %c8_169 = arith.constant 8 : index
    %c0_170 = arith.constant 0 : index
    %c0_171 = arith.constant 0 : index
    %248 = vector.load %arg12[%c8_169, %c0_170, %c0_171] : memref<36x4x1xf32, #tpu.memory_space<vmem>>, vector<1x4x1xf32>
    %249 = vector.shape_cast %248 : vector<1x4x1xf32> to vector<4x1xf32>
    %250 = vector.broadcast %249 : vector<4x1xf32> to vector<4x256xf32>
    %251 = arith.mulf %250, %247 : vector<4x256xf32>
    %252 = arith.addf %244, %251 : vector<4x256xf32>
    %c0_172 = arith.constant 0 : index
    %c0_173 = arith.constant 0 : index
    %c0_174 = arith.constant 0 : index
    %253 = vector.load %arg13[%c0_172, %c0_173, %c0_174] : memref<4x4x1xf32, #tpu.memory_space<vmem>>, vector<1x4x1xf32>
    %254 = vector.shape_cast %253 : vector<1x4x1xf32> to vector<4x1xf32>
    %255 = vector.broadcast %254 : vector<4x1xf32> to vector<4x256xf32>
    %256 = arith.mulf %252, %255 : vector<4x256xf32>
    %c0_175 = arith.constant 0 : index
    %c128_176 = arith.constant 128 : index
    %257 = vector.load %arg16[%c0_175, %c128_176] : memref<4x512xf32, #tpu.memory_space<vmem>>, vector<4x256xf32>
    tpu.vector_store %arg16[%c0_175, %c128_176], %174 {strides = array<i32>} : memref<4x512xf32, #tpu.memory_space<vmem>>, vector<4x256xf32>,
    %cst_177 = arith.constant 0.000000e+00 : f32
    %258 = vector.broadcast %cst_177 : f32 to vector<4x256xf32>
    %c0_178 = arith.constant 0 : index
    %c94_179 = arith.constant 94 : index
    %259 = vector.load %arg16[%c0_178, %c94_179] : memref<4x512xf32, #tpu.memory_space<vmem>>, vector<4x256xf32>
    %260 = vector.broadcast %2 : vector<1x256xf32> to vector<4x256xf32>
    %261 = arith.mulf %259, %260 : vector<4x256xf32>
    %c9 = arith.constant 9 : index
    %c0_180 = arith.constant 0 : index
    %c0_181 = arith.constant 0 : index
    %262 = vector.load %arg12[%c9, %c0_180, %c0_181] : memref<36x4x1xf32, #tpu.memory_space<vmem>>, vector<1x4x1xf32>
    %263 = vector.shape_cast %262 : vector<1x4x1xf32> to vector<4x1xf32>
    %264 = vector.broadcast %263 : vector<4x1xf32> to vector<4x256xf32>
    %265 = arith.mulf %264, %261 : vector<4x256xf32>
    %266 = arith.addf %258, %265 : vector<4x256xf32>
    %c0_182 = arith.constant 0 : index
    %c96_183 = arith.constant 96 : index
    %267 = vector.load %arg16[%c0_182, %c96_183] : memref<4x512xf32, #tpu.memory_space<vmem>>, vector<4x256xf32>
    %c10 = arith.constant 10 : index
    %c0_184 = arith.constant 0 : index
    %c0_185 = arith.constant 0 : index
    %268 = vector.load %arg12[%c10, %c0_184, %c0_185] : memref<36x4x1xf32, #tpu.memory_space<vmem>>, vector<1x4x1xf32>
    %269 = vector.shape_cast %268 : vector<1x4x1xf32> to vector<4x1xf32>
    %270 = vector.broadcast %269 : vector<4x1xf32> to vector<4x256xf32>
    %271 = arith.mulf %270, %267 : vector<4x256xf32>
    %272 = arith.addf %266, %271 : vector<4x256xf32>
    %c0_186 = arith.constant 0 : index
    %c98_187 = arith.constant 98 : index
    %273 = vector.load %arg16[%c0_186, %c98_187] : memref<4x512xf32, #tpu.memory_space<vmem>>, vector<4x256xf32>
    %274 = vector.broadcast %3 : vector<1x256xf32> to vector<4x256xf32>
    %275 = arith.mulf %273, %274 : vector<4x256xf32>
    %c11 = arith.constant 11 : index
    %c0_188 = arith.constant 0 : index
    %c0_189 = arith.constant 0 : index
    %276 = vector.load %arg12[%c11, %c0_188, %c0_189] : memref<36x4x1xf32, #tpu.memory_space<vmem>>, vector<1x4x1xf32>
    %277 = vector.shape_cast %276 : vector<1x4x1xf32> to vector<4x1xf32>
    %278 = vector.broadcast %277 : vector<4x1xf32> to vector<4x256xf32>
    %279 = arith.mulf %278, %275 : vector<4x256xf32>
    %280 = arith.addf %272, %279 : vector<4x256xf32>
    %c0_190 = arith.constant 0 : index
    %c126_191 = arith.constant 126 : index
    %281 = vector.load %arg16[%c0_190, %c126_191] : memref<4x512xf32, #tpu.memory_space<vmem>>, vector<4x256xf32>
    %282 = vector.broadcast %2 : vector<1x256xf32> to vector<4x256xf32>
    %283 = arith.mulf %281, %282 : vector<4x256xf32>
    %c12 = arith.constant 12 : index
    %c0_192 = arith.constant 0 : index
    %c0_193 = arith.constant 0 : index
    %284 = vector.load %arg12[%c12, %c0_192, %c0_193] : memref<36x4x1xf32, #tpu.memory_space<vmem>>, vector<1x4x1xf32>
    %285 = vector.shape_cast %284 : vector<1x4x1xf32> to vector<4x1xf32>
    %286 = vector.broadcast %285 : vector<4x1xf32> to vector<4x256xf32>
    %287 = arith.mulf %286, %283 : vector<4x256xf32>
    %288 = arith.addf %280, %287 : vector<4x256xf32>
    %c0_194 = arith.constant 0 : index
    %c128_195 = arith.constant 128 : index
    %289 = vector.load %arg16[%c0_194, %c128_195] : memref<4x512xf32, #tpu.memory_space<vmem>>, vector<4x256xf32>
    %c13 = arith.constant 13 : index
    %c0_196 = arith.constant 0 : index
    %c0_197 = arith.constant 0 : index
    %290 = vector.load %arg12[%c13, %c0_196, %c0_197] : memref<36x4x1xf32, #tpu.memory_space<vmem>>, vector<1x4x1xf32>
    %291 = vector.shape_cast %290 : vector<1x4x1xf32> to vector<4x1xf32>
    %292 = vector.broadcast %291 : vector<4x1xf32> to vector<4x256xf32>
    %293 = arith.mulf %292, %289 : vector<4x256xf32>
    %294 = arith.addf %288, %293 : vector<4x256xf32>
    %c0_198 = arith.constant 0 : index
    %c130_199 = arith.constant 130 : index
    %295 = vector.load %arg16[%c0_198, %c130_199] : memref<4x512xf32, #tpu.memory_space<vmem>>, vector<4x256xf32>
    %296 = vector.broadcast %3 : vector<1x256xf32> to vector<4x256xf32>
    %297 = arith.mulf %295, %296 : vector<4x256xf32>
    %c14 = arith.constant 14 : index
    %c0_200 = arith.constant 0 : index
    %c0_201 = arith.constant 0 : index
    %298 = vector.load %arg12[%c14, %c0_200, %c0_201] : memref<36x4x1xf32, #tpu.memory_space<vmem>>, vector<1x4x1xf32>
    %299 = vector.shape_cast %298 : vector<1x4x1xf32> to vector<4x1xf32>
    %300 = vector.broadcast %299 : vector<4x1xf32> to vector<4x256xf32>
    %301 = arith.mulf %300, %297 : vector<4x256xf32>
    %302 = arith.addf %294, %301 : vector<4x256xf32>
    %c0_202 = arith.constant 0 : index
    %c158_203 = arith.constant 158 : index
    %303 = vector.load %arg16[%c0_202, %c158_203] : memref<4x512xf32, #tpu.memory_space<vmem>>, vector<4x256xf32>
    %304 = vector.broadcast %2 : vector<1x256xf32> to vector<4x256xf32>
    %305 = arith.mulf %303, %304 : vector<4x256xf32>
    %c15 = arith.constant 15 : index
    %c0_204 = arith.constant 0 : index
    %c0_205 = arith.constant 0 : index
    %306 = vector.load %arg12[%c15, %c0_204, %c0_205] : memref<36x4x1xf32, #tpu.memory_space<vmem>>, vector<1x4x1xf32>
    %307 = vector.shape_cast %306 : vector<1x4x1xf32> to vector<4x1xf32>
    %308 = vector.broadcast %307 : vector<4x1xf32> to vector<4x256xf32>
    %309 = arith.mulf %308, %305 : vector<4x256xf32>
    %310 = arith.addf %302, %309 : vector<4x256xf32>
    %c0_206 = arith.constant 0 : index
    %c160_207 = arith.constant 160 : index
    %311 = vector.load %arg16[%c0_206, %c160_207] : memref<4x512xf32, #tpu.memory_space<vmem>>, vector<4x256xf32>
    %c16 = arith.constant 16 : index
    %c0_208 = arith.constant 0 : index
    %c0_209 = arith.constant 0 : index
    %312 = vector.load %arg12[%c16, %c0_208, %c0_209] : memref<36x4x1xf32, #tpu.memory_space<vmem>>, vector<1x4x1xf32>
    %313 = vector.shape_cast %312 : vector<1x4x1xf32> to vector<4x1xf32>
    %314 = vector.broadcast %313 : vector<4x1xf32> to vector<4x256xf32>
    %315 = arith.mulf %314, %311 : vector<4x256xf32>
    %316 = arith.addf %310, %315 : vector<4x256xf32>
    %c0_210 = arith.constant 0 : index
    %c162_211 = arith.constant 162 : index
    %317 = vector.load %arg16[%c0_210, %c162_211] : memref<4x512xf32, #tpu.memory_space<vmem>>, vector<4x256xf32>
    %318 = vector.broadcast %3 : vector<1x256xf32> to vector<4x256xf32>
    %319 = arith.mulf %317, %318 : vector<4x256xf32>
    %c17 = arith.constant 17 : index
    %c0_212 = arith.constant 0 : index
    %c0_213 = arith.constant 0 : index
    %320 = vector.load %arg12[%c17, %c0_212, %c0_213] : memref<36x4x1xf32, #tpu.memory_space<vmem>>, vector<1x4x1xf32>
    %321 = vector.shape_cast %320 : vector<1x4x1xf32> to vector<4x1xf32>
    %322 = vector.broadcast %321 : vector<4x1xf32> to vector<4x256xf32>
    %323 = arith.mulf %322, %319 : vector<4x256xf32>
    %324 = arith.addf %316, %323 : vector<4x256xf32>
    %c1_214 = arith.constant 1 : index
    %c0_215 = arith.constant 0 : index
    %c0_216 = arith.constant 0 : index
    %325 = vector.load %arg13[%c1_214, %c0_215, %c0_216] : memref<4x4x1xf32, #tpu.memory_space<vmem>>, vector<1x4x1xf32>
    %326 = vector.shape_cast %325 : vector<1x4x1xf32> to vector<4x1xf32>
    %327 = vector.broadcast %326 : vector<4x1xf32> to vector<4x256xf32>
    %328 = arith.mulf %324, %327 : vector<4x256xf32>
    %c0_217 = arith.constant 0 : index
    %c128_218 = arith.constant 128 : index
    %329 = vector.load %arg16[%c0_217, %c128_218] : memref<4x512xf32, #tpu.memory_space<vmem>>, vector<4x256xf32>
    tpu.vector_store %arg16[%c0_217, %c128_218], %179 {strides = array<i32>} : memref<4x512xf32, #tpu.memory_space<vmem>>, vector<4x256xf32>,
    %cst_219 = arith.constant 0.000000e+00 : f32
    %330 = vector.broadcast %cst_219 : f32 to vector<4x256xf32>
    %c0_220 = arith.constant 0 : index
    %c94_221 = arith.constant 94 : index
    %331 = vector.load %arg16[%c0_220, %c94_221] : memref<4x512xf32, #tpu.memory_space<vmem>>, vector<4x256xf32>
    %332 = vector.broadcast %2 : vector<1x256xf32> to vector<4x256xf32>
    %333 = arith.mulf %331, %332 : vector<4x256xf32>
    %c18 = arith.constant 18 : index
    %c0_222 = arith.constant 0 : index
    %c0_223 = arith.constant 0 : index
    %334 = vector.load %arg12[%c18, %c0_222, %c0_223] : memref<36x4x1xf32, #tpu.memory_space<vmem>>, vector<1x4x1xf32>
    %335 = vector.shape_cast %334 : vector<1x4x1xf32> to vector<4x1xf32>
    %336 = vector.broadcast %335 : vector<4x1xf32> to vector<4x256xf32>
    %337 = arith.mulf %336, %333 : vector<4x256xf32>
    %338 = arith.addf %330, %337 : vector<4x256xf32>
    %c0_224 = arith.constant 0 : index
    %c96_225 = arith.constant 96 : index
    %339 = vector.load %arg16[%c0_224, %c96_225] : memref<4x512xf32, #tpu.memory_space<vmem>>, vector<4x256xf32>
    %c19 = arith.constant 19 : index
    %c0_226 = arith.constant 0 : index
    %c0_227 = arith.constant 0 : index
    %340 = vector.load %arg12[%c19, %c0_226, %c0_227] : memref<36x4x1xf32, #tpu.memory_space<vmem>>, vector<1x4x1xf32>
    %341 = vector.shape_cast %340 : vector<1x4x1xf32> to vector<4x1xf32>
    %342 = vector.broadcast %341 : vector<4x1xf32> to vector<4x256xf32>
    %343 = arith.mulf %342, %339 : vector<4x256xf32>
    %344 = arith.addf %338, %343 : vector<4x256xf32>
    %c0_228 = arith.constant 0 : index
    %c98_229 = arith.constant 98 : index
    %345 = vector.load %arg16[%c0_228, %c98_229] : memref<4x512xf32, #tpu.memory_space<vmem>>, vector<4x256xf32>
    %346 = vector.broadcast %3 : vector<1x256xf32> to vector<4x256xf32>
    %347 = arith.mulf %345, %346 : vector<4x256xf32>
    %c20 = arith.constant 20 : index
    %c0_230 = arith.constant 0 : index
    %c0_231 = arith.constant 0 : index
    %348 = vector.load %arg12[%c20, %c0_230, %c0_231] : memref<36x4x1xf32, #tpu.memory_space<vmem>>, vector<1x4x1xf32>
    %349 = vector.shape_cast %348 : vector<1x4x1xf32> to vector<4x1xf32>
    %350 = vector.broadcast %349 : vector<4x1xf32> to vector<4x256xf32>
    %351 = arith.mulf %350, %347 : vector<4x256xf32>
    %352 = arith.addf %344, %351 : vector<4x256xf32>
    %c0_232 = arith.constant 0 : index
    %c126_233 = arith.constant 126 : index
    %353 = vector.load %arg16[%c0_232, %c126_233] : memref<4x512xf32, #tpu.memory_space<vmem>>, vector<4x256xf32>
    %354 = vector.broadcast %2 : vector<1x256xf32> to vector<4x256xf32>
    %355 = arith.mulf %353, %354 : vector<4x256xf32>
    %c21 = arith.constant 21 : index
    %c0_234 = arith.constant 0 : index
    %c0_235 = arith.constant 0 : index
    %356 = vector.load %arg12[%c21, %c0_234, %c0_235] : memref<36x4x1xf32, #tpu.memory_space<vmem>>, vector<1x4x1xf32>
    %357 = vector.shape_cast %356 : vector<1x4x1xf32> to vector<4x1xf32>
    %358 = vector.broadcast %357 : vector<4x1xf32> to vector<4x256xf32>
    %359 = arith.mulf %358, %355 : vector<4x256xf32>
    %360 = arith.addf %352, %359 : vector<4x256xf32>
    %c0_236 = arith.constant 0 : index
    %c128_237 = arith.constant 128 : index
    %361 = vector.load %arg16[%c0_236, %c128_237] : memref<4x512xf32, #tpu.memory_space<vmem>>, vector<4x256xf32>
    %c22 = arith.constant 22 : index
    %c0_238 = arith.constant 0 : index
    %c0_239 = arith.constant 0 : index
    %362 = vector.load %arg12[%c22, %c0_238, %c0_239] : memref<36x4x1xf32, #tpu.memory_space<vmem>>, vector<1x4x1xf32>
    %363 = vector.shape_cast %362 : vector<1x4x1xf32> to vector<4x1xf32>
    %364 = vector.broadcast %363 : vector<4x1xf32> to vector<4x256xf32>
    %365 = arith.mulf %364, %361 : vector<4x256xf32>
    %366 = arith.addf %360, %365 : vector<4x256xf32>
    %c0_240 = arith.constant 0 : index
    %c130_241 = arith.constant 130 : index
    %367 = vector.load %arg16[%c0_240, %c130_241] : memref<4x512xf32, #tpu.memory_space<vmem>>, vector<4x256xf32>
    %368 = vector.broadcast %3 : vector<1x256xf32> to vector<4x256xf32>
    %369 = arith.mulf %367, %368 : vector<4x256xf32>
    %c23 = arith.constant 23 : index
    %c0_242 = arith.constant 0 : index
    %c0_243 = arith.constant 0 : index
    %370 = vector.load %arg12[%c23, %c0_242, %c0_243] : memref<36x4x1xf32, #tpu.memory_space<vmem>>, vector<1x4x1xf32>
    %371 = vector.shape_cast %370 : vector<1x4x1xf32> to vector<4x1xf32>
    %372 = vector.broadcast %371 : vector<4x1xf32> to vector<4x256xf32>
    %373 = arith.mulf %372, %369 : vector<4x256xf32>
    %374 = arith.addf %366, %373 : vector<4x256xf32>
    %c0_244 = arith.constant 0 : index
    %c158_245 = arith.constant 158 : index
    %375 = vector.load %arg16[%c0_244, %c158_245] : memref<4x512xf32, #tpu.memory_space<vmem>>, vector<4x256xf32>
    %376 = vector.broadcast %2 : vector<1x256xf32> to vector<4x256xf32>
    %377 = arith.mulf %375, %376 : vector<4x256xf32>
    %c24 = arith.constant 24 : index
    %c0_246 = arith.constant 0 : index
    %c0_247 = arith.constant 0 : index
    %378 = vector.load %arg12[%c24, %c0_246, %c0_247] : memref<36x4x1xf32, #tpu.memory_space<vmem>>, vector<1x4x1xf32>
    %379 = vector.shape_cast %378 : vector<1x4x1xf32> to vector<4x1xf32>
    %380 = vector.broadcast %379 : vector<4x1xf32> to vector<4x256xf32>
    %381 = arith.mulf %380, %377 : vector<4x256xf32>
    %382 = arith.addf %374, %381 : vector<4x256xf32>
    %c0_248 = arith.constant 0 : index
    %c160_249 = arith.constant 160 : index
    %383 = vector.load %arg16[%c0_248, %c160_249] : memref<4x512xf32, #tpu.memory_space<vmem>>, vector<4x256xf32>
    %c25 = arith.constant 25 : index
    %c0_250 = arith.constant 0 : index
    %c0_251 = arith.constant 0 : index
    %384 = vector.load %arg12[%c25, %c0_250, %c0_251] : memref<36x4x1xf32, #tpu.memory_space<vmem>>, vector<1x4x1xf32>
    %385 = vector.shape_cast %384 : vector<1x4x1xf32> to vector<4x1xf32>
    %386 = vector.broadcast %385 : vector<4x1xf32> to vector<4x256xf32>
    %387 = arith.mulf %386, %383 : vector<4x256xf32>
    %388 = arith.addf %382, %387 : vector<4x256xf32>
    %c0_252 = arith.constant 0 : index
    %c162_253 = arith.constant 162 : index
    %389 = vector.load %arg16[%c0_252, %c162_253] : memref<4x512xf32, #tpu.memory_space<vmem>>, vector<4x256xf32>
    %390 = vector.broadcast %3 : vector<1x256xf32> to vector<4x256xf32>
    %391 = arith.mulf %389, %390 : vector<4x256xf32>
    %c26 = arith.constant 26 : index
    %c0_254 = arith.constant 0 : index
    %c0_255 = arith.constant 0 : index
    %392 = vector.load %arg12[%c26, %c0_254, %c0_255] : memref<36x4x1xf32, #tpu.memory_space<vmem>>, vector<1x4x1xf32>
    %393 = vector.shape_cast %392 : vector<1x4x1xf32> to vector<4x1xf32>
    %394 = vector.broadcast %393 : vector<4x1xf32> to vector<4x256xf32>
    %395 = arith.mulf %394, %391 : vector<4x256xf32>
    %396 = arith.addf %388, %395 : vector<4x256xf32>
    %c2_256 = arith.constant 2 : index
    %c0_257 = arith.constant 0 : index
    %c0_258 = arith.constant 0 : index
    %397 = vector.load %arg13[%c2_256, %c0_257, %c0_258] : memref<4x4x1xf32, #tpu.memory_space<vmem>>, vector<1x4x1xf32>
    %398 = vector.shape_cast %397 : vector<1x4x1xf32> to vector<4x1xf32>
    %399 = vector.broadcast %398 : vector<4x1xf32> to vector<4x256xf32>
    %400 = arith.mulf %396, %399 : vector<4x256xf32>
    %c0_259 = arith.constant 0 : index
    %c128_260 = arith.constant 128 : index
    %401 = vector.load %arg16[%c0_259, %c128_260] : memref<4x512xf32, #tpu.memory_space<vmem>>, vector<4x256xf32>
    tpu.vector_store %arg16[%c0_259, %c128_260], %184 {strides = array<i32>} : memref<4x512xf32, #tpu.memory_space<vmem>>, vector<4x256xf32>,
    %cst_261 = arith.constant 0.000000e+00 : f32
    %402 = vector.broadcast %cst_261 : f32 to vector<4x256xf32>
    %c0_262 = arith.constant 0 : index
    %c94_263 = arith.constant 94 : index
    %403 = vector.load %arg16[%c0_262, %c94_263] : memref<4x512xf32, #tpu.memory_space<vmem>>, vector<4x256xf32>
    %404 = vector.broadcast %2 : vector<1x256xf32> to vector<4x256xf32>
    %405 = arith.mulf %403, %404 : vector<4x256xf32>
    %c27 = arith.constant 27 : index
    %c0_264 = arith.constant 0 : index
    %c0_265 = arith.constant 0 : index
    %406 = vector.load %arg12[%c27, %c0_264, %c0_265] : memref<36x4x1xf32, #tpu.memory_space<vmem>>, vector<1x4x1xf32>
    %407 = vector.shape_cast %406 : vector<1x4x1xf32> to vector<4x1xf32>
    %408 = vector.broadcast %407 : vector<4x1xf32> to vector<4x256xf32>
    %409 = arith.mulf %408, %405 : vector<4x256xf32>
    %410 = arith.addf %402, %409 : vector<4x256xf32>
    %c0_266 = arith.constant 0 : index
    %c96_267 = arith.constant 96 : index
    %411 = vector.load %arg16[%c0_266, %c96_267] : memref<4x512xf32, #tpu.memory_space<vmem>>, vector<4x256xf32>
    %c28 = arith.constant 28 : index
    %c0_268 = arith.constant 0 : index
    %c0_269 = arith.constant 0 : index
    %412 = vector.load %arg12[%c28, %c0_268, %c0_269] : memref<36x4x1xf32, #tpu.memory_space<vmem>>, vector<1x4x1xf32>
    %413 = vector.shape_cast %412 : vector<1x4x1xf32> to vector<4x1xf32>
    %414 = vector.broadcast %413 : vector<4x1xf32> to vector<4x256xf32>
    %415 = arith.mulf %414, %411 : vector<4x256xf32>
    %416 = arith.addf %410, %415 : vector<4x256xf32>
    %c0_270 = arith.constant 0 : index
    %c98_271 = arith.constant 98 : index
    %417 = vector.load %arg16[%c0_270, %c98_271] : memref<4x512xf32, #tpu.memory_space<vmem>>, vector<4x256xf32>
    %418 = vector.broadcast %3 : vector<1x256xf32> to vector<4x256xf32>
    %419 = arith.mulf %417, %418 : vector<4x256xf32>
    %c29 = arith.constant 29 : index
    %c0_272 = arith.constant 0 : index
    %c0_273 = arith.constant 0 : index
    %420 = vector.load %arg12[%c29, %c0_272, %c0_273] : memref<36x4x1xf32, #tpu.memory_space<vmem>>, vector<1x4x1xf32>
    %421 = vector.shape_cast %420 : vector<1x4x1xf32> to vector<4x1xf32>
    %422 = vector.broadcast %421 : vector<4x1xf32> to vector<4x256xf32>
    %423 = arith.mulf %422, %419 : vector<4x256xf32>
    %424 = arith.addf %416, %423 : vector<4x256xf32>
    %c0_274 = arith.constant 0 : index
    %c126_275 = arith.constant 126 : index
    %425 = vector.load %arg16[%c0_274, %c126_275] : memref<4x512xf32, #tpu.memory_space<vmem>>, vector<4x256xf32>
    %426 = vector.broadcast %2 : vector<1x256xf32> to vector<4x256xf32>
    %427 = arith.mulf %425, %426 : vector<4x256xf32>
    %c30 = arith.constant 30 : index
    %c0_276 = arith.constant 0 : index
    %c0_277 = arith.constant 0 : index
    %428 = vector.load %arg12[%c30, %c0_276, %c0_277] : memref<36x4x1xf32, #tpu.memory_space<vmem>>, vector<1x4x1xf32>
    %429 = vector.shape_cast %428 : vector<1x4x1xf32> to vector<4x1xf32>
    %430 = vector.broadcast %429 : vector<4x1xf32> to vector<4x256xf32>
    %431 = arith.mulf %430, %427 : vector<4x256xf32>
    %432 = arith.addf %424, %431 : vector<4x256xf32>
    %c0_278 = arith.constant 0 : index
    %c128_279 = arith.constant 128 : index
    %433 = vector.load %arg16[%c0_278, %c128_279] : memref<4x512xf32, #tpu.memory_space<vmem>>, vector<4x256xf32>
    %c31 = arith.constant 31 : index
    %c0_280 = arith.constant 0 : index
    %c0_281 = arith.constant 0 : index
    %434 = vector.load %arg12[%c31, %c0_280, %c0_281] : memref<36x4x1xf32, #tpu.memory_space<vmem>>, vector<1x4x1xf32>
    %435 = vector.shape_cast %434 : vector<1x4x1xf32> to vector<4x1xf32>
    %436 = vector.broadcast %435 : vector<4x1xf32> to vector<4x256xf32>
    %437 = arith.mulf %436, %433 : vector<4x256xf32>
    %438 = arith.addf %432, %437 : vector<4x256xf32>
    %c0_282 = arith.constant 0 : index
    %c130_283 = arith.constant 130 : index
    %439 = vector.load %arg16[%c0_282, %c130_283] : memref<4x512xf32, #tpu.memory_space<vmem>>, vector<4x256xf32>
    %440 = vector.broadcast %3 : vector<1x256xf32> to vector<4x256xf32>
    %441 = arith.mulf %439, %440 : vector<4x256xf32>
    %c32 = arith.constant 32 : index
    %c0_284 = arith.constant 0 : index
    %c0_285 = arith.constant 0 : index
    %442 = vector.load %arg12[%c32, %c0_284, %c0_285] : memref<36x4x1xf32, #tpu.memory_space<vmem>>, vector<1x4x1xf32>
    %443 = vector.shape_cast %442 : vector<1x4x1xf32> to vector<4x1xf32>
    %444 = vector.broadcast %443 : vector<4x1xf32> to vector<4x256xf32>
    %445 = arith.mulf %444, %441 : vector<4x256xf32>
    %446 = arith.addf %438, %445 : vector<4x256xf32>
    %c0_286 = arith.constant 0 : index
    %c158_287 = arith.constant 158 : index
    %447 = vector.load %arg16[%c0_286, %c158_287] : memref<4x512xf32, #tpu.memory_space<vmem>>, vector<4x256xf32>
    %448 = vector.broadcast %2 : vector<1x256xf32> to vector<4x256xf32>
    %449 = arith.mulf %447, %448 : vector<4x256xf32>
    %c33 = arith.constant 33 : index
    %c0_288 = arith.constant 0 : index
    %c0_289 = arith.constant 0 : index
    %450 = vector.load %arg12[%c33, %c0_288, %c0_289] : memref<36x4x1xf32, #tpu.memory_space<vmem>>, vector<1x4x1xf32>
    %451 = vector.shape_cast %450 : vector<1x4x1xf32> to vector<4x1xf32>
    %452 = vector.broadcast %451 : vector<4x1xf32> to vector<4x256xf32>
    %453 = arith.mulf %452, %449 : vector<4x256xf32>
    %454 = arith.addf %446, %453 : vector<4x256xf32>
    %c0_290 = arith.constant 0 : index
    %c160_291 = arith.constant 160 : index
    %455 = vector.load %arg16[%c0_290, %c160_291] : memref<4x512xf32, #tpu.memory_space<vmem>>, vector<4x256xf32>
    %c34 = arith.constant 34 : index
    %c0_292 = arith.constant 0 : index
    %c0_293 = arith.constant 0 : index
    %456 = vector.load %arg12[%c34, %c0_292, %c0_293] : memref<36x4x1xf32, #tpu.memory_space<vmem>>, vector<1x4x1xf32>
    %457 = vector.shape_cast %456 : vector<1x4x1xf32> to vector<4x1xf32>
    %458 = vector.broadcast %457 : vector<4x1xf32> to vector<4x256xf32>
    %459 = arith.mulf %458, %455 : vector<4x256xf32>
    %460 = arith.addf %454, %459 : vector<4x256xf32>
    %c0_294 = arith.constant 0 : index
    %c162_295 = arith.constant 162 : index
    %461 = vector.load %arg16[%c0_294, %c162_295] : memref<4x512xf32, #tpu.memory_space<vmem>>, vector<4x256xf32>
    %462 = vector.broadcast %3 : vector<1x256xf32> to vector<4x256xf32>
    %463 = arith.mulf %461, %462 : vector<4x256xf32>
    %c35 = arith.constant 35 : index
    %c0_296 = arith.constant 0 : index
    %c0_297 = arith.constant 0 : index
    %464 = vector.load %arg12[%c35, %c0_296, %c0_297] : memref<36x4x1xf32, #tpu.memory_space<vmem>>, vector<1x4x1xf32>
    %465 = vector.shape_cast %464 : vector<1x4x1xf32> to vector<4x1xf32>
    %466 = vector.broadcast %465 : vector<4x1xf32> to vector<4x256xf32>
    %467 = arith.mulf %466, %463 : vector<4x256xf32>
    %468 = arith.addf %460, %467 : vector<4x256xf32>
    %c3_298 = arith.constant 3 : index
    %c0_299 = arith.constant 0 : index
    %c0_300 = arith.constant 0 : index
    %469 = vector.load %arg13[%c3_298, %c0_299, %c0_300] : memref<4x4x1xf32, #tpu.memory_space<vmem>>, vector<1x4x1xf32>
    %470 = vector.shape_cast %469 : vector<1x4x1xf32> to vector<4x1xf32>
    %471 = vector.broadcast %470 : vector<4x1xf32> to vector<4x256xf32>
    %472 = arith.mulf %468, %471 : vector<4x256xf32>
    %473 = arith.addf %256, %328 : vector<4x256xf32>
    %474 = arith.addf %473, %400 : vector<4x256xf32>
    %475 = arith.addf %474, %472 : vector<4x256xf32>
    %cst_301 = arith.constant 5.000000e-01 : f32
    %476 = vector.broadcast %cst_301 : f32 to vector<4x256xf32>
    %477 = arith.mulf %476, %475 : vector<4x256xf32>
    %478 = vector.broadcast %4 : vector<1x256xf32> to vector<4x256xf32>
    %479 = arith.mulf %477, %478 : vector<4x256xf32>
    %480 = arith.addf %256, %328 : vector<4x256xf32>
    %481 = arith.subf %480, %400 : vector<4x256xf32>
    %482 = arith.subf %481, %472 : vector<4x256xf32>
    %cst_302 = arith.constant 5.000000e-01 : f32
    %483 = vector.broadcast %cst_302 : f32 to vector<4x256xf32>
    %484 = arith.mulf %483, %482 : vector<4x256xf32>
    %485 = vector.broadcast %4 : vector<1x256xf32> to vector<4x256xf32>
    %486 = arith.mulf %484, %485 : vector<4x256xf32>
    %487 = arith.subf %256, %328 : vector<4x256xf32>
    %488 = arith.addf %487, %400 : vector<4x256xf32>
    %489 = arith.subf %488, %472 : vector<4x256xf32>
    %cst_303 = arith.constant 5.000000e-01 : f32
    %490 = vector.broadcast %cst_303 : f32 to vector<4x256xf32>
    %491 = arith.mulf %490, %489 : vector<4x256xf32>
    %492 = vector.broadcast %4 : vector<1x256xf32> to vector<4x256xf32>
    %493 = arith.mulf %491, %492 : vector<4x256xf32>
    %494 = arith.subf %256, %328 : vector<4x256xf32>
    %495 = arith.subf %494, %400 : vector<4x256xf32>
    %496 = arith.addf %495, %472 : vector<4x256xf32>
    %cst_304 = arith.constant 5.000000e-01 : f32
    %497 = vector.broadcast %cst_304 : f32 to vector<4x256xf32>
    %498 = arith.mulf %497, %496 : vector<4x256xf32>
    %499 = vector.broadcast %4 : vector<1x256xf32> to vector<4x256xf32>
    %500 = arith.mulf %498, %499 : vector<4x256xf32>
    %c0_305 = arith.constant 0 : index
    %c128_306 = arith.constant 128 : index
    %501 = vector.load %arg16[%c0_305, %c128_306] : memref<4x512xf32, #tpu.memory_space<vmem>>, vector<4x256xf32>
    tpu.vector_store %arg16[%c0_305, %c128_306], %486 {strides = array<i32>} : memref<4x512xf32, #tpu.memory_space<vmem>>, vector<4x256xf32>,
    %c0_307 = arith.constant 0 : index
    %c127_308 = arith.constant 127 : index
    %502 = vector.load %arg16[%c0_307, %c127_308] : memref<4x512xf32, #tpu.memory_space<vmem>>, vector<4x256xf32>
    %503 = arith.addf %479, %502 : vector<4x256xf32>
    %c0_309 = arith.constant 0 : index
    %c128_310 = arith.constant 128 : index
    %504 = vector.load %arg16[%c0_309, %c128_310] : memref<4x512xf32, #tpu.memory_space<vmem>>, vector<4x256xf32>
    tpu.vector_store %arg16[%c0_309, %c128_310], %493 {strides = array<i32>} : memref<4x512xf32, #tpu.memory_space<vmem>>, vector<4x256xf32>,
    %c0_311 = arith.constant 0 : index
    %c112_312 = arith.constant 112 : index
    %505 = vector.load %arg16[%c0_311, %c112_312] : memref<4x512xf32, #tpu.memory_space<vmem>>, vector<4x256xf32>
    %506 = arith.addf %503, %505 : vector<4x256xf32>
    %c0_313 = arith.constant 0 : index
    %c128_314 = arith.constant 128 : index
    %507 = vector.load %arg16[%c0_313, %c128_314] : memref<4x512xf32, #tpu.memory_space<vmem>>, vector<4x256xf32>
    tpu.vector_store %arg16[%c0_313, %c128_314], %500 {strides = array<i32>} : memref<4x512xf32, #tpu.memory_space<vmem>>, vector<4x256xf32>,
    %c0_315 = arith.constant 0 : index
    %c111_316 = arith.constant 111 : index
    %508 = vector.load %arg16[%c0_315, %c111_316] : memref<4x512xf32, #tpu.memory_space<vmem>>, vector<4x256xf32>
    %509 = arith.addf %506, %508 : vector<4x256xf32>
    %510 = arith.addf %161, %509 : vector<4x256xf32>
    %cst_317 = arith.constant dense<0.000000e+00> : vector<4xf32>
    %511 = vector.multi_reduction <add>, %510, %cst_317 [1] : vector<4x256xf32> to vector<4xf32>
    %512 = vector.shape_cast %511 : vector<4xf32> to vector<4x1xf32>
    %cst_318 = arith.constant 2.560000e+02 : f32
    %513 = vector.broadcast %cst_318 : f32 to vector<4x1xf32>
    %514 = arith.divf %512, %513 : vector<4x1xf32>
    %515 = vector.broadcast %514 : vector<4x1xf32> to vector<4x256xf32>
    %516 = arith.subf %510, %515 : vector<4x256xf32>
    %517 = arith.mulf %516, %516 : vector<4x256xf32>
    %cst_319 = arith.constant dense<0.000000e+00> : vector<4xf32>
    %518 = vector.multi_reduction <add>, %517, %cst_319 [1] : vector<4x256xf32> to vector<4xf32>
    %519 = vector.shape_cast %518 : vector<4xf32> to vector<4x1xf32>
    %cst_320 = arith.constant 2.550000e+02 : f32
    %520 = vector.broadcast %cst_320 : f32 to vector<4x1xf32>
    %521 = arith.divf %519, %520 : vector<4x1xf32>
    %cst_321 = arith.constant 9.99999974E-5 : f32
    %522 = vector.broadcast %cst_321 : f32 to vector<4x1xf32>
    %523 = arith.addf %521, %522 : vector<4x1xf32>
    %cst_322 = arith.constant 4.000000e+00 : f32
    %524 = vector.broadcast %cst_322 : f32 to vector<4x1xf32>
    %525 = arith.mulf %524, %523 : vector<4x1xf32>
    %526 = vector.broadcast %525 : vector<4x1xf32> to vector<4x256xf32>
    %527 = arith.divf %517, %526 : vector<4x256xf32>
    %cst_323 = arith.constant 5.000000e-01 : f32
    %528 = vector.broadcast %cst_323 : f32 to vector<4x256xf32>
    %529 = arith.addf %527, %528 : vector<4x256xf32>
    %530 = arith.negf %529 : vector<4x256xf32>
    %531 = math.exp %530 : vector<4x256xf32>
    %cst_324 = arith.constant 1.000000e+00 : f32
    %532 = vector.broadcast %cst_324 : f32 to vector<4x256xf32>
    %533 = arith.addf %532, %531 : vector<4x256xf32>
    %534 = arith.divf %532, %533 : vector<4x256xf32>
    %535 = arith.mulf %510, %534 : vector<4x256xf32>
    %c0_325 = arith.constant 0 : index
    %c0_326 = arith.constant 0 : index
    %c0_327 = arith.constant 0 : index
    %536 = vector.load %arg14[%c0_325, %c0_326, %c0_327] : memref<1x8x256xf32, #tpu.memory_space<vmem>>, vector<1x4x256xf32>
    %537 = vector.shape_cast %536 : vector<1x4x256xf32> to vector<4x256xf32>
    %538 = vector.shape_cast %6 : vector<4x256xf32> to vector<1x4x256xf32>
    tpu.vector_store %arg14[%c0_325, %c0_326, %c0_327], %538 {strides = array<i32>} : memref<1x8x256xf32, #tpu.memory_space<vmem>>, vector<1x4x256xf32>,
    %c0_328 = arith.constant 0 : index
    %c4_329 = arith.constant 4 : index
    %c0_330 = arith.constant 0 : index
    %539 = vector.load %arg14[%c0_328, %c4_329, %c0_330] : memref<1x8x256xf32, #tpu.memory_space<vmem>>, vector<1x4x256xf32>
    %540 = vector.shape_cast %539 : vector<1x4x256xf32> to vector<4x256xf32>
    %541 = vector.shape_cast %535 : vector<4x256xf32> to vector<1x4x256xf32>
    tpu.vector_store %arg14[%c0_328, %c4_329, %c0_330], %541 {strides = array<i32>} : memref<1x8x256xf32, #tpu.memory_space<vmem>>, vector<1x4x256xf32>,
    return
  }
  func.func @transform_0(%arg0: i32) -> (i32, i32, i32) {
    %c0_i32 = arith.constant 0 : i32
    %c0_i32_0 = arith.constant 0 : i32
    %c0_i32_1 = arith.constant 0 : i32
    return %arg0, %c0_i32, %c0_i32_0 : i32, i32, i32
  }
  func.func @transform_1(%arg0: i32) -> (i32, i32) {
    %c0_i32 = arith.constant 0 : i32
    %c0_i32_0 = arith.constant 0 : i32
    %c0_i32_1 = arith.constant 0 : i32
    return %c0_i32, %c0_i32_0 : i32, i32
  }
  func.func @transform_2(%arg0: i32) -> (i32, i32) {
    %c0_i32 = arith.constant 0 : i32
    %c0_i32_0 = arith.constant 0 : i32
    %c0_i32_1 = arith.constant 0 : i32
    return %c0_i32, %c0_i32_0 : i32, i32
  }
  func.func @transform_3(%arg0: i32) -> (i32, i32) {
    %c0_i32 = arith.constant 0 : i32
    %c0_i32_0 = arith.constant 0 : i32
    %c0_i32_1 = arith.constant 0 : i32
    return %c0_i32, %c0_i32_0 : i32, i32
  }
  func.func @transform_4(%arg0: i32) -> (i32, i32) {
    %c0_i32 = arith.constant 0 : i32
    %c0_i32_0 = arith.constant 0 : i32
    %c0_i32_1 = arith.constant 0 : i32
    return %c0_i32, %c0_i32_0 : i32, i32
  }
  func.func @transform_5(%arg0: i32) -> (i32, i32) {
    %c0_i32 = arith.constant 0 : i32
    %c0_i32_0 = arith.constant 0 : i32
    %c0_i32_1 = arith.constant 0 : i32
    return %c0_i32, %c0_i32_0 : i32, i32
  }
  func.func @transform_6(%arg0: i32) -> (i32, i32) {
    %c0_i32 = arith.constant 0 : i32
    %c0_i32_0 = arith.constant 0 : i32
    %c0_i32_1 = arith.constant 0 : i32
    return %c0_i32, %c0_i32_0 : i32, i32
  }
  func.func @transform_7(%arg0: i32) -> (i32, i32, i32) {
    %c0_i32 = arith.constant 0 : i32
    %c0_i32_0 = arith.constant 0 : i32
    %c0_i32_1 = arith.constant 0 : i32
    %c0_i32_2 = arith.constant 0 : i32
    return %c0_i32, %c0_i32_0, %c0_i32_1 : i32, i32, i32
  }
  func.func @transform_8(%arg0: i32) -> (i32, i32, i32) {
    %c0_i32 = arith.constant 0 : i32
    %c0_i32_0 = arith.constant 0 : i32
    %c0_i32_1 = arith.constant 0 : i32
    %c0_i32_2 = arith.constant 0 : i32
    return %c0_i32, %c0_i32_0, %c0_i32_1 : i32, i32, i32
  }
  func.func @transform_9(%arg0: i32) -> (i32, i32) {
    %c0_i32 = arith.constant 0 : i32
    %c0_i32_0 = arith.constant 0 : i32
    %c0_i32_1 = arith.constant 0 : i32
    return %c0_i32, %c0_i32_0 : i32, i32
  }
  func.func @transform_10(%arg0: i32) -> (i32, i32) {
    %c0_i32 = arith.constant 0 : i32
    %c0_i32_0 = arith.constant 0 : i32
    %c0_i32_1 = arith.constant 0 : i32
    return %c0_i32, %c0_i32_0 : i32, i32
  }
  func.func @transform_11(%arg0: i32) -> (i32, i32, i32) {
    %c0_i32 = arith.constant 0 : i32
    %c0_i32_0 = arith.constant 0 : i32
    %c0_i32_1 = arith.constant 0 : i32
    %c0_i32_2 = arith.constant 0 : i32
    return %c0_i32, %c0_i32_0, %c0_i32_1 : i32, i32, i32
  }
  func.func @transform_12(%arg0: i32) -> (i32, i32, i32) {
    %c0_i32 = arith.constant 0 : i32
    %c0_i32_0 = arith.constant 0 : i32
    %c0_i32_1 = arith.constant 0 : i32
    %c0_i32_2 = arith.constant 0 : i32
    return %c0_i32, %c0_i32_0, %c0_i32_1 : i32, i32, i32
  }
  func.func @transform_13(%arg0: i32) -> (i32, i32, i32) {
    %c0_i32 = arith.constant 0 : i32
    %c0_i32_0 = arith.constant 0 : i32
    %c0_i32_1 = arith.constant 0 : i32
    return %arg0, %c0_i32, %c0_i32_0 : i32, i32, i32
  }
}

</mosaic_0001>

<bundles_post_ra>
// kernel: dense_block_forward.1
= control target key start
LH: loop header
LB: loop body
LE: loop exit
PB: predicated region body
PF: predicated region fallthrough
CT: control target
= control target key end

     0   :  { %18 = vsyncpa [#allocation5], 0  ;;  %s4980_s0 = inlined_call_operand.vmem [shape: f32[2,4,256], index: 0, kind: input, shape index: {}]   ;;  %s4981_s1 = inlined_call_operand.vmem [shape: f32[5,256], index: 1, kind: input, shape index: {}]   ;;  %s4982_s2 = inlined_call_operand.hbm [shape: f32[4,1], index: 2, kind: input, shape index: {}]   ;;  %s4983_s3 = inlined_call_operand.hbm [shape: f32[4,1], index: 3, kind: input, shape index: {}]   ;;  %s4984_s4 = inlined_call_operand.hbm [shape: f32[8,4], index: 4, kind: input, shape index: {}]   ;;  %s4985_s5 = inlined_call_operand.vmem [shape: f32[8,1], index: 5, kind: input, shape index: {}]   ;;  %s4986_s6 = inlined_call_operand.vmem [shape: f32[8,1], index: 6, kind: input, shape index: {}]   ;;  %s4987_s7 = inlined_call_operand.vmem [shape: f32[9,4,8], index: 7, kind: input, shape index: {}]   ;;  %s4988_s8 = inlined_call_operand.vmem [shape: f32[9,4,1], index: 8, kind: input, shape index: {}]   ;;  %s4989_s9 = inlined_call_operand.vmem [shape: f32[4,1], index: 9, kind: input, shape index: {}]   ;;  %s4990_s10 = inlined_call_operand.vmem [shape: f32[4,1], index: 10, kind: input, shape index: {}]   ;;  %s4991_s11 = inlined_call_operand.vmem [shape: f32[36,4,1], index: 11, kind: input, shape index: {}]   ;;  %s4992_s12 = inlined_call_operand.vmem [shape: f32[4,4,1], index: 12, kind: input, shape index: {}]   ;;  %s4993_s13 = inlined_call_operand.vmem [shape: f32[2,8,256], index: 13, kind: output, shape index: {}]  }
   0x1   :  { %19 = vsyncpa [#allocation7], 0  ;;  %s3546_s25 = smov 0  }
   0x2 LB: > { %s3552_s26 = sadd.s32 4294967295, %s3452_s25   ;;  %p3187_p0 = scmp.ge.s32.totalorder %s3452_s25, 1  ;;  %s3452_s25 = sphi %s3546_s25, %s25_s25  }
   0x3   : > { %p334_p1 = scmp.lt.s32.totalorder %s3452_s25, 3  ;;  %p4994_p2 = scmp.eq.s32.totalorder %s3552_s26, 0 }
   0x4   : > { %s3454_s28 = smov [#allocation6]   ;;  %s3455_s30 = smov [#allocation4]  }
   0x5   : > { %p3557_p3 = pnand %p3187_p0, %p334_p1  ;;  %s361_s29 = sshll.u32 %s3454_s28, 4  ;;  %s362_s29 = int_to_ptr.vmem [resolvable:$true] %s361_s29 }
   0x6   : > { %s350_s14 = sshll.u32 %s3455_s30, 4  ;;  %s3456_s15 = smov [#allocation8]   ;;  %s351_s14 = int_to_ptr.vmem [resolvable:$true] %s350_s14 }
   0x7   : > { %s5070_s27 = scalar_select %p3557_p3, 1, 0 }
   0x8   : > { %p3288_p4 = pneg %p3557_p3  ;;  %s372_s16 = sshll.u32 %s3456_s15, 4  ;;  %s3569_s16 = int_to_ptr.vmem [resolvable:$true] %s372_s16 }
   0x9   : > { %s3371_s18 = scalar_lea.vmem %s362_s29, 64  ;;  %p3379_p10 = scmp.lt.s32.totalorder %s362_s29, %s362_s29 }
   0xa   : > { %p3565_p5 = pnand %p4994_p2, %p3288_p4  ;;  %p3372_p7 = scmp.ne.s32.totalorder %s362_s29, %s3371_s18 }
   0xb   : > { %p3380_p11 = scmp.lt.s32.totalorder %s3371_s18, %s3371_s18 }
   0xc   : > { %p3362_p6 = pneg %p3565_p5 }
   0xd   : > { %p3381_p12 = por %p3380_p11, %p3379_p10 }
   0xe   : > { %p3374_p8 = pnand %p3372_p7, %p3362_p6 }
  0x10   : > { %p3375_p9 = pneg %p3374_p8 }
  0x12   : > { %p3382_p13 = pnand %p3381_p12, %p3375_p9 }
  0x14   : > { %3385 = shalt.err (!%p3382_p13)
}
  0x15   : > { %3294 = dma.hbm_to_vmem [thread:$0]  (!%p3565_p5), %s4983_s3, 64, %s362_s29, [#allocation7]  }
  0x16   : > { %s3397_s21 = scalar_lea.vmem %s351_s14, 64  ;;  %p3405_p7 = scmp.lt.s32.totalorder %s351_s14, %s351_s14 }
  0x17   : > { %p3398_p0 = scmp.ne.s32.totalorder %s351_s14, %s3397_s21  ;;  %p3406_p8 = scmp.lt.s32.totalorder %s3397_s21, %s3397_s21 }
  0x19   : > { %p3400_p1 = pnand %p3398_p0, %p3362_p6  ;;  %p3407_p2 = por %p3406_p8, %p3405_p7 }
  0x1b   : > { %p3401_p4 = pneg %p3400_p1 }
  0x1d   : > { %p3408_p3 = pnand %p3407_p2, %p3401_p4 }
  0x1f   : > { %3411 = shalt.err (!%p3408_p3)
}
  0x20   : > { %3291 = dma.hbm_to_vmem [thread:$0]  (!%p3565_p5), %s4982_s2, 64, %s351_s14, [#allocation5]  }
  0x21   : > { %s3423_s24 = scalar_lea.vmem %s3569_s16, 128  ;;  %p3431_p12 = scmp.lt.s32.totalorder %s3569_s16, %s3569_s16 }
  0x22   : > { %p3424_p9 = scmp.ne.s32.totalorder %s3569_s16, %s3423_s24  ;;  %p3432_p2 = scmp.lt.s32.totalorder %s3423_s24, %s3423_s24 }
  0x24   : > { %p3426_p10 = pnand %p3424_p9, %p3362_p6  ;;  %p3433_p3 = por %p3432_p2, %p3431_p12 }
  0x26   : > { %p3427_p11 = pneg %p3426_p10 }
  0x28   : > { %p3434_p13 = pnand %p3433_p3, %p3427_p11 }
  0x2a   : > { %3437 = shalt.err (!%p3434_p13)
}
  0x2b   : > { %3297 = dma.hbm_to_vmem [thread:$0]  (!%p3565_p5), %s4984_s4, 128, %s3569_s16, [#allocation7]  }
  0x2c   : > { %p5072_p0 = scmp.ne.s32.totalorder %s5070_s27, 0 }
  0x2e   : > { %417 = sbr.rel (%p5072_p0) target bundleno = 1788 (0x6fc), region = 72 }
  0x33   : > { %p5073_p1 = scmp.eq.s32.totalorder %s3552_s26, 0 }
  0x35   : > { %3443 = dma.done.wait (%p5073_p1), [#allocation5], 64   ;;  %p5074_p6 = pmov %p5073_p1 }
  0x36   : > { %p5075_p4 = pmov %p5073_p1 }
  0x37   : > { %3445 = vsyncadd (%p5074_p6), [#allocation5], 4294967232 }
  0x38   : > { %3447 = dma.done.wait (%p5075_p4), [#allocation7], 192   ;;  %p5076_p7 = pmov %p5073_p1 }
  0x39   : > { %p469_p8 = scmp.lt.s32.totalorder %s3552_s26, 1  ;;  %v3457_v0 = vmov 0   ;;  %v489_v1 = vld [vmem:[#allocation4] sm:$0xf]  ;;  %v503_v4 = vld [vmem:[#allocation6] sm:$0xf]  ;;  %v497_v5 = vlaneseq }
  0x3a   : > { %3449 = vsyncadd (%p5076_p7), [#allocation7], 4294967104  ;;  %3334 = vset.pattern.permute.xlu0 %v3457_v0  ;;  %3335 = vset.pattern.permute.xlu1 %v3457_v0  ;;  %v3458_v8 = vmov 0.0   ;;  %v601_v9 = vld [vmem:[%s4985_s5] sm:$0xff]  ;;  %s5018_s14 = smov 127   ;;  %s5016_s15 = smov 1  }
  0x3b   : > { %s5226_s26 = smov (!%p469_p8, %s3552_s26), 1  ;;  %492 = vperm.xlu0 %3334, %v489_v1   ;;  %v498_v6 = vshrl.u32 %v497_v5, 7  ;;  %594 = vmatprep.mubr.f32.mxu0 %v3458_v8  ;;  %1525 = vst [vmem:[#allocation3] sm:$0xff] %v3458_v8  ;;  %1526 = vst [vmem:[#allocation3 + $0x8] sm:$0xff] %v3458_v8  ;;  %v609_v14 = vld [vmem:[%s4986_s6] sm:$0xff]  ;;  %s5012_s17 = smov 17  }
  0x3c   : > { %s3274_s27 = sshll.u32 %s5226_s26, 3  ;;  %s3275_s30 = sshll.u32 %s5226_s26, 4  ;;  %734 = vmatprep.mubr.f32.mxu1 %v3458_v8  ;;  %v479_v10 = vld [vmem:[%s4981_s1] ss:$8 sm:$0x3]  ;;  %604 = vperm.xlu1 %3335, %v601_v9   ;;  %vm525_vm0 = vcmask 1043456  }
  0x3d   : > { %s473_s16 = scalar_lea.vmem %s4980_s0, %s3274_s27  ;;  %s3620_s19 = scalar_lea.vmem %s4993_s13, %s3275_s30  ;;  %v3624_v7 = vsub.s32 0, %v498_v6  ;;  %v3636_v11 = vsub.s32 1, %v498_v6  ;;  %v3200_v13 = vld [vmem:[%s4981_s1 + $0x1] ss:$8 sm:$0x3]  ;;  %v518_v33 = vld [vmem:[#allocation8] sm:$0xff] }
  0x3e   : > { %v488_v2 = vld [vmem:[%s473_s16] sm:$0xff]  ;;  %s5000_s27 = smov 111   ;;  %s5008_s30 = smov 113   ;;  %v3466_v18 = vmov 839922192   ;;  %vm521_vm1 = vcmask 31744  }
  0x3f   : > { %v3087_v3 = vcombine.high %v488_v2, %v488_v2  ;;  %3089 = vst [vmem:[%s3620_s19] sm:$0xf] %v488_v2  ;;  %506 = vperm.xlu0 %3334, %v503_v4   ;;  %5077 = vst [vmem:[#allocation11_spill] sm:$0xff] %v3624_v7  ;;  %v3639_v12 = vrot.slane %v479_v10, %v3624_v7  ;;  %v3650_v15 = vrot.slane %v3200_v13, %v3624_v7  ;;  %s5010_s16 = smov 15   ;;  %s4996_s18 = smov 16   ;;  %vm842_vm2 = vcmask 924672  }
  0x40   : > { %5078 = vst [vmem:[#allocation12_spill] sm:$0xff] %v3636_v11  ;;  %612 = vperm.xlu1 %3335, %v609_v14   ;;  %v3653_v16 = vrot.slane %v479_v10, %v3636_v11  ;;  %v3660_v17 = vrot.slane %v3200_v13, %v3636_v11  ;;  %v495_v19 = vunpack.c.l.s4 %v3466_v18  ;;  %vm641_vm3 = vcmask 908288   ;;  %s4998_s26 = smov 112   ;;  %s5022_s28 = smov 94  }
  0x41   : > { %3090 = vst [vmem:[%s3620_s19 + $0x8] sm:$0xf] %v3087_v3  ;;  %vm946_vm4 = vcmask 1039360   ;;  %vm965_vm5 = vcmask 7168   ;;  %vm861_vm6 = vcmask 121856   ;;  %vm750_vm7 = vcmask 138240  }
  0x42   : > { %v496_v20 = vunpack.c.0.s8 %v495_v19  ;;  %s5014_s29 = smov 126   ;;  %s5002_s20 = smov 2   ;;  %vm661_vm8 = vcmask 130048   ;;  %vm666_vm9 = vcmask 64512   ;;  %vm1342_vm10 = vcmask 916480  }
  0x43   : > { %637 = vrot.lane.b32.xlu0 %v3639_v12, %s5000_s27  ;;  %s3471_s23 = smov 98   ;;  %s5088_s22 = smov 112   ;;  %vm1894_vm11 = vcmask 769024   ;;  %vm1966_vm12 = vcmask 801792   ;;  %vm2024_vm13 = vcmask 15360   ;;  %vm2002_vm14 = vcmask 1031168  }
  0x44   : > { %639 = vrot.lane.b32.xlu1 %v3653_v16, %s5000_s27  ;;  %v499_v21 = vsub.s32 %v496_v20, %v498_v6  ;;  %v1534_v20 = vcombine.low %v3639_v12, %v3653_v16  ;;  %s5090_s21 = smov 16   ;;  %s5095_s24 = smov 17   ;;  %vm1915_vm15 = vcmask 277504  }
  0x47   : > { %838 = vrot.lane.b32.xlu0 %v3650_v15, %s5008_s30 }
  0x48   : > { %840 = vrot.lane.b32.xlu1 %v3660_v17, %s5008_s30 }
  0x4b   : > { %942 = vrot.lane.b32.xlu0 %v3639_v12, %s5018_s14 }
  0x4c   : > { %944 = vrot.lane.b32.xlu1 %v3653_v16, %s5018_s14 }
  0x4f   : > { %1127 = vrot.lane.b32.xlu0 %v3650_v15, %s5016_s15 }
  0x50   : > { %1129 = vrot.lane.b32.xlu1 %v3660_v17, %s5016_s15 }
  0x53   : > { %1229 = vrot.lane.b32.xlu0 %v3639_v12, %s5010_s16  ;;  %v3201_v12 = vld [vmem:[%s4981_s1 + $0x2] ss:$8 sm:$0x3] }
  0x54   : > { %1231 = vrot.lane.b32.xlu1 %v3653_v16, %s5010_s16  ;;  %v3755_v16 = vcombine.low %v3650_v15, %v3660_v17 }
  0x57   : > { %1423 = vrot.lane.b32.xlu0 %v3650_v15, %s5012_s17  ;;  %v3202_v15 = vld [vmem:[%s4981_s1 + $0x3] ss:$8 sm:$0x3] }
  0x58   : > { %1425 = vrot.lane.b32.xlu1 %v3660_v17, %s5012_s17  ;;  %v3225_v17 = vld [vmem:[%s4988_s8 + $0x8] sm:$0xf] }
  0x5b   : > { %655 = vrot.lane.b32.xlu0 %v3458_v8, %s4996_s18 }
  0xb6   : > { %v493_v22 = vpop.permute.xlu0 %492 }
  0xb7   : > { %v500_v23 = vrot.slane %v493_v22, %v499_v21  ;;  %v605_v32 = vpop.permute.xlu1 %604  ;;  %v3741_v22 = vld [vmem:[#allocation3 + $0xc] sm:$0xf] }
  0xb9   : > { %v502_v25 = vmul.f32 %v500_v23, %v488_v2  ;;  %v3224_v23 = vld [vmem:[%s4988_s8 + $0x4] sm:$0xf] }
  0xba   : > { %v507_v24 = vpop.permute.xlu0 %506 }
  0xbb   : > { %v514_v26 = vrot.slane %v507_v24, %v499_v21  ;;  %v613_v36 = vpop.permute.xlu1 %612  ;;  %v1543_v21 = vld [vmem:[%s4988_s8] sm:$0xf]  ;;  %v3748_v24 = vld [vmem:[#allocation3 + $0xc] sm:$0xf] }
  0xbd   : > { %v516_v27 = vadd.f32 %v514_v26, %v502_v25  ;;  %v1885_v25 = vrot.slane %v3201_v12, %v3624_v7  ;;  %v1889_v26 = vrot.slane %v3201_v12, %v3636_v11 }
  0xbe   : > { %v638_v28 = vpop.permute.xlu0 %637 }
  0xbf   : > { %v517_v29 = vmax.f32 %v516_v27, 0.0  ;;  %v646_v30 = vmul.f32 0.0, %v638_v28  ;;  %v640_v39 = vpop.permute.xlu1 %639  ;;  %v3226_v27 = vld [vmem:[%s4988_s8 + $0xc] sm:$0xf] }
  0xc0   : > { %v642_v56 = vsel %vm641_vm3, %v638_v28, %v640_v39  ;;  %v1745_v28 = vld [vmem:[#allocation3 + $0xc] sm:$0xf] }
  0xc1   : > { %v520_v31 = vcombine.high %v517_v29, %v517_v29  ;;  %744 = vrot.lane.b32.xlu1 %v646_v30, %s5012_s17  ;;  %v1957_v30 = vrot.slane %v3202_v15, %v3624_v7 }
  0xc2   : > { %v839_v34 = vpop.permute.xlu0 %838 }
  0xc3   : > { %3204 = vmatprep.subr.msk.mxu0 %vm525_vm0, %v520_v31  ;;  %v847_v35 = vmul.f32 0.0, %v839_v34  ;;  %v841_v40 = vpop.permute.xlu1 %840  ;;  %v1961_v31 = vrot.slane %v3202_v15, %v3636_v11 }
  0xc4   : > { %3205 = vmatpush1.msk.msra.mxu0 %vm525_vm0, %v517_v29  ;;  %v843_v54 = vsel %vm842_vm2, %v839_v34, %v841_v40  ;;  %v1890_v29 = vcombine.low %v1885_v25, %v1889_v26  ;;  %v3228_v34 = vld [vmem:[%s4988_s8 + $0x14] sm:$0xf]  ;;  %v3222_v26 = vld [vmem:[%s4987_s7 + $0x20] sm:$0xf] }
  0xc5   : > { %3206 = vmatmul.mubr.msk.f32.vlgmr.msra.gmra.mxu0 %vm521_vm1, %v518_v33  ;;  %855 = vrot.lane.b32.xlu0 %v847_v35, %s5010_s16  ;;  %v3227_v33 = vld [vmem:[%s4988_s8 + $0x10] sm:$0xf]  ;;  %vm1988_vm1 = vcmask 244736  }
  0xc6   : > { %v943_v37 = vpop.permute.xlu0 %942  ;;  %822 = vmatprep.mubr.f32.mxu0 %v3458_v8 }
  0xc7   : > { %v951_v38 = vmul.f32 0.0, %v943_v37  ;;  %v945_v41 = vpop.permute.xlu1 %944 }
  0xc8   : > { %v947_v60 = vsel %vm946_vm4, %v943_v37, %v945_v41 }
  0xc9   : > { %959 = vrot.lane.b32.xlu1 %v951_v38, %s5016_s15 }
  0xca   : > { %v1128_v58 = vpop.permute.xlu0 %1127 }
  0xcb   : > { %v1130_v42 = vpop.permute.xlu1 %1129 }
  0xcc   : > { %v1137_v43 = vmul.f32 0.0, %v1130_v42  ;;  %v1131_v3 = vsel %vm965_vm5, %v1128_v58, %v1130_v42 }
  0xce   : > { %1147 = vrot.lane.b32.xlu1 %v1137_v43, %s5018_s14  ;;  %v1230_v62 = vpop.permute.xlu0 %1229 }
  0xcf   : > { %v1232_v44 = vpop.permute.xlu1 %1231 }
  0xd0   : > { %v1239_v45 = vmul.f32 0.0, %v1232_v44  ;;  %v1233_v9 = vsel %vm861_vm6, %v1230_v62, %v1232_v44  ;;  %v3207_v44 = vld [vmem:[%s4987_s7 + $0x4] sm:$0xf] }
  0xd2   : > { %1249 = vrot.lane.b32.xlu0 %v1239_v45, %s5008_s30  ;;  %v1424_v4 = vpop.permute.xlu0 %1423 }
  0xd3   : > { %v1426_v5 = vpop.permute.xlu1 %1425 }
  0xd4   : > { %v1427_v13 = vsel %vm750_vm7, %v1424_v4, %v1426_v5  ;;  %v1433_v14 = vmul.f32 0.0, %v1426_v5 }
  0xd6   : > { %v656_v35 = vpop.permute.xlu0 %655 }
 0x137   : > { %v856_v37 = vpop.permute.xlu0 %855 }
 0x185   : > { %v596_v46 = vpop.f32.mrf.mxu0 }
 0x186   : > { %v607_v47 = vmul.f32 %v605_v32, %v596_v46 }
 0x187   : > { %v598_v48 = vpop.f32.mrf.mxu0 }
 0x188   : > { %v615_v49 = vadd.f32 %v613_v36, %v607_v47  ;;  %v608_v50 = vmul.f32 %v605_v32, %v598_v48  ;;  %v1962_v32 = vcombine.low %v1957_v30, %v1961_v31 }
 0x18a   : > { %v3690_v51 = vmax.f32 %v615_v49, 0.0  ;;  %v616_v52 = vadd.f32 %v613_v36, %v608_v50  ;;  %v745_v36 = vpop.permute.xlu1 %744 }
 0x18c   : > { %v3692_v53 = vmax.f32 %v616_v52, 0.0  ;;  %657 = vrot.lane.b32.xlu0 %v3690_v51, %s4996_s18  ;;  %v848_v55 = vmul.f32 %v843_v54, %v3690_v51  ;;  %v647_v57 = vmul.f32 %v642_v56, %v3690_v51  ;;  %v1135_v59 = vmul.f32 %v1128_v58, %v3690_v51  ;;  %v649_v56 = vld [vmem:[%s4987_s7] sm:$0xf] }
 0x18d   : > { %v952_v61 = vmul.f32 %v947_v60, %v3690_v51  ;;  %v1237_v63 = vmul.f32 %v1230_v62, %v3690_v51  ;;  %v1431_v19 = vmul.f32 %v1424_v4, %v3690_v51  ;;  %v3210_v62 = vld [vmem:[%s4987_s7 + $0x8] sm:$0xf]  ;;  %v3214_v4 = vld [vmem:[%s4987_s7 + $0x10] sm:$0xf] }
 0x18e   : > { %659 = vrot.lane.b32.xlu1 %v3692_v53, %s4996_s18  ;;  %v648_v0 = vmul.f32 %v640_v39, %v3692_v53  ;;  %v849_v1 = vmul.f32 %v841_v40, %v3692_v53  ;;  %v953_v2 = vmul.f32 %v945_v41, %v3692_v53  ;;  %v1136_v6 = vmul.f32 %v1131_v3, %v3692_v53  ;;  %v960_v38 = vpop.permute.xlu1 %959  ;;  %v1250_v39 = vpop.permute.xlu0 %1249 }
 0x18f   : > { %v1238_v10 = vmul.f32 %v1233_v9, %v3692_v53  ;;  %v1432_v18 = vmul.f32 %v1427_v13, %v3692_v53 }
 0x190   : > { %857 = vrot.lane.b32.xlu0 %v848_v55, %s5010_s16 }
 0x192   : > { %746 = vrot.lane.b32.xlu1 %v647_v57, %s5012_s17  ;;  %v1148_v40 = vpop.permute.xlu1 %1147 }
 0x194   : > { %1143 = vrot.lane.b32.xlu0 %v1135_v59, %s5018_s14 }
 0x196   : > { %961 = vrot.lane.b32.xlu1 %v952_v61, %s5016_s15 }
 0x198   : > { %1338 = vrot.lane.b32.xlu0 %v3692_v53, %s4998_s26 }
 0x19a   : > { %1245 = vrot.lane.b32.xlu1 %v1237_v63, %s5008_s30 }
 0x19c   : > { %748 = vrot.lane.b32.xlu0 %v648_v0, %s5012_s17  ;;  %v3212_v0 = vld [vmem:[%s4987_s7 + $0xc] sm:$0xf] }
 0x19e   : > { %859 = vrot.lane.b32.xlu1 %v849_v1, %s5010_s16 }
 0x1a0   : > { %963 = vrot.lane.b32.xlu0 %v953_v2, %s5016_s15 }
 0x1a2   : > { %1340 = vrot.lane.b32.xlu1 %v3458_v8, %s4998_s26 }
 0x1a4   : > { %1145 = vrot.lane.b32.xlu0 %v1136_v6, %s5018_s14 }
 0x1a6   : > { %1247 = vrot.lane.b32.xlu1 %v1238_v10, %s5008_s30 }
 0x1a8   : > { %1336 = vrot.lane.b32.xlu0 %v3690_v51, %s4998_s26 }
 0x1aa   : > { %1441 = vrot.lane.b32.xlu1 %v1432_v18, %s5000_s27  ;;  %v3218_v18 = vld [vmem:[%s4987_s7 + $0x18] sm:$0xf] }
 0x1ac   : > { %1443 = vrot.lane.b32.xlu0 %v1433_v14, %s5000_s27 }
 0x1ae   : > { %1439 = vrot.lane.b32.xlu1 %v1431_v19, %s5000_s27 }
 0x1b0   : > { %1535 = vrot.lane.b32.xlu0 %v1534_v20, %s5000_s27 }
 0x1b2   : > { %1546 = vperm.xlu1 %3335, %v1543_v21   ;;  %v3220_v21 = vld [vmem:[%s4987_s7 + $0x1c] sm:$0xf] }
 0x1b4   : > { %1827 = vrot.lane.b32.xlu0 %v3741_v22, %s5018_s14 }
 0x1b6   : > { %1572 = vperm.xlu1 %3335, %v3224_v23  }
 0x1b8   : > { %1844 = vrot.lane.b32.xlu0 %v3748_v24, %s5000_s27  ;;  %s5006_s27 = smov 34  }
 0x1ba   : > { %1595 = vrot.lane.b32.xlu1 %v3755_v16, %s5008_s30 }
 0x1bc   : > { %1641 = vperm.xlu0 %3334, %v3226_v27  }
 0x1be   : > { %1760 = vrot.lane.b32.xlu1 %v1745_v28, %s4998_s26  ;;  %s5004_s26 = smov 30  }
 0x1c0   : > { %1891 = vrot.lane.b32.xlu0 %v1890_v29, %s5022_s28 }
 0x1c2   : > { %1607 = vperm.xlu1 %3335, %v3225_v17  }
 0x1c4   : > { %1999 = vrot.lane.b32.xlu0 %v1890_v29, %s5014_s29 }
 0x1c6   : > { %1629 = vrot.lane.b32.xlu1 %v1534_v20, %s5018_s14 }
 0x1c8   : > { %2050 = vrot.lane.b32.xlu0 %v1962_v32, %s5002_s20  ;;  %s5086_s20 = smov 111  }
 0x1ca   : > { %1963 = vrot.lane.b32.xlu1 %v1962_v32, %s3471_s23 }
 0x1cc   : > { %1666 = vperm.xlu0 %3334, %v3227_v33  }
 0x1ce   : > { %2084 = vrot.lane.b32.xlu1 %v1890_v29, %s5004_s26  ;;  %s5020_s26 = smov 96  }
 0x1d0   : > { %1690 = vperm.xlu0 %3334, %v3228_v34  }
 0x1d2   : > { %2145 = vrot.lane.b32.xlu1 %v1962_v32, %s5006_s27  ;;  %s5097_s27 = smov 113  }
 0x1d4   : > { %1712 = vrot.lane.b32.xlu0 %v1534_v20, %s5010_s16  ;;  %s5096_s16 = smov 15  }
 0x1d6   : > { %1678 = vrot.lane.b32.xlu1 %v3755_v16, %s5016_s15 }
 0x1fe   : > { %v658_v41 = vpop.permute.xlu0 %657 }
 0x1ff   : > { %v662_v46 = vsel %vm661_vm8, %v656_v35, %v658_v41 }
 0x200   : > { %v660_v42 = vpop.permute.xlu1 %659 }
 0x201   : > { %v663_v43 = vsel %vm661_vm8, %v658_v41, %v660_v42 }
 0x202   : > { %700 = vmatprep.subr.mxu1 %v663_v43  ;;  %v858_v45 = vpop.permute.xlu0 %857 }
 0x203   : > { %701 = vmatpush1.msra.mxu1 %v662_v46  ;;  %v862_v61 = vsel %vm861_vm6, %v856_v37, %v858_v45 }
 0x204   : > { %v747_v47 = vpop.permute.xlu1 %746  ;;  %3208 = vmatmul.mubr.msk.f32.vlgmr.msra.gmra.mxu1 %vm666_vm9, %v3207_v44  ;;  %v1711_v44 = vld [vmem:[#allocation3 + $0xc] sm:$0xf] }
 0x205   : > { %933 = vmatprep.mubr.f32.mxu1 %v3458_v8  ;;  %v751_v58 = vsel %vm750_vm7, %v745_v36, %v747_v47 }
 0x206   : > { %v1144_v48 = vpop.permute.xlu0 %1143 }
 0x208   : > { %v962_v49 = vpop.permute.xlu1 %961 }
 0x209   : > { %v966_v2 = vsel %vm965_vm5, %v960_v38, %v962_v49 }
 0x20a   : > { %v1339_v50 = vpop.permute.xlu0 %1338 }
 0x20c   : > { %v1246_v52 = vpop.permute.xlu1 %1245 }
 0x20e   : > { %v749_v54 = vpop.permute.xlu0 %748 }
 0x20f   : > { %v752_v55 = vsel %vm750_vm7, %v747_v47, %v749_v54  ;;  %v3231_v54 = vld [vmem:[%s4988_s8 + $0x20] sm:$0xf] }
 0x210   : > { %v860_v57 = vpop.permute.xlu1 %859  ;;  %788 = vmatprep.subr.mxu0 %v752_v55  ;;  %v3233_v55 = vld [vmem:[%s4991_s11 + $0x8] sm:$0xf] }
 0x211   : > { %789 = vmatpush1.msra.mxu0 %v751_v58  ;;  %v863_v59 = vsel %vm861_vm6, %v858_v45, %v860_v57  ;;  %v3234_v57 = vld [vmem:[%s4991_s11 + $0xc] sm:$0xf]  ;;  %v3252_v58 = vld [vmem:[%s4991_s11 + $0x50] sm:$0xf] }
 0x212   : > { %899 = vmatprep.subr.mxu1 %v863_v59  ;;  %v964_v60 = vpop.permute.xlu0 %963  ;;  %3209 = vmatmul.mubr.msk.f32.vlgmr.msra.gmra.mxu0 %vm666_vm9, %v649_v56  ;;  %v3250_v56 = vld [vmem:[%s4991_s11 + $0x48] sm:$0xf]  ;;  %v3261_v59 = vld [vmem:[%s4991_s11 + $0x70] sm:$0xf] }
 0x213   : > { %900 = vmatpush1.msra.mxu1 %v862_v61  ;;  %v967_v63 = vsel %vm965_vm5, %v962_v49, %v964_v60  ;;  %1037 = vmatprep.mubr.f32.mxu0 %v3458_v8  ;;  %v3235_v60 = vld [vmem:[%s4991_s11 + $0x10] sm:$0xf]  ;;  %v3244_v61 = vld [vmem:[%s4991_s11 + $0x34] sm:$0xf] }
 0x214   : > { %v1341_v1 = vpop.permute.xlu1 %1340  ;;  %1003 = vmatprep.subr.mxu0 %v967_v63  ;;  %1081 = vmatprep.subr.mxu1 %v3692_v53  ;;  %v3236_v63 = vld [vmem:[%s4991_s11 + $0x14] sm:$0xf] }
 0x215   : > { %3211 = vmatmul.mubr.msk.f32.vlgmr.msra.gmra.mxu1 %vm666_vm9, %v3210_v62  ;;  %1004 = vmatpush1.msra.mxu0 %v966_v2  ;;  %v1344_v10 = vsel %vm1342_vm10, %v1339_v50, %v1341_v1  ;;  %v3262_v62 = vld [vmem:[%s4991_s11 + $0x74] sm:$0xf]  ;;  %v3254_v1 = vld [vmem:[%s4991_s11 + $0x58] sm:$0xf] }
 0x216   : > { %1082 = vmatpush1.msra.mxu1 %v3690_v51  ;;  %v1146_v3 = vpop.permute.xlu0 %1145  ;;  %3213 = vmatmul.mubr.msk.f32.vlgmr.msra.gmra.mxu0 %vm666_vm9, %v3212_v0  ;;  %v3216_v51 = vld [vmem:[%s4987_s7 + $0x14] sm:$0xf]  ;;  %v3245_v0 = vld [vmem:[%s4991_s11 + $0x38] sm:$0xf] }
 0x217   : > { %v1150_v5 = vsel %vm946_vm4, %v1146_v3, %v1148_v40  ;;  %v1149_v6 = vsel %vm946_vm4, %v1144_v48, %v1146_v3  ;;  %1115 = vmatprep.mubr.f32.mxu1 %v3458_v8  ;;  %1220 = vmatprep.mubr.f32.mxu0 %v3458_v8  ;;  %v3237_v2 = vld [vmem:[%s4991_s11 + $0x18] sm:$0xf] }
 0x218   : > { %v1248_v53 = vpop.permute.xlu1 %1247  ;;  %1186 = vmatprep.subr.mxu0 %v1150_v5 }
 0x219   : > { %1187 = vmatpush1.msra.mxu0 %v1149_v6  ;;  %v1252_v9 = vsel %vm842_vm2, %v1248_v53, %v1250_v39  ;;  %3215 = vmatmul.mubr.msk.f32.vlgmr.msra.gmra.mxu1 %vm666_vm9, %v3214_v4  ;;  %v1251_v13 = vsel %vm842_vm2, %v1246_v52, %v1248_v53  ;;  %v3230_v52 = vld [vmem:[%s4988_s8 + $0x1c] sm:$0xf]  ;;  %v2049_v4 = vld [vmem:[#allocation3 + $0xc] sm:$0xf] }
 0x21a   : > { %1288 = vmatprep.subr.mxu1 %v1252_v9  ;;  %1380 = vmatprep.subr.mxu0 %v1344_v10  ;;  %v1337_v14 = vpop.permute.xlu0 %1336  ;;  %v2316_v6 = vld [vmem:[#allocation3 + $0xc] sm:$0xf]  ;;  %v3265_v9 = vld [vmem:[%s4991_s11 + $0x80] sm:$0xf] }
 0x21b   : > { %v1343_v19 = vsel %vm1342_vm10, %v1337_v14, %v1339_v50  ;;  %1289 = vmatpush1.msra.mxu1 %v1251_v13  ;;  %3217 = vmatmul.mubr.msk.f32.vlgmr.msra.gmra.mxu0 %vm666_vm9, %v3216_v51  ;;  %v3229_v50 = vld [vmem:[%s4988_s8 + $0x18] sm:$0xf]  ;;  %v3256_v51 = vld [vmem:[%s4991_s11 + $0x60] sm:$0xf]  ;;  %v3248_v13 = vld [vmem:[%s4991_s11 + $0x44] sm:$0xf] }
 0x21c   : > { %v1442_v20 = vpop.permute.xlu1 %1441  ;;  %1381 = vmatpush1.msra.mxu0 %v1343_v19  ;;  %1322 = vmatprep.mubr.f32.mxu1 %v3458_v8  ;;  %v3239_v10 = vld [vmem:[%s4991_s11 + $0x20] sm:$0xf]  ;;  %v3257_v14 = vld [vmem:[%s4991_s11 + $0x64] sm:$0xf]  ;;  %v2593_v19 = vld [vmem:[#allocation3 + $0xc] sm:$0xf] }
 0x21d   : > { %3219 = vmatmul.mubr.msk.f32.vlgmr.msra.gmra.mxu1 %vm666_vm9, %v3218_v18  ;;  %1414 = vmatprep.mubr.f32.mxu0 %v3458_v8  ;;  %v2117_v18 = vld [vmem:[#allocation3 + $0xc] sm:$0xf] }
 0x21e   : > { %v1444_v23 = vpop.permute.xlu0 %1443  ;;  %1516 = vmatprep.mubr.f32.mxu1 %v3458_v8 }
 0x21f   : > { %v1446_v12 = vsel %vm641_vm3, %v1442_v20, %v1444_v23  ;;  %3221 = vmatmul.mubr.msk.f32.vlgmr.msra.gmra.mxu0 %vm666_vm9, %v3220_v21  ;;  %v2814_v23 = vld [vmem:[#allocation3 + $0xc] sm:$0xf] }
 0x220   : > { %v1440_v25 = vpop.permute.xlu1 %1439  ;;  %1482 = vmatprep.subr.mxu1 %v1446_v12 }
 0x221   : > { %v1445_v27 = vsel %vm641_vm3, %v1440_v25, %v1442_v20  ;;  %v2144_v25 = vld [vmem:[#allocation3 + $0xc] sm:$0xf] }
 0x222   : > { %1483 = vmatpush1.msra.mxu1 %v1445_v27  ;;  %v3852_v28 = vpop.permute.xlu0 %1535 }
 0x223   : > { %3223 = vmatmul.mubr.msk.f32.vlgmr.msra.gmra.mxu1 %vm666_vm9, %v3222_v26  ;;  %vm1942_vm9 = vcmask 261120  }
 0x226   : > { %v3854_v29 = vpop.permute.xlu0 %1827 }
 0x22a   : > { %v3860_v17 = vpop.permute.xlu0 %1844 }
 0x22d   : > { %v3856_v8 = vpop.permute.xlu1 %1546 }
 0x22e   : > { %5079 = vst [vmem:[#allocation13_spill] sm:$0xff] %v3856_v8 }
 0x231   : > { %v3858_v15 = vpop.permute.xlu1 %1572 }
 0x232   : > { %5080 = vst [vmem:[#allocation14_spill] sm:$0xff] %v3858_v15 }
 0x235   : > { %v3862_v30 = vpop.permute.xlu1 %1595 }
 0x237   : > { %v3864_v31 = vpop.permute.xlu0 %1641 }
 0x238   : > { %5081 = vst [vmem:[#allocation15_spill] sm:$0xff] %v3864_v31 }
 0x239   : > { %v3866_v32 = vpop.permute.xlu1 %1760 }
 0x23b   : > { %v3868_v33 = vpop.permute.xlu0 %1891 }
 0x23d   : > { %v3870_v34 = vpop.permute.xlu1 %1607 }
 0x23e   : > { %5082 = vst [vmem:[#allocation16_spill] sm:$0xff] %v3870_v34 }
 0x23f   : > { %v3872_v35 = vpop.permute.xlu0 %1999 }
 0x241   : > { %v3874_v36 = vpop.permute.xlu1 %1629 }
 0x243   : > { %v3876_v37 = vpop.permute.xlu0 %2050 }
 0x244   : > { %v3955_v3 = vrot.slane %v3876_v37, 4 }
 0x245   : > { %v3878_v38 = vpop.permute.xlu1 %1963 }
 0x246   : > { %v2057_v5 = vmul.f32 %v3955_v3, %v2049_v4  ;;  %v2318_v53 = vmul.f32 %v2316_v6, %v3955_v3  ;;  %v2816_v12 = vmul.f32 %v2814_v23, %v3955_v3 }
 0x247   : > { %v3880_v39 = vpop.permute.xlu0 %1666 }
 0x248   : > { %5083 = vst [vmem:[#allocation17_spill] sm:$0xff] %v3880_v39 }
 0x249   : > { %v3882_v40 = vpop.permute.xlu1 %2084 }
 0x24a   : > { %v3977_v20 = vrot.slane %v3882_v40, 4 }
 0x24b   : > { %v3884_v41 = vpop.permute.xlu0 %1690 }
 0x24c   : > { %5084 = vst [vmem:[#allocation18_spill] sm:$0xff] %v3884_v41  ;;  %v2595_v21 = vmul.f32 %v2593_v19, %v3977_v20 }
 0x24d   : > { %v3886_v42 = vpop.permute.xlu1 %2145 }
 0x24e   : > { %v3984_v26 = vrot.slane %v3886_v42, 4 }
 0x24f   : > { %v3888_v43 = vpop.permute.xlu0 %1712 }
 0x250   : > { %v1714_v45 = vrot.slane %v3888_v43, 4  ;;  %v2152_v27 = vmul.f32 %v3984_v26, %v2144_v25 }
 0x251   : > { %v3891_v46 = vpop.permute.xlu1 %1678 }
 0x252   : > { %v1680_v47 = vrot.slane %v3891_v46, 4  ;;  %v1719_v48 = vmul.f32 %v1714_v45, %v1711_v44  ;;  %v2398_v44 = vld [vmem:[#allocation3 + $0xc] sm:$0xf] }
 0x254   : > { %1734 = vrot.lane.b32.xlu0 %v1719_v48, %s5008_s30  ;;  %v1685_v49 = vmul.f32 %v1680_v47, %v3741_v22  ;;  %v1900_v22 = vld [vmem:[%s4991_s11] sm:$0xf] }
 0x256   : > { %1700 = vrot.lane.b32.xlu1 %v1685_v49, %s5018_s14  ;;  %v2400_v49 = vmul.f32 %v2398_v44, %v3984_v26 }
 0x258   : > { %1772 = vrot.lane.b32.xlu0 %v3755_v16, %s5012_s17  ;;  %v3240_v16 = vld [vmem:[%s4991_s11 + $0x24] sm:$0xf] }
 0x25a   : > { %1724 = vperm.xlu1 %3335, %v3229_v50  }
 0x25e   : > { %1750 = vperm.xlu1 %3335, %v3230_v52  }
 0x262   : > { %1784 = vperm.xlu1 %3335, %v3231_v54   ;;  %v2621_v54 = vld [vmem:[#allocation3 + $0xc] sm:$0xf] }
 0x266   : > { %1903 = vperm.xlu1 %3335, %v1900_v22  }
 0x26a   : > { %2198 = vperm.xlu1 %3335, %v3240_v16  }
 0x26e   : > { %1976 = vperm.xlu1 %3335, %v3233_v55   ;;  %v3268_v55 = vld [vmem:[%s4991_s11 + $0x8c] sm:$0xf] }
 0x272   : > { %2447 = vperm.xlu1 %3335, %v3250_v56   ;;  %v3232_v56 = vld [vmem:[%s4991_s11 + $0x4] sm:$0xf] }
 0x276   : > { %2012 = vperm.xlu1 %3335, %v3234_v57  }
 0x27a   : > { %2501 = vperm.xlu1 %3335, %v3252_v58  }
 0x27e   : > { %2722 = vperm.xlu1 %3335, %v3261_v59  }
 0x282   : > { %2038 = vperm.xlu1 %3335, %v3235_v60  }
 0x286   : > { %2305 = vperm.xlu1 %3335, %v3244_v61   ;;  %v3241_v61 = vld [vmem:[%s4991_s11 + $0x28] sm:$0xf] }
 0x28a   : > { %2750 = vperm.xlu1 %3335, %v3262_v62  }
 0x28e   : > { %2062 = vperm.xlu1 %3335, %v3236_v63  }
 0x292   : > { %2323 = vperm.xlu1 %3335, %v3245_v0  }
 0x296   : > { %2554 = vperm.xlu1 %3335, %v3254_v1  }
 0x29a   : > { %2096 = vperm.xlu1 %3335, %v3237_v2  }
 0x29e   : > { %2072 = vrot.lane.b32.xlu1 %v2057_v5, %s5014_s29 }
 0x2a2   : > { %2333 = vrot.lane.b32.xlu1 %v2318_v53, %s5014_s29  ;;  %v3242_v53 = vld [vmem:[%s4991_s11 + $0x2c] sm:$0xf] }
 0x2a6   : > { %2600 = vperm.xlu1 %3335, %v3256_v51  }
 0x2aa   : > { %2821 = vperm.xlu1 %3335, %v3265_v9  }
 0x2ae   : > { %2157 = vperm.xlu1 %3335, %v3239_v10  }
 0x2b2   : > { %2405 = vperm.xlu1 %3335, %v3248_v13  }
 0x2b6   : > { %2626 = vperm.xlu1 %3335, %v3257_v14  }
 0x2ba   : > { %2132 = vrot.lane.b32.xlu1 %v2117_v18, %s5020_s26 }
 0x2be   : > { %2610 = vrot.lane.b32.xlu1 %v2595_v21, %s3471_s23  ;;  %v3251_v21 = vld [vmem:[%s4991_s11 + $0x4c] sm:$0xf] }
 0x2c2   : > { %2831 = vrot.lane.b32.xlu1 %v2816_v12, %s5014_s29 }
 0x2c4   : > { %v736_v16 = vpop.f32.mrf.mxu1 }
 0x2c6   : > { %2167 = vrot.lane.b32.xlu1 %v2152_v27, %s5022_s28  ;;  %v3989_v48 = vpop.permute.xlu0 %1734  ;;  %v738_v57 = vpop.f32.mrf.mxu1 }
 0x2c7   : > { %5085 = vst [vmem:[#allocation19_spill] sm:$0xff] %v3989_v48 }
 0x2ca   : > { %2415 = vrot.lane.b32.xlu1 %v2400_v49, %s5022_s28  ;;  %v3993_v50 = vpop.permute.xlu0 %1772  ;;  %s5103_s28 = smov 127  }
 0x2cb   : > { %v1774_v52 = vrot.slane %v3993_v50, 4 }
 0x2cd   : > { %v1779_v22 = vmul.f32 %v1774_v52, %v3748_v24  ;;  %v3259_v24 = vld [vmem:[%s4992_s12 + $0x8] sm:$0xf] }
 0x2ce   : > { %2636 = vrot.lane.b32.xlu1 %v2621_v54, %s5020_s26  ;;  %v3243_v54 = vld [vmem:[%s4991_s11 + $0x30] sm:$0xf] }
 0x2cf   : > { %1794 = vrot.lane.b32.xlu0 %v1779_v22, %s5086_s20 }
 0x2d2   : > { %2903 = vperm.xlu1 %3335, %v3268_v55   ;;  %v824_v58 = vpop.f32.mrf.mxu0 }
 0x2d3   : > { %1930 = vperm.xlu0 %3334, %v3232_v56   ;;  %v825_v59 = vadd.f32 %v824_v58, %v736_v16 }
 0x2d4   : > { %v826_v60 = vpop.f32.mrf.mxu0 }
 0x2d5   : > { %v827_v62 = vadd.f32 %v826_v60, %v738_v57  ;;  %v935_v63 = vpop.f32.mrf.mxu1 }
 0x2d6   : > { %2678 = vperm.xlu1 %3335, %v3259_v24   ;;  %v940_v0 = vadd.f32 %v935_v63, %v825_v59  ;;  %v1039_v1 = vpop.f32.mrf.mxu0  ;;  %v3260_v59 = vld [vmem:[%s4991_s11 + $0x6c] sm:$0xf]  ;;  %v3263_v63 = vld [vmem:[%s4991_s11 + $0x78] sm:$0xf] }
 0x2d7   : > { %2224 = vperm.xlu0 %3334, %v3241_v61   ;;  %v937_v2 = vpop.f32.mrf.mxu1 }
 0x2d8   : > { %v941_v4 = vadd.f32 %v937_v2, %v827_v62  ;;  %v1044_v5 = vadd.f32 %v1039_v1, %v940_v0  ;;  %v1041_v6 = vpop.f32.mrf.mxu0  ;;  %v3253_v62 = vld [vmem:[%s4991_s11 + $0x54] sm:$0xf]  ;;  %v3246_v0 = vld [vmem:[%s4991_s11 + $0x3c] sm:$0xf] }
 0x2d9   : > { %v1117_v51 = vpop.f32.mrf.mxu1 }
 0x2da   : > { %v1045_v9 = vadd.f32 %v1041_v6, %v941_v4  ;;  %v1122_v10 = vadd.f32 %v1117_v51, %v1044_v5  ;;  %v4049_v4 = vpop.permute.xlu1 %1700  ;;  %v3255_v5 = vld [vmem:[%s4991_s11 + $0x5c] sm:$0xf]  ;;  %v1631_v51 = vrot.slane %v3874_v36, 4 }
 0x2db   : > { %2252 = vperm.xlu0 %3334, %v3242_v53   ;;  %v1119_v13 = vpop.f32.mrf.mxu1  ;;  %v1222_v14 = vpop.f32.mrf.mxu0  ;;  %5089 = vst [vmem:[#allocation21_spill] sm:$0xff] %v4049_v4  ;;  %v3264_v53 = vld [vmem:[%s4991_s11 + $0x7c] sm:$0xf] }
 0x2dc   : > { %v1123_v18 = vadd.f32 %v1119_v13, %v1045_v9  ;;  %v1227_v19 = vadd.f32 %v1222_v14, %v1122_v10  ;;  %v3238_v10 = vld [vmem:[%s4991_s11 + $0x1c] sm:$0xf]  ;;  %v1537_v13 = vrot.slane %v3852_v28, 4  ;;  %v1632_v14 = vsel %vm946_vm4, %v1631_v51, %v3874_v36 }
 0x2dd   : > { %v1224_v23 = vpop.f32.mrf.mxu0  ;;  %v1324_v25 = vpop.f32.mrf.mxu1 }
 0x2de   : > { %v1228_v12 = vadd.f32 %v1224_v23, %v1123_v18  ;;  %v1329_v27 = vadd.f32 %v1324_v25, %v1227_v19  ;;  %v4065_v9 = vpop.permute.xlu1 %1724  ;;  %v1538_v23 = vsel %vm641_vm3, %v1537_v13, %v3852_v28  ;;  %v1681_v25 = vsel %vm965_vm5, %v1680_v47, %v3891_v46  ;;  %v2344_v47 = vld [vmem:[#allocation3 + $0xc] sm:$0xf] }
 0x2df   : > { %2473 = vperm.xlu0 %3334, %v3251_v21   ;;  %v1416_v44 = vpop.f32.mrf.mxu0  ;;  %v1326_v49 = vpop.f32.mrf.mxu1  ;;  %5092 = vst [vmem:[#allocation23_spill] sm:$0xff] %v4065_v9  ;;  %v3247_v21 = vld [vmem:[%s4991_s11 + $0x40] sm:$0xf] }
 0x2e0   : > { %v1330_v22 = vadd.f32 %v1326_v49, %v1228_v12  ;;  %v1421_v16 = vadd.f32 %v1416_v44, %v1329_v27  ;;  %v1597_v12 = vrot.slane %v3862_v30, 4  ;;  %v2083_v44 = vld [vmem:[#allocation3 + $0xc] sm:$0xf] }
 0x2e1   : > { %v1418_v55 = vpop.f32.mrf.mxu0 }
 0x2e2   : > { %v1422_v56 = vadd.f32 %v1418_v55, %v1330_v22  ;;  %v4078_v19 = vpop.permute.xlu1 %1750  ;;  %v2091_v22 = vmul.f32 %v3977_v20, %v2083_v44 }
 0x2e3   : > { %v1518_v57 = vpop.f32.mrf.mxu1  ;;  %2280 = vperm.xlu0 %3334, %v3243_v54   ;;  %5093 = vst [vmem:[#allocation24_spill] sm:$0xff] %v4078_v19  ;;  %v1598_v54 = vsel %vm842_vm2, %v1597_v12, %v3862_v30 }
 0x2e4   : > { %v4022_v58 = vadd.f32 %v1518_v57, %v1421_v16 }
 0x2e5   : > { %v1520_v24 = vpop.f32.mrf.mxu1 }
 0x2e6   : > { %v4027_v60 = vadd.f32 %v1520_v24, %v1422_v56  ;;  %v4106_v16 = vpop.permute.xlu1 %1784  ;;  %v2346_v56 = vmul.f32 %v2344_v47, %v3977_v20 }
 0x2e7   : > { %2696 = vperm.xlu0 %3334, %v3260_v59   ;;  %5094 = vst [vmem:[#allocation25_spill] sm:$0xff] %v4106_v16  ;;  %v2565_v59 = vld [vmem:[#allocation3 + $0xc] sm:$0xf] }
 0x2e8   : > { %v4031_v61 = vcombine.low %v4022_v58, %v4027_v60  ;;  %v4057_v6 = vcombine.low %v4027_v60, %v4027_v60 }
 0x2ea   : > { %5087 = vst [vmem:[#allocation20_spill] sm:$0xff] %v4031_v61  ;;  %1531 = vst [vmem:[#allocation3 + $0x4] sm:$0xff] %v4031_v61  ;;  %1756 = vrot.lane.b32.xlu1 %v4031_v61, %s5088_s22  ;;  %v4094_v27 = vmul.f32 %v1681_v25, %v4031_v61  ;;  %v4119_v24 = vpop.permute.xlu1 %1903  ;;  %v2177_v25 = vld [vmem:[%s4992_s12] sm:$0xf] }
 0x2eb   : > { %2529 = vperm.xlu0 %3334, %v3253_v62   ;;  %5091 = vst [vmem:[#allocation22_spill] sm:$0xff] %v4057_v6  ;;  %v1715_v62 = vsel %vm861_vm6, %v1714_v45, %v3888_v43 }
 0x2ec   : > { %v1695_v36 = vcombine.high %v4094_v27, %v4094_v27 }
 0x2ee   : > { %v4139_v43 = vpop.permute.xlu1 %2198 }
 0x2ef   : > { %2778 = vperm.xlu0 %3334, %v3263_v63   ;;  %v2567_v63 = vmul.f32 %v2565_v59, %v3955_v3 }
 0x2f1   : > { %v4045_v1 = vld [vmem:[#allocation3] sm:$0xff] }
 0x2f2   : > { %v1577_v2 = vcombine.high %v4045_v1, %v4045_v1  ;;  %v1635_v18 = vmul.f32 %v1632_v14, %v4045_v1  ;;  %v4097_v49 = vmul.f32 %v4045_v1, %v1538_v23  ;;  %v4111_v55 = vmul.f32 %v1598_v54, %v4045_v1  ;;  %v2372_v14 = vld [vmem:[#allocation3 + $0xc] sm:$0xf]  ;;  %v3249_v54 = vld [vmem:[%s4992_s12 + $0x4] sm:$0xf] }
 0x2f3   : > { %2351 = vperm.xlu0 %3334, %v3246_v0  }
 0x2f4   : > { %1580 = vrot.lane.b32.xlu1 %v1577_v2, %s5090_s21  ;;  %v1551_v46 = vcombine.high %v4097_v49, %v4097_v49  ;;  %v1612_v57 = vcombine.high %v4111_v55, %v4111_v55  ;;  %v1646_v0 = vcombine.high %v1635_v18, %v1635_v18  ;;  %v4128_v2 = vmul.f32 %v1715_v62, %v4031_v61  ;;  %v2870_v62 = vld [vmem:[#allocation3 + $0xc] sm:$0xf] }
 0x2f6   : > { %v1729_v45 = vcombine.high %v4128_v2, %v4128_v2 }
 0x2f7   : > { %2572 = vperm.xlu0 %3334, %v3255_v5   ;;  %v3266_v5 = vld [vmem:[%s4991_s11 + $0x84] sm:$0xf] }
 0x2f8   : > { %1825 = vrot.lane.b32.xlu1 %v4057_v6, %s5018_s14 }
 0x2fb   : > { %2803 = vperm.xlu0 %3334, %v3264_v53   ;;  %v1775_v53 = vsel %vm750_vm7, %v1774_v52, %v3993_v50  ;;  %v3258_v50 = vld [vmem:[%s4991_s11 + $0x68] sm:$0xf] }
 0x2fc   : > { %1842 = vrot.lane.b32.xlu1 %v4057_v6, %s5086_s20  ;;  %v3267_v52 = vld [vmem:[%s4991_s11 + $0x88] sm:$0xf] }
 0x2ff   : > { %2122 = vperm.xlu0 %3334, %v3238_v10   ;;  %v1778_v10 = vmul.f32 %v1775_v53, %v4031_v61 }
 0x300   : > { %1647 = vrot.lane.b32.xlu1 %v1635_v18, %s5016_s15 }
 0x301   : > { %v1789_v18 = vcombine.high %v1778_v10, %v1778_v10 }
 0x303   : > { %2377 = vperm.xlu0 %3334, %v3247_v21   ;;  %v4146_v21 = vpop.permute.xlu1 %1976 }
 0x304   : > { %1696 = vrot.lane.b32.xlu1 %v4094_v27, %s5018_s14  ;;  %s5100_s14 = smov 94  }
 0x307   : > { %2106 = vrot.lane.b32.xlu0 %v2091_v22, %s3471_s23  ;;  %v4155_v23 = vpop.permute.xlu1 %2447  ;;  %v2842_v22 = vld [vmem:[#allocation3 + $0xc] sm:$0xf] }
 0x308   : > { %1554 = vrot.lane.b32.xlu1 %v1551_v46, %s5095_s24  ;;  %5098 = vst [vmem:[#allocation26_spill] sm:$0xff] %v4155_v23  ;;  %v2844_v46 = vmul.f32 %v2842_v22, %v3977_v20  ;;  %v1628_v22 = vld [vmem:[#allocation3 + $0x8] sm:$0xf] }
 0x30b   : > { %2361 = vrot.lane.b32.xlu0 %v2346_v56, %s3471_s23  ;;  %v4160_v44 = vpop.permute.xlu1 %2012  ;;  %v2647_v56 = vld [vmem:[#allocation3 + $0xc] sm:$0xf] }
 0x30c   : > { %1615 = vrot.lane.b32.xlu1 %v1612_v57, %s5096_s16  ;;  %v2649_v57 = vmul.f32 %v2647_v56, %v3984_v26 }
 0x30f   : > { %2582 = vrot.lane.b32.xlu0 %v2567_v63, %s5014_s29  ;;  %v4166_v47 = vpop.permute.xlu1 %2501  ;;  %s5108_s29 = smov 1  }
 0x310   : > { %1649 = vrot.lane.b32.xlu1 %v1646_v0, %s5016_s15  ;;  %5099 = vst [vmem:[#allocation27_spill] sm:$0xff] %v4166_v47  ;;  %s5102_s15 = smov 96   ;;  %v1567_v0 = vld [vmem:[#allocation3 + $0x8] sm:$0xf] }
 0x313   : > { %2849 = vperm.xlu0 %3334, %v3266_v5   ;;  %v4171_v59 = vpop.permute.xlu1 %2722 }
 0x314   : > { %1732 = vrot.lane.b32.xlu1 %v1729_v45, %s5097_s27  ;;  %5101 = vst [vmem:[#allocation28_spill] sm:$0xff] %v4171_v59  ;;  %v1533_v45 = vld [vmem:[#allocation3 + $0x8] sm:$0xf] }
 0x317   : > { %2387 = vrot.lane.b32.xlu0 %v2372_v14, %s5020_s26  ;;  %v4174_v63 = vpop.permute.xlu1 %2038  ;;  %s3475_s26 = smov 32  }
 0x318   : > { %1792 = vrot.lane.b32.xlu1 %v1789_v18, %s5086_s20 }
 0x31b   : > { %2654 = vperm.xlu0 %3334, %v3258_v50   ;;  %v4179_v5 = vpop.permute.xlu1 %2305 }
 0x31f   : > { %2875 = vperm.xlu0 %3334, %v3267_v52   ;;  %v4183_v53 = vpop.permute.xlu1 %2750 }
 0x320   : > { %5104 = vst [vmem:[#allocation29_spill] sm:$0xff] %v4183_v53 }
 0x323   : > { %2180 = vperm.xlu0 %3334, %v2177_v25   ;;  %v4189_v14 = vpop.permute.xlu1 %2062 }
 0x327   : > { %2429 = vperm.xlu0 %3334, %v3249_v54   ;;  %v4196_v50 = vpop.permute.xlu1 %2323  ;;  %v1593_v54 = vld [vmem:[#allocation3 + $0x8] sm:$0xf] }
 0x328   : > { %v1602_v28 = vmul.f32 %v1597_v12, %v1593_v54 }
 0x32b   : > { %2859 = vrot.lane.b32.xlu0 %v2844_v46, %s3471_s23  ;;  %v1636_v46 = vmul.f32 %v1631_v51, %v1628_v22 }
 0x32f   : > { %2664 = vrot.lane.b32.xlu0 %v2649_v57, %s5100_s14 }
 0x333   : > { %2885 = vrot.lane.b32.xlu0 %v2870_v62, %s5102_s15 }
 0x337   : > { %1578 = vrot.lane.b32.xlu0 %v4045_v1, %s5090_s21  ;;  %v1542_v1 = vmul.f32 %v1537_v13, %v1533_v45 }
 0x33b   : > { %1582 = vrot.lane.b32.xlu0 %v1567_v0, %s5090_s21 }
 0x33f   : > { %1823 = vrot.lane.b32.xlu0 %v4031_v61, %s5103_s28 }
 0x341   : > { %v4193_v18 = vpop.permute.xlu0 %1794 }
 0x342   : > { %5105 = vst [vmem:[#allocation30_spill] sm:$0xff] %v4193_v18 }
 0x343   : > { %1840 = vrot.lane.b32.xlu0 %v4031_v61, %s5086_s20 }
 0x347   : > { %1552 = vrot.lane.b32.xlu0 %v4097_v49, %s5095_s24  ;;  %v4206_v49 = vpop.permute.xlu1 %2554 }
 0x348   : > { %5106 = vst [vmem:[#allocation31_spill] sm:$0xff] %v4206_v49 }
 0x34b   : > { %1556 = vrot.lane.b32.xlu0 %v1542_v1, %s5095_s24  ;;  %v4215_v56 = vpop.permute.xlu1 %2096 }
 0x34e   : > { %v4198_v52 = vpop.permute.xlu0 %1930 }
 0x34f   : > { %1758 = vrot.lane.b32.xlu0 %v4057_v6, %s5088_s22  ;;  %v4224_v30 = vpop.permute.xlu1 %2072  ;;  %s5141_s22 = smov 30  }
 0x352   : > { %v4202_v25 = vpop.permute.xlu0 %2224 }
 0x353   : > { %1613 = vrot.lane.b32.xlu0 %v4111_v55, %s5096_s16  ;;  %v4231_v51 = vpop.permute.xlu1 %2333 }
 0x356   : > { %v4210_v13 = vpop.permute.xlu0 %2252 }
 0x357   : > { %1617 = vrot.lane.b32.xlu0 %v1602_v28, %s5096_s16  ;;  %v4238_v45 = vpop.permute.xlu1 %2600  ;;  %s5142_s16 = smov 126  }
 0x358   : > { %5112 = vst [vmem:[#allocation36_spill] sm:$0xff] %v4238_v45 }
 0x35a   : > { %v4217_v57 = vpop.permute.xlu0 %2473 }
 0x35b   : > { %5107 = vst [vmem:[#allocation32_spill] sm:$0xff] %v4217_v57  ;;  %1651 = vrot.lane.b32.xlu0 %v1636_v46, %s5108_s29  ;;  %v4242_v1 = vpop.permute.xlu1 %2821 }
 0x35c   : > { %5113 = vst [vmem:[#allocation37_spill] sm:$0xff] %v4242_v1 }
 0x35e   : > { %v4220_v55 = vpop.permute.xlu0 %2280 }
 0x35f   : > { %1730 = vrot.lane.b32.xlu0 %v4128_v2, %s5097_s27  ;;  %v4248_v28 = vpop.permute.xlu1 %2157  ;;  %s5143_s27 = smov 2  }
 0x362   : > { %v4226_v12 = vpop.permute.xlu0 %2696 }
 0x363   : > { %5109 = vst [vmem:[#allocation33_spill] sm:$0xff] %v4226_v12  ;;  %1790 = vrot.lane.b32.xlu0 %v1778_v10, %s5086_s20  ;;  %v4252_v22 = vpop.permute.xlu1 %2405  ;;  %s5140_s20 = smov 34  }
 0x364   : > { %5116 = vst [vmem:[#allocation40_spill] sm:$0xff] %v4252_v22 }
 0x366   : > { %v4233_v62 = vpop.permute.xlu0 %2529 }
 0x367   : > { %5110 = vst [vmem:[#allocation34_spill] sm:$0xff] %v4233_v62  ;;  %1698 = vrot.lane.b32.xlu0 %v1695_v36, %s5103_s28  ;;  %v4258_v16 = vpop.permute.xlu1 %2626 }
 0x368   : > { %5118 = vst [vmem:[#allocation42_spill] sm:$0xff] %v4258_v16 }
 0x36a   : > { %v4236_v0 = vpop.permute.xlu0 %2778 }
 0x36b   : > { %5111 = vst [vmem:[#allocation35_spill] sm:$0xff] %v4236_v0  ;;  %v4262_v19 = vpop.permute.xlu1 %2132 }
 0x36e   : > { %v4240_v2 = vpop.permute.xlu0 %2351 }
 0x36f   : > { %v4268_v6 = vpop.permute.xlu1 %2610 }
 0x370   : > { %5121 = vst [vmem:[#allocation45_spill] sm:$0xff] %v4268_v6 }
 0x372   : > { %v4244_v54 = vpop.permute.xlu0 %2572 }
 0x373   : > { %5114 = vst [vmem:[#allocation38_spill] sm:$0xff] %v4244_v54  ;;  %v4272_v39 = vpop.permute.xlu1 %2831 }
 0x374   : > { %5122 = vst [vmem:[#allocation46_spill] sm:$0xff] %v4272_v39 }
 0x376   : > { %v4246_v10 = vpop.permute.xlu0 %2803 }
 0x377   : > { %5115 = vst [vmem:[#allocation39_spill] sm:$0xff] %v4246_v10  ;;  %v4278_v31 = vpop.permute.xlu1 %2167 }
 0x37a   : > { %v4250_v27 = vpop.permute.xlu0 %2122 }
 0x37b   : > { %v4282_v15 = vpop.permute.xlu1 %2415 }
 0x37e   : > { %v4254_v46 = vpop.permute.xlu0 %2377 }
 0x37f   : > { %5117 = vst [vmem:[#allocation41_spill] sm:$0xff] %v4254_v46  ;;  %v4288_v7 = vpop.permute.xlu1 %2636 }
 0x380   : > { %5128 = vst [vmem:[#allocation52_spill] sm:$0xff] %v4288_v7 }
 0x382   : > { %v4256_v36 = vpop.permute.xlu0 %2106 }
 0x383   : > { %v4292_v1 = vpop.permute.xlu1 %2903 }
 0x384   : > { %5130 = vst [vmem:[#allocation54_spill] sm:$0xff] %v4292_v1 }
 0x386   : > { %v4260_v18 = vpop.permute.xlu0 %2361 }
 0x38a   : > { %v4264_v9 = vpop.permute.xlu0 %2582 }
 0x38b   : > { %5119 = vst [vmem:[#allocation43_spill] sm:$0xff] %v4264_v9 }
 0x38e   : > { %v4266_v48 = vpop.permute.xlu0 %2849 }
 0x38f   : > { %5120 = vst [vmem:[#allocation44_spill] sm:$0xff] %v4266_v48 }
 0x392   : > { %v4270_v41 = vpop.permute.xlu0 %2387 }
 0x396   : > { %v4274_v61 = vpop.permute.xlu0 %2654 }
 0x397   : > { %5123 = vst [vmem:[#allocation47_spill] sm:$0xff] %v4274_v61 }
 0x39a   : > { %v4276_v4 = vpop.permute.xlu0 %2875 }
 0x39b   : > { %5124 = vst [vmem:[#allocation48_spill] sm:$0xff] %v4276_v4  ;;  %v4298_v4 = vpop.permute.xlu1 %2678 }
 0x39c   : > { %5133 = vst [vmem:[#allocation57_spill] sm:$0xff] %v4298_v4 }
 0x39e   : > { %v4280_v34 = vpop.permute.xlu0 %2180 }
 0x39f   : > { %5125 = vst [vmem:[#allocation49_spill] sm:$0xff] %v4280_v34  ;;  %v1757_v53 = vpop.permute.xlu1 %1756  ;;  %v4434_v34 = vsel %vm1988_vm1, %v3977_v20, %v3882_v40 }
 0x3a2   : > { %v4284_v8 = vpop.permute.xlu0 %2429 }
 0x3a3   : > { %5126 = vst [vmem:[#allocation50_spill] sm:$0xff] %v4284_v8  ;;  %v4302_v59 = vpop.permute.xlu1 %1580  ;;  %v4382_v8 = vrot.slane %v3872_v35, 4 }
 0x3a4   : > { %5135 = vst [vmem:[#allocation59_spill] sm:$0xff] %v4302_v59 }
 0x3a6   : > { %v4286_v11 = vpop.permute.xlu0 %2859 }
 0x3a7   : > { %5127 = vst [vmem:[#allocation51_spill] sm:$0xff] %v4286_v11  ;;  %v1826_v16 = vpop.permute.xlu1 %1825 }
 0x3a8   : > { %v1830_v1 = vsel %vm946_vm4, %v1826_v16, %v3854_v29 }
 0x3aa   : > { %v4290_v48 = vpop.permute.xlu0 %2664 }
 0x3ab   : > { %5129 = vst [vmem:[#allocation53_spill] sm:$0xff] %v4290_v48  ;;  %v1843_v4 = vpop.permute.xlu1 %1842 }
 0x3ac   : > { %v1847_v29 = vsel %vm641_vm3, %v1843_v4, %v3860_v17  ;;  %v1861_v17 = vsub.f32 %v4027_v60, %v1830_v1 }
 0x3ae   : > { %v4294_v10 = vpop.permute.xlu0 %2885 }
 0x3af   : > { %5131 = vst [vmem:[#allocation55_spill] sm:$0xff] %v4294_v10 }
 0x3b2   : > { %v4296_v39 = vpop.permute.xlu0 %1578 }
 0x3b3   : > { %5132 = vst [vmem:[#allocation56_spill] sm:$0xff] %v4296_v39  ;;  %v1834_v39 = vadd.f32 %v1830_v1, %v4027_v60 }
 0x3b6   : > { %v4300_v0 = vpop.permute.xlu0 %1582 }
 0x3b7   : > { %5134 = vst [vmem:[#allocation58_spill] sm:$0xff] %v4300_v0 }
 0x3ba   : > { %v1824_v12 = vpop.permute.xlu0 %1823 }
 0x3bb   : > { %v1829_v10 = vsel %vm946_vm4, %v1824_v12, %v1826_v16 }
 0x3bc   : > { %v1833_v0 = vadd.f32 %v1829_v10, %v4022_v58 }
 0x3be   : > { %v1841_v61 = vpop.permute.xlu0 %1840 }
 0x3bf   : > { %v1846_v16 = vsel %vm641_vm3, %v1841_v61, %v1843_v4  ;;  %v4338_v61 = vrot.slane %v3868_v33, 4 }
 0x3c2   : > { %v4304_v11 = vpop.permute.xlu0 %1552 }
 0x3c3   : > { %5136 = vst [vmem:[#allocation60_spill] sm:$0xff] %v4304_v11 }
 0x3c6   : > { %v4306_v45 = vpop.permute.xlu0 %1556 }
 0x3c7   : > { %5137 = vst [vmem:[#allocation61_spill] sm:$0xff] %v4306_v45 }
 0x3ca   : > { %v1759_v48 = vpop.permute.xlu0 %1758 }
 0x3cb   : > { %v4314_v7 = vsel %vm1342_vm10, %v1757_v53, %v1759_v48  ;;  %v4318_v59 = vsel %vm1342_vm10, %v1759_v48, %v3866_v32  ;;  %vm2134_vm10 = vcmask 785408  }
 0x3cc   : > { %5138 = vst [vmem:[#allocation62_spill] sm:$0xff] %v4314_v7  ;;  %5139 = vst [vmem:[#allocation63_spill] sm:$0xff] %v4318_v59  ;;  %v1835_v45 = vadd.f32 %v1833_v0, %v4314_v7  ;;  %v1836_v11 = vadd.f32 %v1834_v39, %v4318_v59  ;;  %v1854_v6 = vsub.f32 %v1833_v0, %v4314_v7 }
 0x3cd   : > { %v1855_v53 = vsub.f32 %v1834_v39, %v4318_v59  ;;  %v4347_v0 = vsel %vm1894_vm11, %v4338_v61, %v3868_v33  ;;  %v1869_v23 = vsub.f32 %v1861_v17, %v4318_v59 }
 0x3ce   : > { %v1850_v12 = vadd.f32 %v1846_v16, %v1835_v45  ;;  %v1851_v54 = vadd.f32 %v1847_v29, %v1836_v11  ;;  %v1856_v48 = vsub.f32 %v1854_v6, %v1846_v16  ;;  %v1860_v11 = vsub.f32 %v4022_v58, %v1829_v10 }
 0x3cf   : > { %v1857_v62 = vsub.f32 %v1855_v53, %v1847_v29  ;;  %v1863_v6 = vadd.f32 %v1861_v17, %v4318_v59  ;;  %v1871_v17 = vadd.f32 %v1869_v23, %v1847_v29 }
 0x3d0   : > { %v1852_v49 = vmul.f32 0.5, %v1850_v12  ;;  %v4327_v9 = vmul.f32 0.5, %v1851_v54  ;;  %v1858_v39 = vmul.f32 0.5, %v1856_v48  ;;  %v4357_v48 = vrot.slane %v3878_v38, 4 }
 0x3d1   : > { %v4340_v4 = vmul.f32 0.5, %v1857_v62  ;;  %v1865_v10 = vsub.f32 %v1863_v6, %v1847_v29  ;;  %v1868_v47 = vsub.f32 %v1860_v11, %v4314_v7 }
 0x3d2   : > { %v4330_v32 = vcombine.low %v1852_v49, %v4327_v9  ;;  %v1862_v49 = vadd.f32 %v1860_v11, %v4314_v7  ;;  %v4369_v6 = vsel %vm1966_vm12, %v4357_v48, %v3878_v38  ;;  %v4442_v46 = vcombine.low %v4327_v9, %v4327_v9 }
 0x3d3   : > { %v4350_v60 = vcombine.low %v1858_v39, %v4340_v4  ;;  %v4362_v39 = vmul.f32 0.5, %v1865_v10  ;;  %v1870_v11 = vadd.f32 %v1868_v47, %v1846_v16  ;;  %v4402_v47 = vsel %vm2002_vm14, %v4382_v8, %v3872_v35 }
 0x3d4   : > { %1878 = vst [vmem:[#allocation3 + $0x4] sm:$0xff] %v4330_v32  ;;  %2128 = vrot.lane.b32.xlu1 %v4330_v32, %s5102_s15  ;;  %v1864_v54 = vsub.f32 %v1862_v49, %v1846_v16  ;;  %v4404_v16 = vmul.f32 0.5, %v1871_v17  ;;  %v2090_v22 = vmul.f32 %v4434_v34, %v4330_v32 }
 0x3d5   : > { %v1872_v29 = vmul.f32 0.5, %v1870_v11 }
 0x3d6   : > { %v1866_v33 = vmul.f32 0.5, %v1864_v54 }
 0x3d7   : > { %v4417_v35 = vcombine.low %v1872_v29, %v4404_v16 }
 0x3d8   : > { %v4376_v54 = vcombine.low %v1866_v33, %v4362_v39 }
 0x3db   : > { %v1924_v58 = vld [vmem:[#allocation3] sm:$0xff]  ;;  %v1925_v45 = vld [vmem:[#allocation3 + $0x8] sm:$0xf] }
 0x3dc   : > { %v1880_v1 = vld [vmem:[#allocation3 + $0x8] sm:$0xf]  ;;  %1936 = vrot.lane.b32.xlu0 %v1924_v58, %s3475_s26  ;;  %v4354_v62 = vmul.f32 %v1924_v58, %v4347_v0  ;;  %v1970_v57 = vmul.f32 %v4369_v6, %v1924_v58 }
 0x3dd   : > { %v1952_v12 = vld [vmem:[#allocation3 + $0x8] sm:$0xf]  ;;  %v1899_v49 = vmul.f32 %v4338_v61, %v1880_v1 }
 0x3de   : > { %v1998_v53 = vld [vmem:[#allocation3 + $0x8] sm:$0xf]  ;;  %1909 = vrot.lane.b32.xlu1 %v4354_v62, %s5140_s20  ;;  %v1971_v33 = vmul.f32 %v4357_v48, %v1952_v12  ;;  %v2006_v12 = vmul.f32 %v4402_v47, %v1924_v58  ;;  %v1981_v29 = vcombine.high %v1970_v57, %v1970_v57  ;;  %v1908_v40 = vcombine.high %v4354_v62, %v4354_v62 }
 0x3df   : > { %2189 = vst [vmem:[#allocation3 + $0x4] sm:$0xff] %v4350_v60  ;;  %v4461_v62 = vcombine.low %v4340_v4, %v4340_v4 }
 0x3e0   : > { %1940 = vrot.lane.b32.xlu0 %v1925_v45, %s3475_s26  ;;  %v1935_v45 = vcombine.high %v1924_v58, %v1924_v58  ;;  %v2007_v58 = vmul.f32 %v4382_v8, %v1998_v53  ;;  %v2017_v53 = vcombine.high %v2006_v12, %v2006_v12 }
 0x3e2   : > { %1913 = vrot.lane.b32.xlu1 %v1899_v49, %s5140_s20  ;;  %v4394_v49 = vsel %vm2024_vm13, %v3955_v3, %v3876_v37  ;;  %v4411_v37 = vsel %vm1915_vm15, %v3984_v26, %v3886_v42 }
 0x3e3   : > { %v2056_v23 = vmul.f32 %v4394_v49, %v4330_v32  ;;  %v2151_v3 = vmul.f32 %v4411_v37, %v4330_v32 }
 0x3e4   : > { %1982 = vrot.lane.b32.xlu0 %v1970_v57, %s5141_s22  ;;  %v2101_v57 = vcombine.high %v2090_v22, %v2090_v22 }
 0x3e5   : > { %v2067_v20 = vcombine.high %v2056_v23, %v2056_v23  ;;  %v2162_v9 = vcombine.high %v2151_v3, %v2151_v3 }
 0x3e6   : > { %v4379_v1 = vld [vmem:[#allocation3] sm:$0xff]  ;;  %v2219_v10 = vld [vmem:[#allocation3 + $0x8] sm:$0xf]  ;;  %1938 = vrot.lane.b32.xlu1 %v1935_v45, %s3475_s26 }
 0x3e7   : > { %v2191_v38 = vld [vmem:[#allocation3 + $0x8] sm:$0xf] }
 0x3e8   : > { %v4384_v59 = vld [vmem:[#allocation3 + $0x8] sm:$0xf]  ;;  %1986 = vrot.lane.b32.xlu0 %v1971_v33, %s5141_s22 }
 0x3e9   : > { %v4386_v7 = vld [vmem:[#allocation3 + $0x8] sm:$0xf] }
 0x3ea   : > { %2438 = vst [vmem:[#allocation3 + $0x4] sm:$0xff] %v4376_v54  ;;  %2068 = vrot.lane.b32.xlu1 %v2056_v23, %s5142_s16  ;;  %v2192_v23 = vmul.f32 %v4379_v1, %v4347_v0 }
 0x3ec   : > { %2018 = vrot.lane.b32.xlu0 %v2006_v12, %s5143_s27  ;;  %v2193_v12 = vmul.f32 %v2191_v38, %v4338_v61  ;;  %v2203_v4 = vcombine.high %v2192_v23, %v2192_v23 }
 0x3ee   : > { %2163 = vrot.lane.b32.xlu1 %v2151_v3, %s5100_s14  ;;  %v2246_v3 = vmul.f32 %v4379_v1, %v4369_v6 }
 0x3f0   : > { %2022 = vrot.lane.b32.xlu0 %v2007_v58, %s5143_s27  ;;  %v2229_v58 = vcombine.high %v4379_v1, %v4379_v1 }
 0x3f1   : > { %v4419_v45 = vld [vmem:[#allocation3] sm:$0xff]  ;;  %v2468_v11 = vld [vmem:[#allocation3 + $0x8] sm:$0xf] }
 0x3f2   : > { %v4421_v17 = vld [vmem:[#allocation3 + $0x8] sm:$0xf]  ;;  %1984 = vrot.lane.b32.xlu1 %v1981_v29, %s5141_s22  ;;  %v2257_v29 = vcombine.high %v2246_v3, %v2246_v3 }
 0x3f3   : > { %v4425_v42 = vld [vmem:[#allocation3 + $0x8] sm:$0xf] }
 0x3f4   : > { %v4427_v33 = vld [vmem:[#allocation3 + $0x8] sm:$0xf]  ;;  %2102 = vrot.lane.b32.xlu0 %v2090_v22, %s3471_s23  ;;  %v2317_v22 = vmul.f32 %v4350_v60, %v4394_v49 }
 0x3f5   : > { %2687 = vst [vmem:[#allocation3 + $0x4] sm:$0xff] %v4417_v35 }
 0x3f6   : > { %2020 = vrot.lane.b32.xlu1 %v2017_v53, %s5143_s27  ;;  %v2274_v53 = vmul.f32 %v4379_v1, %v4402_v47 }
 0x3f8   : > { %2130 = vrot.lane.b32.xlu0 %v4442_v46, %s5102_s15  ;;  %v2285_v38 = vcombine.high %v2274_v53, %v2274_v53 }
 0x3fa   : > { %2104 = vrot.lane.b32.xlu1 %v2101_v57, %s3471_s23  ;;  %v2345_v57 = vmul.f32 %v4350_v60, %v4434_v34 }
 0x3fc   : > { %1911 = vrot.lane.b32.xlu0 %v1908_v40, %s5140_s20  ;;  %v2247_v40 = vmul.f32 %v4384_v59, %v4357_v48 }
 0x3fe   : > { %2230 = vrot.lane.b32.xlu1 %v4379_v1, %s3475_s26  ;;  %v2275_v1 = vmul.f32 %v4386_v7, %v4382_v8  ;;  %v2523_v7 = vmul.f32 %v4419_v45, %v4402_v47 }
 0x400   : > { %2070 = vrot.lane.b32.xlu0 %v2067_v20, %s5142_s16  ;;  %v2356_v20 = vcombine.high %v2345_v57, %v2345_v57 }
 0x402   : > { %2234 = vrot.lane.b32.xlu1 %v2219_v10, %s3475_s26  ;;  %v2399_v10 = vmul.f32 %v4350_v60, %v4411_v37 }
 0x404   : > { %2165 = vrot.lane.b32.xlu0 %v2162_v9, %s5100_s14  ;;  %v4497_v9 = vpop.permute.xlu1 %1647 }
 0x405   : > { %5144 = vst [vmem:[#allocation64_spill] sm:$0xff] %v4497_v9 }
 0x406   : > { %2329 = vrot.lane.b32.xlu1 %v2317_v22, %s5142_s16 }
 0x408   : > { %2383 = vrot.lane.b32.xlu0 %v4350_v60, %s5102_s15  ;;  %v4502_v59 = vpop.permute.xlu1 %1696 }
 0x409   : > { %5145 = vst [vmem:[#allocation65_spill] sm:$0xff] %v4502_v59 }
 0x40a   : > { %2385 = vrot.lane.b32.xlu1 %v4461_v62, %s5102_s15 }
 0x40c   : > { %2204 = vrot.lane.b32.xlu0 %v2192_v23, %s5140_s20  ;;  %v2328_v23 = vcombine.high %v2317_v22, %v2317_v22 }
 0x40e   : > { %2411 = vrot.lane.b32.xlu1 %v2399_v10, %s5100_s14 }
 0x410   : > { %2208 = vrot.lane.b32.xlu0 %v2193_v12, %s5140_s20  ;;  %v4506_v12 = vpop.permute.xlu0 %1613 }
 0x411   : > { %5146 = vst [vmem:[#allocation66_spill] sm:$0xff] %v4506_v12 }
 0x412   : > { %2206 = vrot.lane.b32.xlu1 %v2203_v4, %s5140_s20  ;;  %v2410_v4 = vcombine.high %v2399_v10, %v2399_v10  ;;  %v2594_v10 = vmul.f32 %v4376_v54, %v4434_v34 }
 0x414   : > { %2232 = vrot.lane.b32.xlu0 %v2229_v58, %s3475_s26  ;;  %v4517_v22 = vpop.permute.xlu0 %1617  ;;  %v2441_v58 = vmul.f32 %v4419_v45, %v4347_v0 }
 0x415   : > { %5148 = vst [vmem:[#allocation68_spill] sm:$0xff] %v4517_v22 }
 0x416   : > { %2260 = vrot.lane.b32.xlu1 %v2257_v29, %s5141_s22 }
 0x418   : > { %2258 = vrot.lane.b32.xlu0 %v2246_v3, %s5141_s22  ;;  %v4512_v3 = vpop.permute.xlu1 %1554 }
 0x419   : > { %5147 = vst [vmem:[#allocation67_spill] sm:$0xff] %v4512_v3 }
 0x41a   : > { %2288 = vrot.lane.b32.xlu1 %v2285_v38, %s5143_s27  ;;  %v2452_v38 = vcombine.high %v2441_v58, %v2441_v58 }
 0x41c   : > { %2262 = vrot.lane.b32.xlu0 %v2247_v40, %s5141_s22  ;;  %v4525_v29 = vpop.permute.xlu1 %1615  ;;  %v2478_v40 = vcombine.high %v4419_v45, %v4419_v45 }
 0x41d   : > { %5149 = vst [vmem:[#allocation69_spill] sm:$0xff] %v4525_v29 }
 0x41e   : > { %2359 = vrot.lane.b32.xlu1 %v2356_v20, %s3471_s23 }
 0x420   : > { %2286 = vrot.lane.b32.xlu0 %v2274_v53, %s5143_s27  ;;  %v2442_v53 = vmul.f32 %v4425_v42, %v4338_v61  ;;  %v4538_v20 = vpop.permute.xlu1 %1649 }
 0x421   : > { %5151 = vst [vmem:[#allocation71_spill] sm:$0xff] %v4538_v20 }
 0x422   : > { %2479 = vrot.lane.b32.xlu1 %v4419_v45, %s3475_s26 }
 0x424   : > { %2290 = vrot.lane.b32.xlu0 %v2275_v1, %s5143_s27  ;;  %v2566_v1 = vmul.f32 %v4376_v54, %v4394_v49 }
 0x426   : > { %2483 = vrot.lane.b32.xlu1 %v2468_v11, %s3475_s26  ;;  %v2524_v11 = vmul.f32 %v4421_v17, %v4382_v8  ;;  %v4530_v17 = vpop.permute.xlu0 %1651 }
 0x427   : > { %5150 = vst [vmem:[#allocation70_spill] sm:$0xff] %v4530_v17  ;;  %v2605_v17 = vcombine.high %v2594_v10, %v2594_v10 }
 0x428   : > { %2357 = vrot.lane.b32.xlu0 %v2345_v57, %s3471_s23  ;;  %v2495_v57 = vmul.f32 %v4419_v45, %v4369_v6  ;;  %v2648_v45 = vmul.f32 %v4376_v54, %v4411_v37 }
 0x42a   : > { %2632 = vrot.lane.b32.xlu1 %v4376_v54, %s5102_s15  ;;  %v2506_v42 = vcombine.high %v2495_v57, %v2495_v57 }
 0x42c   : > { %2331 = vrot.lane.b32.xlu0 %v2328_v23, %s5142_s16  ;;  %v4543_v23 = vpop.permute.xlu0 %1730 }
 0x42d   : > { %5152 = vst [vmem:[#allocation72_spill] sm:$0xff] %v4543_v23  ;;  %v4565_v23 = vcombine.low %v4362_v39, %v4362_v39  ;;  %v2534_v39 = vcombine.high %v2523_v7, %v2523_v7 }
 0x42e   : > { %2535 = vrot.lane.b32.xlu1 %v2523_v7, %s5143_s27 }
 0x430   : > { %2413 = vrot.lane.b32.xlu0 %v2410_v4, %s5100_s14  ;;  %v2577_v4 = vcombine.high %v2566_v1, %v2566_v1 }
 0x432   : > { %2539 = vrot.lane.b32.xlu1 %v2524_v11, %s5143_s27  ;;  %v4549_v11 = vpop.permute.xlu1 %1732 }
 0x433   : > { %5153 = vst [vmem:[#allocation73_spill] sm:$0xff] %v4549_v11 }
 0x434   : > { %2453 = vrot.lane.b32.xlu0 %v2441_v58, %s5140_s20  ;;  %v2496_v58 = vmul.f32 %v4427_v33, %v4357_v48 }
 0x436   : > { %2606 = vrot.lane.b32.xlu1 %v2594_v10, %s3471_s23 }
 0x438   : > { %2457 = vrot.lane.b32.xlu0 %v2442_v53, %s5140_s20  ;;  %v4554_v53 = vpop.permute.xlu0 %1790 }
 0x439   : > { %5154 = vst [vmem:[#allocation74_spill] sm:$0xff] %v4554_v53  ;;  %v2743_v53 = vld [vmem:[#allocation3 + $0x8] sm:$0xf] }
 0x43a   : > { %2455 = vrot.lane.b32.xlu1 %v2452_v38, %s5140_s20  ;;  %v2659_v38 = vcombine.high %v2648_v45, %v2648_v45  ;;  %v2745_v59 = vmul.f32 %v2743_v53, %v4357_v48  ;;  %v4591_v48 = vcombine.low %v4404_v16, %v4404_v16 }
 0x43c   : > { %2481 = vrot.lane.b32.xlu0 %v2478_v40, %s3475_s26  ;;  %v4558_v40 = vpop.permute.xlu1 %1792  ;;  %5157 = vst [vmem:[#allocation77_spill] sm:$0xff] %v4591_v48 }
 0x43d   : > { %5155 = vst [vmem:[#allocation75_spill] sm:$0xff] %v4558_v40 }
 0x43e   : > { %2509 = vrot.lane.b32.xlu1 %v2506_v42, %s5141_s22  ;;  %v4561_v42 = vpop.permute.xlu0 %1698 }
 0x43f   : > { %5156 = vst [vmem:[#allocation76_spill] sm:$0xff] %v4561_v42 }
 0x440   : > { %2507 = vrot.lane.b32.xlu0 %v2495_v57, %s5141_s22  ;;  %v2716_v57 = vld [vmem:[#allocation3] sm:$0xff] }
 0x441   : > { %v2690_v10 = vmul.f32 %v2716_v57, %v4347_v0  ;;  %v2727_v29 = vcombine.high %v2716_v57, %v2716_v57 }
 0x442   : > { %2580 = vrot.lane.b32.xlu1 %v2577_v4, %s5142_s16  ;;  %v2717_v4 = vld [vmem:[#allocation3 + $0x8] sm:$0xf] }
 0x444   : > { %2511 = vrot.lane.b32.xlu0 %v2496_v58, %s5141_s22 }
 0x446   : > { %2662 = vrot.lane.b32.xlu1 %v2659_v38, %s5100_s14  ;;  %v2129_v33 = vpop.permute.xlu1 %2128  ;;  %v4573_v38 = vmul.f32 %v2716_v57, %v4369_v6 }
 0x448   : > { %2578 = vrot.lane.b32.xlu0 %v2566_v1, %s5142_s16 }
 0x44a   : > { %2728 = vrot.lane.b32.xlu1 %v2716_v57, %s3475_s26 }
 0x44c   : > { %2634 = vrot.lane.b32.xlu0 %v4565_v23, %s5102_s15 }
 0x44e   : > { %v1937_v58 = vpop.permute.xlu0 %1936  ;;  %2732 = vrot.lane.b32.xlu1 %v2717_v4, %s3475_s26 }
 0x450   : > { %2660 = vrot.lane.b32.xlu0 %v2648_v45, %s5100_s14  ;;  %v1910_v1 = vpop.permute.xlu1 %1909  ;;  %v4583_v45 = vmul.f32 %v4417_v35, %v4394_v49 }
 0x452   : > { %v1941_v40 = vpop.permute.xlu0 %1940  ;;  %2756 = vrot.lane.b32.xlu1 %v4573_v38, %s5141_s22 }
 0x454   : > { %2537 = vrot.lane.b32.xlu0 %v2534_v39, %s5143_s27  ;;  %v1914_v11 = vpop.permute.xlu1 %1913 }
 0x456   : > { %v1983_v42 = vpop.permute.xlu0 %1982  ;;  %2760 = vrot.lane.b32.xlu1 %v2745_v59, %s5141_s22 }
 0x458   : > { %2608 = vrot.lane.b32.xlu0 %v2605_v17, %s3471_s23  ;;  %v1939_v6 = vpop.permute.xlu1 %1938  ;;  %v2689_v17 = vld [vmem:[#allocation3 + $0x8] sm:$0xf] }
 0x459   : > { %v1943_v7 = vsel %vm1942_vm9, %v1937_v58, %v1939_v6  ;;  %v1944_v4 = vsel %vm1942_vm9, %v1939_v6, %v1941_v40  ;;  %v2701_v40 = vcombine.high %v2690_v10, %v2690_v10  ;;  %v2772_v58 = vmul.f32 %v2716_v57, %v4402_v47 }
 0x45a   : > { %v1987_v39 = vpop.permute.xlu0 %1986  ;;  %2827 = vrot.lane.b32.xlu1 %v4583_v45, %s5142_s16  ;;  %v2691_v6 = vmul.f32 %v2689_v17, %v4338_v61  ;;  %v4611_v61 = vmul.f32 %v4417_v35, %v4411_v37  ;;  %v2896_v37 = vld [vmem:[#allocation3 + $0xc] sm:$0xf] }
 0x45b   : > { %v2783_v9 = vcombine.high %v2772_v58, %v2772_v58 }
 0x45c   : > { %2881 = vrot.lane.b32.xlu0 %v4417_v35, %s5102_s15  ;;  %v2069_v59 = vpop.permute.xlu1 %2068 }
 0x45e   : > { %v2019_v49 = vpop.permute.xlu0 %2018  ;;  %2883 = vrot.lane.b32.xlu1 %v4591_v48, %s5102_s15 }
 0x460   : > { %2702 = vrot.lane.b32.xlu0 %v2690_v10, %s5140_s20  ;;  %v4599_v53 = vpop.permute.xlu1 %2163  ;;  %v2843_v10 = vmul.f32 %v4417_v35, %v4434_v34 }
 0x462   : > { %v2023_v16 = vpop.permute.xlu0 %2022  ;;  %2704 = vrot.lane.b32.xlu1 %v2701_v40, %s5140_s20  ;;  %v2854_v40 = vcombine.high %v2843_v10, %v2843_v10 }
 0x464   : > { %2706 = vrot.lane.b32.xlu0 %v2691_v6, %s5140_s20  ;;  %v1985_v0 = vpop.permute.xlu1 %1984 }
 0x465   : > { %v1989_v20 = vsel %vm1988_vm1, %v1983_v42, %v1985_v0  ;;  %v1990_v22 = vsel %vm1988_vm1, %v1985_v0, %v1987_v39 }
 0x466   : > { %v2103_v12 = vpop.permute.xlu0 %2102  ;;  %2786 = vrot.lane.b32.xlu1 %v2783_v9, %s5143_s27 }
 0x468   : > { %2730 = vrot.lane.b32.xlu0 %v2727_v29, %s3475_s26  ;;  %v2021_v47 = vpop.permute.xlu1 %2020  ;;  %v2771_v29 = vld [vmem:[#allocation3 + $0x8] sm:$0xf] }
 0x469   : > { %v2025_v17 = vsel %vm2024_vm13, %v2019_v49, %v2021_v47  ;;  %v2026_v42 = vsel %vm2024_vm13, %v2021_v47, %v2023_v16  ;;  %v2773_v34 = vmul.f32 %v2771_v29, %v4382_v8  ;;  %v2898_v47 = vmul.f32 %v2896_v37, %v3984_v26 }
 0x46a   : > { %v2131_v39 = vpop.permute.xlu0 %2130  ;;  %2909 = vrot.lane.b32.xlu1 %v4611_v61, %s5100_s14  ;;  %v1993_v8 = vmul.f32 %v1989_v20, %v4146_v21  ;;  %v2045_v20 = vmul.f32 %v4442_v46, %v4174_v63 }
 0x46b   : > { %v2135_v9 = vsel %vm2134_vm10, %v2129_v33, %v2131_v39  ;;  %v1947_v33 = vmul.f32 %v1943_v7, %v4198_v52  ;;  %v2030_v7 = vmul.f32 %v2026_v42, %v4160_v44  ;;  %v2136_v46 = vsel %vm2134_vm10, %v2131_v39, %v4262_v19 }
 0x46c   : > { %2784 = vrot.lane.b32.xlu0 %v2772_v58, %s5143_s27  ;;  %v2105_v57 = vpop.permute.xlu1 %2104  ;;  %v1948_v58 = vmul.f32 %v1944_v4, %v4198_v52  ;;  %v1804_v52 = vld [vmem:[%s4989_s9] sm:$0xf] }
 0x46d   : > { %v2108_v6 = vsel %vm1966_vm12, %v2103_v12, %v2105_v57 }
 0x46e   : > { %v1912_v0 = vpop.permute.xlu0 %1911  ;;  %2857 = vrot.lane.b32.xlu1 %v2854_v40, %s3471_s23 }
 0x46f   : > { %v1916_v49 = vsel %vm1915_vm15, %v1910_v1, %v1912_v0  ;;  %v1917_v16 = vsel %vm1915_vm15, %v1912_v0, %v1914_v11  ;;  %v1994_v1 = vmul.f32 %v1990_v22, %v4146_v21 }
 0x470   : > { %v1920_v3 = vmul.f32 %v1916_v49, %v4119_v24  ;;  %v1921_v48 = vmul.f32 %v1917_v16, %v4119_v24  ;;  %2788 = vrot.lane.b32.xlu0 %v2773_v34, %s5143_s27  ;;  %v4632_v12 = vpop.permute.xlu1 %2230  ;;  %v2029_v24 = vmul.f32 %v2025_v17, %v4160_v44  ;;  %v2755_v44 = vcombine.high %v4573_v38, %v4573_v38 }
 0x471   : > { %v2826_v38 = vcombine.high %v4583_v45, %v4583_v45 }
 0x472   : > { %v1949_v29 = vadd.f32 %v1947_v33, %v1920_v3  ;;  %v1950_v11 = vadd.f32 %v1948_v58, %v1921_v48  ;;  %v2071_v40 = vpop.permute.xlu0 %2070  ;;  %2913 = vrot.lane.b32.xlu1 %v2898_v47, %s5100_s14  ;;  %v2044_v3 = vmul.f32 %v4174_v63, %v4330_v32  ;;  %v2139_v47 = vmul.f32 %v2135_v9, %v4250_v27 }
 0x473   : > { %v2074_v26 = vsel %vm2002_vm14, %v2069_v59, %v2071_v40  ;;  %v2075_v22 = vsel %vm2002_vm14, %v2071_v40, %v4224_v30  ;;  %v2140_v33 = vmul.f32 %v2136_v46, %v4250_v27  ;;  %v3269_v40 = vld [vmem:[%s4992_s12 + $0xc] sm:$0xf] }
 0x474   : > { %v1995_v4 = vadd.f32 %v1993_v8, %v1949_v29  ;;  %v1996_v37 = vadd.f32 %v1994_v1, %v1950_v11  ;;  %2855 = vrot.lane.b32.xlu0 %v2843_v10, %s3471_s23  ;;  %v2235_v21 = vpop.permute.xlu1 %2234  ;;  %v2109_v10 = vsel %vm1966_vm12, %v2105_v57, %v4256_v36  ;;  %v2078_v30 = vmul.f32 %v2074_v26, %v4189_v14 }
 0x475   : > { %v2079_v34 = vmul.f32 %v2075_v22, %v4189_v14  ;;  %v2112_v36 = vmul.f32 %v2108_v6, %v4215_v56 }
 0x476   : > { %v2031_v48 = vadd.f32 %v2029_v24, %v1995_v4  ;;  %v2032_v59 = vadd.f32 %v2030_v7, %v1996_v37  ;;  %v2166_v0 = vpop.permute.xlu0 %2165  ;;  %1807 = vperm.xlu1 %3335, %v1804_v52  }
 0x477   : > { %v2169_v17 = vsel %vm1894_vm11, %v4599_v53, %v2166_v0  ;;  %v2113_v53 = vmul.f32 %v2109_v10, %v4215_v56  ;;  %v2170_v14 = vsel %vm1894_vm11, %v2166_v0, %v4278_v31  ;;  %v2908_v56 = vcombine.high %v4611_v61, %v4611_v61 }
 0x478   : > { %v2046_v32 = vadd.f32 %v2044_v3, %v2031_v48  ;;  %v2047_v42 = vadd.f32 %v2045_v20, %v2032_v59  ;;  %2758 = vrot.lane.b32.xlu0 %v2755_v44, %s5141_s22  ;;  %v4659_v63 = vpop.permute.xlu1 %2329  ;;  %v2173_v31 = vmul.f32 %v2169_v17, %v4248_v28  ;;  %v2174_v9 = vmul.f32 %v2170_v14, %v4248_v28  ;;  %v1812_v28 = vld [vmem:[%s4990_s10] sm:$0xf] }
 0x47a   : > { %v2080_v57 = vadd.f32 %v2078_v30, %v2046_v32  ;;  %v2081_v49 = vadd.f32 %v2079_v34, %v2047_v42  ;;  %v2384_v16 = vpop.permute.xlu0 %2383 }
 0x47c   : > { %v2114_v58 = vadd.f32 %v2112_v36, %v2080_v57  ;;  %v2115_v8 = vadd.f32 %v2113_v53, %v2081_v49  ;;  %2829 = vrot.lane.b32.xlu0 %v2826_v38, %s5142_s16  ;;  %v4672_v19 = vpop.permute.xlu1 %2385 }
 0x47d   : > { %v4676_v45 = vsel %vm2134_vm10, %v2384_v16, %v4672_v19  ;;  %v2311_v16 = vmul.f32 %v4179_v5, %v4350_v60 }
 0x47e   : > { %v2141_v39 = vadd.f32 %v2139_v47, %v2114_v58  ;;  %v2142_v6 = vadd.f32 %v2140_v33, %v2115_v8  ;;  %v2205_v27 = vpop.permute.xlu0 %2204 }
 0x480   : > { %v4682_v1 = vadd.f32 %v2173_v31, %v2141_v39  ;;  %v4684_v29 = vadd.f32 %v2174_v9, %v2142_v6  ;;  %2911 = vrot.lane.b32.xlu0 %v2908_v56, %s5100_s14  ;;  %v2412_v11 = vpop.permute.xlu1 %2411  ;;  %v2312_v56 = vmul.f32 %v4461_v62, %v4179_v5  ;;  %v2390_v62 = vsel %vm2134_vm10, %v4672_v19, %v4270_v41 }
 0x482   : > { %v2209_v26 = vpop.permute.xlu0 %2208 }
 0x484   : > { %2927 = vperm.xlu0 %3334, %v3269_v40   ;;  %v2207_v61 = vpop.permute.xlu1 %2206 }
 0x485   : > { %v2210_v52 = vsel %vm1915_vm15, %v2205_v27, %v2207_v61  ;;  %v2211_v24 = vsel %vm1915_vm15, %v2207_v61, %v2209_v26 }
 0x486   : > { %v2233_v7 = vpop.permute.xlu0 %2232  ;;  %v2214_v20 = vmul.f32 %v2210_v52, %v4139_v43  ;;  %v2215_v48 = vmul.f32 %v2211_v24, %v4139_v43 }
 0x487   : > { %v2236_v4 = vsel %vm1942_vm9, %v4632_v12, %v2233_v7  ;;  %v2237_v37 = vsel %vm1942_vm9, %v2233_v7, %v2235_v21  ;;  %v5158_v7 = vld [vmem:[#allocation41_spill] sm:$0xff] }
 0x488   : > { %v2240_v3 = vmul.f32 %v2236_v4, %v4202_v25  ;;  %v2241_v22 = vmul.f32 %v2237_v37, %v4202_v25  ;;  %1815 = vperm.xlu0 %3334, %v1812_v28   ;;  %v2261_v59 = vpop.permute.xlu1 %2260  ;;  %v2394_v4 = vmul.f32 %v2390_v62, %v5158_v7 }
 0x48a   : > { %v2242_v0 = vadd.f32 %v2240_v3, %v2214_v20  ;;  %v2243_v44 = vadd.f32 %v2241_v22, %v2215_v48  ;;  %v2259_v10 = vpop.permute.xlu0 %2258  ;;  %v5159_v20 = vld [vmem:[#allocation40_spill] sm:$0xff] }
 0x48b   : > { %v2264_v17 = vsel %vm1988_vm1, %v2259_v10, %v2261_v59 }
 0x48c   : > { %v2268_v32 = vmul.f32 %v2264_v17, %v4210_v13  ;;  %v2289_v12 = vpop.permute.xlu1 %2288  ;;  %v5161_v17 = vld [vmem:[#allocation50_spill] sm:$0xff] }
 0x48e   : > { %v2270_v42 = vadd.f32 %v2268_v32, %v2242_v0  ;;  %v2263_v21 = vpop.permute.xlu0 %2262 }
 0x48f   : > { %v2265_v30 = vsel %vm1988_vm1, %v2261_v59, %v2263_v21 }
 0x490   : > { %v2269_v25 = vmul.f32 %v2265_v30, %v4210_v13  ;;  %v2360_v34 = vpop.permute.xlu1 %2359 }
 0x491   : > { %v2364_v60 = vsel %vm1966_vm12, %v2360_v34, %v4260_v18 }
 0x492   : > { %v2271_v46 = vadd.f32 %v2269_v25, %v2243_v44  ;;  %v2287_v38 = vpop.permute.xlu0 %2286  ;;  %v2368_v61 = vmul.f32 %v2364_v60, %v4240_v2 }
 0x493   : > { %v2292_v43 = vsel %vm2024_vm13, %v2287_v38, %v2289_v12 }
 0x494   : > { %v2296_v36 = vmul.f32 %v2292_v43, %v4220_v55  ;;  %v2480_v53 = vpop.permute.xlu1 %2479 }
 0x496   : > { %v2298_v57 = vadd.f32 %v2296_v36, %v2270_v42  ;;  %v2291_v49 = vpop.permute.xlu0 %2290 }
 0x497   : > { %v2293_v14 = vsel %vm2024_vm13, %v2289_v12, %v2291_v49 }
 0x498   : > { %v2297_v47 = vmul.f32 %v2293_v14, %v4220_v55  ;;  %v2484_v33 = vpop.permute.xlu1 %2483  ;;  %v2313_v58 = vadd.f32 %v2311_v16, %v2298_v57  ;;  %v5163_v57 = vld [vmem:[#allocation26_spill] sm:$0xff] }
 0x49a   : > { %v2299_v13 = vadd.f32 %v2297_v47, %v2271_v46  ;;  %v2358_v8 = vpop.permute.xlu0 %2357 }
 0x49b   : > { %v2363_v39 = vsel %vm1966_vm12, %v2358_v8, %v2360_v34 }
 0x49c   : > { %v2314_v6 = vadd.f32 %v2312_v56, %v2299_v13  ;;  %v4715_v31 = vpop.permute.xlu1 %2632  ;;  %v2367_v52 = vmul.f32 %v2363_v39, %v4240_v2 }
 0x49e   : > { %v2332_v9 = vpop.permute.xlu0 %2331 }
 0x49f   : > { %v2335_v27 = vsel %vm2002_vm14, %v4659_v63, %v2332_v9  ;;  %v2336_v55 = vsel %vm2002_vm14, %v2332_v9, %v4231_v51 }
 0x4a0   : > { %v2339_v40 = vmul.f32 %v2335_v27, %v4196_v50  ;;  %v2340_v26 = vmul.f32 %v2336_v55, %v4196_v50  ;;  %v2536_v5 = vpop.permute.xlu1 %2535  ;;  %v2393_v50 = vmul.f32 %v4676_v45, %v5158_v7 }
 0x4a2   : > { %v2341_v18 = vadd.f32 %v2339_v40, %v2313_v58  ;;  %v2342_v24 = vadd.f32 %v2340_v26, %v2314_v6  ;;  %v2414_v28 = vpop.permute.xlu0 %2413 }
 0x4a3   : > { %v2417_v63 = vsel %vm1894_vm11, %v2412_v11, %v2414_v28  ;;  %v2418_v51 = vsel %vm1894_vm11, %v2414_v28, %v4282_v15  ;;  %v5160_v15 = vld [vmem:[#allocation49_spill] sm:$0xff] }
 0x4a4   : > { %v2369_v37 = vadd.f32 %v2367_v52, %v2341_v18  ;;  %v2370_v3 = vadd.f32 %v2368_v61, %v2342_v24  ;;  %v2540_v41 = vpop.permute.xlu1 %2539  ;;  %v2421_v2 = vmul.f32 %v2417_v63, %v5159_v20  ;;  %v2422_v48 = vmul.f32 %v2418_v51, %v5159_v20  ;;  %v5164_v61 = vld [vmem:[#allocation27_spill] sm:$0xff] }
 0x4a5   : > { %v2183_v10 = vmul.f32 %v5160_v15, %v4682_v1  ;;  %v2184_v45 = vmul.f32 %v5160_v15, %v4684_v29  ;;  %v5162_v29 = vld [vmem:[#allocation32_spill] sm:$0xff] }
 0x4a6   : > { %v2395_v19 = vadd.f32 %v2393_v50, %v2369_v37  ;;  %v2396_v22 = vadd.f32 %v2394_v4, %v2370_v3  ;;  %v2454_v59 = vpop.permute.xlu0 %2453  ;;  %v5165_v4 = vld [vmem:[#allocation34_spill] sm:$0xff] }
 0x4a8   : > { %v2423_v0 = vadd.f32 %v2421_v2, %v2395_v19  ;;  %v2424_v11 = vadd.f32 %v2422_v48, %v2396_v22  ;;  %v2607_v44 = vpop.permute.xlu1 %2606  ;;  %v5166_v19 = vld [vmem:[#allocation43_spill] sm:$0xff] }
 0x4a9   : > { %v5167_v2 = vld [vmem:[#allocation31_spill] sm:$0xff] }
 0x4aa   : > { %v2432_v32 = vmul.f32 %v5161_v17, %v2423_v0  ;;  %v2433_v12 = vmul.f32 %v5161_v17, %v2424_v11  ;;  %v2458_v42 = vpop.permute.xlu0 %2457  ;;  %v2560_v48 = vmul.f32 %v5167_v2, %v4376_v54  ;;  %v5169_v17 = vld [vmem:[#allocation38_spill] sm:$0xff] }
 0x4ac   : > { %v4744_v21 = vadd.f32 %v2432_v32, %v2183_v10  ;;  %v4746_v30 = vadd.f32 %v2433_v12, %v2184_v45  ;;  %v4748_v25 = vsub.f32 %v2183_v10, %v2432_v32  ;;  %v4750_v34 = vsub.f32 %v2184_v45, %v2433_v12  ;;  %v2456_v46 = vpop.permute.xlu1 %2455  ;;  %v5168_v10 = vld [vmem:[#allocation45_spill] sm:$0xff] }
 0x4ad   : > { %v2459_v38 = vsel %vm1915_vm15, %v2454_v59, %v2456_v46  ;;  %v2561_v59 = vmul.f32 %v4565_v23, %v5167_v2 }
 0x4ae   : > { %v2482_v1 = vpop.permute.xlu0 %2481  ;;  %v2463_v49 = vmul.f32 %v2459_v38, %v5163_v57  ;;  %v5170_v38 = vld [vmem:[#allocation52_spill] sm:$0xff] }
 0x4af   : > { %v2485_v43 = vsel %vm1942_vm9, %v2480_v53, %v2482_v1  ;;  %v2486_v9 = vsel %vm1942_vm9, %v2482_v1, %v2484_v33  ;;  %v2460_v53 = vsel %vm1915_vm15, %v2456_v46, %v2458_v42 }
 0x4b0   : > { %v2489_v36 = vmul.f32 %v2485_v43, %v5162_v29  ;;  %v2510_v16 = vpop.permute.xlu1 %2509  ;;  %v2490_v40 = vmul.f32 %v2486_v9, %v5162_v29  ;;  %v2464_v62 = vmul.f32 %v2460_v53, %v5163_v57  ;;  %v5171_v29 = vld [vmem:[#allocation36_spill] sm:$0xff]  ;;  %v5174_v9 = vld [vmem:[#allocation47_spill] sm:$0xff] }
 0x4b2   : > { %v2491_v14 = vadd.f32 %v2489_v36, %v2463_v49  ;;  %v2508_v47 = vpop.permute.xlu0 %2507  ;;  %v2492_v33 = vadd.f32 %v2490_v40, %v2464_v62  ;;  %v5172_v49 = vld [vmem:[#allocation53_spill] sm:$0xff] }
 0x4b3   : > { %v2513_v27 = vsel %vm1988_vm1, %v2508_v47, %v2510_v16  ;;  %v5173_v47 = vld [vmem:[#allocation42_spill] sm:$0xff] }
 0x4b4   : > { %v2581_v58 = vpop.permute.xlu1 %2580  ;;  %v2517_v52 = vmul.f32 %v2513_v27, %v5164_v61 }
 0x4b5   : > { %v2585_v22 = vsel %vm2002_vm14, %v2581_v58, %v5166_v19 }
 0x4b6   : > { %v2512_v13 = vpop.permute.xlu0 %2511  ;;  %v2519_v7 = vadd.f32 %v2517_v52, %v2491_v14  ;;  %v2589_v32 = vmul.f32 %v2585_v22, %v5169_v17 }
 0x4b7   : > { %v2514_v55 = vsel %vm1988_vm1, %v2510_v16, %v2512_v13 }
 0x4b8   : > { %v2663_v8 = vpop.permute.xlu1 %2662  ;;  %v2518_v18 = vmul.f32 %v2514_v55, %v5164_v61 }
 0x4b9   : > { %v2667_v16 = vsel %vm1894_vm11, %v2663_v8, %v5172_v49 }
 0x4ba   : > { %v2579_v56 = vpop.permute.xlu0 %2578  ;;  %v2520_v50 = vadd.f32 %v2518_v18, %v2492_v33  ;;  %v2671_v53 = vmul.f32 %v2667_v16, %v5174_v9  ;;  %v5175_v18 = vld [vmem:[#allocation57_spill] sm:$0xff] }
 0x4bb   : > { %v2584_v20 = vsel %vm2002_vm14, %v2579_v56, %v2581_v58 }
 0x4bc   : > { %v4756_v39 = vpop.permute.xlu1 %2728  ;;  %v2588_v12 = vmul.f32 %v2584_v20, %v5169_v17  ;;  %v5177_v17 = vld [vmem:[#allocation33_spill] sm:$0xff] }
 0x4be   : > { %v2635_v6 = vpop.permute.xlu0 %2634 }
 0x4bf   : > { %v2638_v54 = vsel %vm2134_vm10, %v4715_v31, %v2635_v6  ;;  %v2639_v23 = vsel %vm2134_vm10, %v2635_v6, %v5170_v38 }
 0x4c0   : > { %v4759_v60 = vpop.permute.xlu1 %2732  ;;  %v2642_v58 = vmul.f32 %v2638_v54, %v5173_v47  ;;  %v2643_v31 = vmul.f32 %v2639_v23, %v5173_v47 }
 0x4c2   : > { %v2661_v26 = vpop.permute.xlu0 %2660 }
 0x4c3   : > { %v2666_v14 = vsel %vm1894_vm11, %v2661_v26, %v2663_v8 }
 0x4c4   : > { %v4768_v24 = vpop.permute.xlu1 %2756  ;;  %v2670_v27 = vmul.f32 %v2666_v14, %v5174_v9  ;;  %v5181_v9 = vld [vmem:[#allocation39_spill] sm:$0xff] }
 0x4c6   : > { %v2538_v28 = vpop.permute.xlu0 %2537 }
 0x4c7   : > { %v2541_v63 = vsel %vm2024_vm13, %v2536_v5, %v2538_v28  ;;  %v2542_v51 = vsel %vm2024_vm13, %v2538_v28, %v2540_v41 }
 0x4c8   : > { %v2545_v37 = vmul.f32 %v2541_v63, %v5165_v4  ;;  %v2546_v3 = vmul.f32 %v2542_v51, %v5165_v4  ;;  %v2761_v11 = vpop.permute.xlu1 %2760 }
 0x4ca   : > { %v2547_v5 = vadd.f32 %v2545_v37, %v2519_v7  ;;  %v2548_v0 = vadd.f32 %v2546_v3, %v2520_v50  ;;  %v2609_v41 = vpop.permute.xlu0 %2608 }
 0x4cb   : > { %v2612_v15 = vsel %vm1966_vm12, %v2607_v44, %v2609_v41  ;;  %v2613_v45 = vsel %vm1966_vm12, %v2609_v41, %v5168_v10  ;;  %v5176_v41 = vld [vmem:[#allocation28_spill] sm:$0xff] }
 0x4cc   : > { %v2562_v42 = vadd.f32 %v2560_v48, %v2547_v5  ;;  %v2563_v46 = vadd.f32 %v2561_v59, %v2548_v0  ;;  %v2616_v36 = vmul.f32 %v2612_v15, %v5171_v29  ;;  %v2617_v44 = vmul.f32 %v2613_v45, %v5171_v29  ;;  %v2828_v6 = vpop.permute.xlu1 %2827 }
 0x4ce   : > { %v2590_v1 = vadd.f32 %v2588_v12, %v2562_v42  ;;  %v2591_v43 = vadd.f32 %v2589_v32, %v2563_v46  ;;  %v4792_v57 = vpop.permute.xlu0 %2881 }
 0x4d0   : > { %v2618_v13 = vadd.f32 %v2616_v36, %v2590_v1  ;;  %v2619_v56 = vadd.f32 %v2617_v44, %v2591_v43  ;;  %v2884_v26 = vpop.permute.xlu1 %2883  ;;  %v5178_v1 = vld [vmem:[#allocation29_spill] sm:$0xff]  ;;  %v5179_v36 = vld [vmem:[#allocation35_spill] sm:$0xff] }
 0x4d2   : > { %v2644_v55 = vadd.f32 %v2642_v58, %v2618_v13  ;;  %v2645_v40 = vadd.f32 %v2643_v31, %v2619_v56  ;;  %v2703_v62 = vpop.permute.xlu0 %2702  ;;  %v5180_v13 = vld [vmem:[#allocation46_spill] sm:$0xff] }
 0x4d4   : > { %v2672_v61 = vadd.f32 %v2670_v27, %v2644_v55  ;;  %v2673_v52 = vadd.f32 %v2671_v53, %v2645_v40  ;;  %v2705_v3 = vpop.permute.xlu1 %2704  ;;  %v2809_v53 = vmul.f32 %v5181_v9, %v4417_v35  ;;  %v5182_v27 = vld [vmem:[#allocation77_spill] sm:$0xff]  ;;  %v5183_v40 = vld [vmem:[#allocation51_spill] sm:$0xff] }
 0x4d5   : > { %v2708_v5 = vsel %vm1915_vm15, %v2703_v62, %v2705_v3  ;;  %v2810_v55 = vmul.f32 %v5182_v27, %v5181_v9 }
 0x4d6   : > { %v4802_v33 = vmul.f32 %v5175_v18, %v2672_v61  ;;  %v4805_v8 = vmul.f32 %v5175_v18, %v2673_v52  ;;  %v2707_v28 = vpop.permute.xlu0 %2706  ;;  %v2712_v32 = vmul.f32 %v2708_v5, %v5177_v17 }
 0x4d7   : > { %v2709_v0 = vsel %vm1915_vm15, %v2705_v3, %v2707_v28  ;;  %v5184_v28 = vld [vmem:[#allocation37_spill] sm:$0xff]  ;;  %v5185_v3 = vld [vmem:[#allocation44_spill] sm:$0xff] }
 0x4d8   : > { %v2953_v63 = vsub.f32 %v4744_v21, %v4802_v33  ;;  %v4811_v51 = vadd.f32 %v4748_v25, %v4802_v33  ;;  %v2971_v7 = vsub.f32 %v4748_v25, %v4802_v33  ;;  %v4817_v50 = vadd.f32 %v4744_v21, %v4802_v33  ;;  %v2787_v22 = vpop.permute.xlu1 %2786 }
 0x4d9   : > { %v4821_v37 = vadd.f32 %v4746_v30, %v4805_v8  ;;  %v2713_v12 = vmul.f32 %v2709_v0, %v5177_v17 }
 0x4da   : > { %v2731_v4 = vpop.permute.xlu0 %2730 }
 0x4db   : > { %v2734_v2 = vsel %vm1942_vm9, %v4756_v39, %v2731_v4  ;;  %v2735_v48 = vsel %vm1942_vm9, %v2731_v4, %v4759_v60 }
 0x4dc   : > { %v2738_v15 = vmul.f32 %v2734_v2, %v5176_v41  ;;  %v2739_v10 = vmul.f32 %v2735_v48, %v5176_v41  ;;  %v2910_v45 = vpop.permute.xlu1 %2909  ;;  %v2887_v2 = vsel %vm2134_vm10, %v4792_v57, %v2884_v26  ;;  %v5186_v48 = vld [vmem:[#allocation55_spill] sm:$0xff] }
 0x4dd   : > { %v2888_v5 = vsel %vm2134_vm10, %v2884_v26, %v5186_v48  ;;  %v3203_v26 = vld [vmem:[%s4981_s1 + $0x4] ss:$8 sm:$0x3] }
 0x4de   : > { %v2785_v19 = vpop.permute.xlu0 %2784  ;;  %v2740_v38 = vadd.f32 %v2738_v15, %v2712_v32  ;;  %v2741_v23 = vadd.f32 %v2739_v10, %v2713_v12  ;;  %v5187_v15 = vld [vmem:[#allocation48_spill] sm:$0xff] }
 0x4df   : > { %v2790_v39 = vsel %vm2024_vm13, %v2785_v19, %v2787_v22  ;;  %v2891_v10 = vmul.f32 %v2887_v2, %v5187_v15  ;;  %v2892_v17 = vmul.f32 %v2888_v5, %v5187_v15  ;;  %v5191_v5 = vld [vmem:[#allocation67_spill] sm:$0xff]  ;;  %v5194_v15 = vld [vmem:[#allocation56_spill] sm:$0xff] }
 0x4e0   : > { %v2794_v44 = vmul.f32 %v2790_v39, %v5179_v36  ;;  %v2858_v16 = vpop.permute.xlu1 %2857 }
 0x4e1   : > { %v2862_v62 = vsel %vm1966_vm12, %v2858_v16, %v5183_v40 }
 0x4e2   : > { %v2789_v20 = vpop.permute.xlu0 %2788  ;;  %v2866_v19 = vmul.f32 %v2862_v62, %v5185_v3 }
 0x4e3   : > { %v2791_v46 = vsel %vm2024_vm13, %v2787_v22, %v2789_v20 }
 0x4e4   : > { %v2795_v49 = vmul.f32 %v2791_v46, %v5179_v36  ;;  %v2914_v32 = vpop.permute.xlu1 %2913  ;;  %v2964_v36 = vadd.f32 %v4750_v34, %v4805_v8 }
 0x4e6   : > { %v2856_v59 = vpop.permute.xlu0 %2855 }
 0x4e7   : > { %v2861_v61 = vsel %vm1966_vm12, %v2856_v59, %v2858_v16  ;;  %v5190_v16 = vld [vmem:[#allocation12_spill] sm:$0xff] }
 0x4e8   : > { %v2865_v22 = vmul.f32 %v2861_v61, %v5185_v3 }
 0x4ea   : > { %v2759_v42 = vpop.permute.xlu0 %2758 }
 0x4eb   : > { %v2762_v60 = vsel %vm1988_vm1, %v4768_v24, %v2759_v42  ;;  %v2763_v54 = vsel %vm1988_vm1, %v2759_v42, %v2761_v11 }
 0x4ec   : > { %v2766_v43 = vmul.f32 %v2762_v60, %v5178_v1  ;;  %v2767_v29 = vmul.f32 %v2763_v54, %v5178_v1  ;;  %v5188_v60 = vld [vmem:[#allocation54_spill] sm:$0xff] }
 0x4ee   : > { %v2768_v14 = vadd.f32 %v2766_v43, %v2740_v38  ;;  %v2769_v47 = vadd.f32 %v2767_v29, %v2741_v23  ;;  %v2830_v58 = vpop.permute.xlu0 %2829 }
 0x4ef   : > { %v2833_v31 = vsel %vm2002_vm14, %v2828_v6, %v2830_v58  ;;  %v2834_v24 = vsel %vm2002_vm14, %v2830_v58, %v5180_v13 }
 0x4f0   : > { %v2796_v11 = vadd.f32 %v2794_v44, %v2768_v14  ;;  %v2797_v56 = vadd.f32 %v2795_v49, %v2769_v47  ;;  %v2837_v6 = vmul.f32 %v2833_v31, %v5184_v28  ;;  %v2838_v4 = vmul.f32 %v2834_v24, %v5184_v28  ;;  %v5189_v44 = vld [vmem:[#allocation11_spill] sm:$0xff] }
 0x4f1   : > { %v2944_v49 = vrot.slane %v3203_v26, %v5189_v44  ;;  %v2948_v14 = vrot.slane %v3203_v26, %v5190_v16  ;;  %v2972_v47 = vsub.f32 %v4750_v34, %v4805_v8  ;;  %v5200_v26 = vld [vmem:[#allocation16_spill] sm:$0xff]  ;;  %v5203_v44 = vld [vmem:[#allocation71_spill] sm:$0xff] }
 0x4f2   : > { %v2811_v52 = vadd.f32 %v2809_v53, %v2796_v11  ;;  %v2812_v18 = vadd.f32 %v2810_v55, %v2797_v56  ;;  %v2912_v41 = vpop.permute.xlu0 %2911 }
 0x4f3   : > { %v2915_v12 = vsel %vm1894_vm11, %v2910_v45, %v2912_v41  ;;  %v2916_v42 = vsel %vm1894_vm11, %v2912_v41, %v2914_v32  ;;  %v2954_v45 = vsub.f32 %v4746_v30, %v4805_v8  ;;  %v5193_v41 = vld [vmem:[#allocation59_spill] sm:$0xff]  ;;  %v5196_v32 = vld [vmem:[#allocation66_spill] sm:$0xff] }
 0x4f4   : > { %v2839_v20 = vadd.f32 %v2837_v6, %v2811_v52  ;;  %v2840_v35 = vadd.f32 %v2838_v4, %v2812_v18  ;;  %v2919_v54 = vmul.f32 %v2915_v12, %v5188_v60  ;;  %v2920_v57 = vmul.f32 %v2916_v42, %v5188_v60  ;;  %v5197_v42 = vld [vmem:[#allocation13_spill] sm:$0xff] }
 0x4f6   : > { %v2867_v0 = vadd.f32 %v2865_v22, %v2839_v20  ;;  %v2868_v59 = vadd.f32 %v2866_v19, %v2840_v35 }
 0x4f8   : > { %v2893_v39 = vadd.f32 %v2891_v10, %v2867_v0  ;;  %v2894_v46 = vadd.f32 %v2892_v17, %v2868_v59  ;;  %v5192_v0 = vld [vmem:[#allocation60_spill] sm:$0xff]  ;;  %v1584_v10 = vsel %vm661_vm8, %v5194_v15, %v5193_v41  ;;  %v5195_v17 = vld [vmem:[#allocation69_spill] sm:$0xff] }
 0x4f9   : > { %v1558_v59 = vsel %vm750_vm7, %v5192_v0, %v5191_v5  ;;  %v1619_v12 = vsel %vm861_vm6, %v5196_v32, %v5195_v17  ;;  %v5217_v0 = vld [vmem:[#allocation23_spill] sm:$0xff] }
 0x4fa   : > { %v2921_v38 = vadd.f32 %v2919_v54, %v2893_v39  ;;  %v2922_v23 = vadd.f32 %v2920_v57, %v2894_v46  ;;  %v1562_v39 = vmul.f32 %v1558_v59, %v5197_v42  ;;  %v5198_v46 = vld [vmem:[#allocation61_spill] sm:$0xff]  ;;  %v5199_v54 = vld [vmem:[#allocation14_spill] sm:$0xff] }
 0x4fb   : > { %v1559_v60 = vsel %vm750_vm7, %v5191_v5, %v5198_v46  ;;  %v1588_v57 = vmul.f32 %v1584_v10, %v5199_v54 }
 0x4ff   : > { %v2928_v1 = vpop.permute.xlu0 %2927 }
 0x500   : > { %v2930_v43 = vmul.f32 %v2928_v1, %v2921_v38  ;;  %v2931_v29 = vmul.f32 %v2928_v1, %v2922_v23  ;;  %v1623_v38 = vmul.f32 %v1619_v12, %v5200_v26  ;;  %v5201_v23 = vld [vmem:[#allocation58_spill] sm:$0xff] }
 0x501   : > { %v1585_v1 = vsel %vm661_vm8, %v5193_v41, %v5201_v23 }
 0x502   : > { %v2955_v58 = vsub.f32 %v2953_v63, %v2930_v43  ;;  %v2956_v31 = vsub.f32 %v2954_v45, %v2931_v29  ;;  %v2965_v13 = vsub.f32 %v4811_v51, %v2930_v43  ;;  %v2966_v24 = vsub.f32 %v2964_v36, %v2931_v29 }
 0x503   : > { %v2973_v30 = vadd.f32 %v2971_v7, %v2930_v43  ;;  %v2974_v11 = vadd.f32 %v2972_v47, %v2931_v29  ;;  %v2936_v56 = vadd.f32 %v4817_v50, %v2930_v43  ;;  %v2937_v9 = vadd.f32 %v4821_v37, %v2931_v29  ;;  %v5202_v43 = vld [vmem:[#allocation68_spill] sm:$0xff] }
 0x504   : > { %v2957_v53 = vmul.f32 0.5, %v2955_v58  ;;  %v2958_v27 = vmul.f32 0.5, %v2956_v31  ;;  %v2967_v34 = vmul.f32 0.5, %v2965_v13  ;;  %v2968_v8 = vmul.f32 0.5, %v2966_v24  ;;  %v5206_v24 = vld [vmem:[#allocation15_spill] sm:$0xff] }
 0x505   : > { %v2975_v55 = vmul.f32 0.5, %v2973_v30  ;;  %v2976_v21 = vmul.f32 0.5, %v2974_v11  ;;  %v2938_v18 = vmul.f32 0.5, %v2936_v56  ;;  %v2939_v25 = vmul.f32 0.5, %v2937_v9  ;;  %v5207_v9 = vld [vmem:[#allocation76_spill] sm:$0xff] }
 0x506   : > { %v2959_v63 = vmul.f32 %v2957_v53, %v2944_v49  ;;  %v2960_v40 = vmul.f32 %v2958_v27, %v2948_v14  ;;  %v2969_v62 = vmul.f32 %v2967_v34, %v2944_v49  ;;  %v2970_v51 = vmul.f32 %v2968_v8, %v2948_v14  ;;  %v5208_v53 = vld [vmem:[#allocation65_spill] sm:$0xff] }
 0x507   : > { %v2977_v61 = vmul.f32 %v2975_v55, %v2944_v49  ;;  %v2978_v52 = vmul.f32 %v2976_v21, %v2948_v14  ;;  %v4886_v50 = vmul.f32 %v2944_v49, %v2938_v18  ;;  %v4888_v37 = vmul.f32 %v2948_v14, %v2939_v25  ;;  %v5204_v49 = vld [vmem:[#allocation64_spill] sm:$0xff]  ;;  %v5205_v14 = vld [vmem:[#allocation70_spill] sm:$0xff]  ;;  %v1808_v55 = vpop.permute.xlu1 %1807  ;;  %v5209_v21 = vld [vmem:[#allocation21_spill] sm:$0xff]  ;;  %v1816_v25 = vpop.permute.xlu0 %1815 }
 0x508   : > { %v2981_v33 = vcombine.low %v2959_v63, %v2960_v40  ;;  %v3003_v7 = vcombine.low %v2969_v62, %v2970_v51  ;;  %v1620_v29 = vsel %vm861_vm6, %v5195_v17, %v5202_v43  ;;  %v1590_v45 = vadd.f32 %v1588_v57, %v1562_v39  ;;  %v5210_v62 = vld [vmem:[#allocation20_spill] sm:$0xff]  ;;  %v5211_v51 = vld [vmem:[#allocation17_spill] sm:$0xff]  ;;  %v5219_v39 = vld [vmem:[#allocation62_spill] sm:$0xff] }
 0x509   : > { %v3025_v28 = vcombine.low %v2977_v61, %v2978_v52  ;;  %v1563_v36 = vmul.f32 %v1559_v60, %v5197_v42  ;;  %v1653_v16 = vsel %vm965_vm5, %v5204_v49, %v5203_v44  ;;  %v1654_v47 = vsel %vm965_vm5, %v5203_v44, %v5205_v14  ;;  %v5212_v52 = vld [vmem:[#allocation18_spill] sm:$0xff]  ;;  %v5218_v42 = vld [vmem:[#allocation24_spill] sm:$0xff]  ;;  %v5220_v60 = vld [vmem:[#allocation75_spill] sm:$0xff] }
 0x50a   : > { %2983 = vst [vmem:[#allocation3 + $0x4] sm:$0xff] %v2981_v33  ;;  %v1589_v58 = vmul.f32 %v1585_v1, %v5199_v54  ;;  %v1625_v31 = vadd.f32 %v1623_v38, %v1590_v45  ;;  %v1624_v13 = vmul.f32 %v1620_v29, %v5200_v26  ;;  %v1657_v30 = vmul.f32 %v1653_v16, %v5206_v24  ;;  %v5213_v33 = vld [vmem:[#allocation22_spill] sm:$0xff]  ;;  %v5222_v26 = vld [vmem:[#allocation63_spill] sm:$0xff] }
 0x50b   : > { %v1658_v56 = vmul.f32 %v1654_v47, %v5206_v24  ;;  %v1702_v27 = vsel %vm946_vm4, %v5208_v53, %v5207_v9  ;;  %v1703_v63 = vsel %vm946_vm4, %v5207_v9, %v5209_v21  ;;  %v1672_v61 = vmul.f32 %v5211_v51, %v5210_v62  ;;  %v5221_v54 = vld [vmem:[#allocation74_spill] sm:$0xff] }
 0x50c   : > { %v1591_v11 = vadd.f32 %v1589_v58, %v1563_v36  ;;  %v1659_v34 = vadd.f32 %v1657_v30, %v1625_v31  ;;  %v1706_v18 = vmul.f32 %v1702_v27, %v5212_v52  ;;  %v1766_v46 = vmul.f32 %v5219_v39, %v5218_v42  ;;  %v5223_v43 = vld [vmem:[#allocation30_spill] sm:$0xff]  ;;  %v5224_v36 = vld [vmem:[#allocation25_spill] sm:$0xff] }
 0x50d   : > { %v1796_v57 = vsel %vm641_vm3, %v5221_v54, %v5220_v60  ;;  %v1767_v38 = vmul.f32 %v5222_v26, %v5218_v42  ;;  %v1797_v29 = vsel %vm641_vm3, %v5220_v60, %v5223_v43 }
 0x50e   : > { %v1626_v8 = vadd.f32 %v1624_v13, %v1591_v11  ;;  %v1800_v44 = vmul.f32 %v1796_v57, %v5224_v36  ;;  %v1801_v58 = vmul.f32 %v1797_v29, %v5224_v36 }
 0x510   : > { %v1660_v40 = vadd.f32 %v1658_v56, %v1626_v8 }
 0x511   : > { %v2984_v6 = vld [vmem:[#allocation3] sm:$0xff]  ;;  %v2985_v4 = vld [vmem:[#allocation3 + $0x8] sm:$0xf] }
 0x512   : > { %2989 = vrot.lane.b32.xlu1 %v2984_v6, %s5108_s29  ;;  %v2988_v3 = vcombine.high %v2984_v6, %v2984_v6  ;;  %3005 = vst [vmem:[#allocation3 + $0x4] sm:$0xff] %v3003_v7  ;;  %v1673_v7 = vmul.f32 %v5213_v33, %v5211_v51  ;;  %v1707_v6 = vmul.f32 %v1703_v63, %v5212_v52 }
 0x514   : > { %2991 = vrot.lane.b32.xlu0 %v2988_v3, %s5108_s29  ;;  %v5214_v3 = vld [vmem:[#allocation73_spill] sm:$0xff] }
 0x516   : > { %2993 = vrot.lane.b32.xlu1 %v2985_v4, %s5108_s29 }
 0x519   : > { %v3006_v19 = vld [vmem:[#allocation3] sm:$0xff]  ;;  %v3007_v22 = vld [vmem:[#allocation3 + $0x8] sm:$0xf] }
 0x51a   : > { %v3010_v20 = vcombine.high %v3006_v19, %v3006_v19  ;;  %3011 = vrot.lane.b32.xlu0 %v3006_v19, %s5090_s21  ;;  %3027 = vst [vmem:[#allocation3 + $0x4] sm:$0xff] %v3025_v28  ;;  %v1674_v28 = vadd.f32 %v1672_v61, %v1659_v34  ;;  %v5215_v19 = vld [vmem:[#allocation72_spill] sm:$0xff] }
 0x51c   : > { %3013 = vrot.lane.b32.xlu1 %v3010_v20, %s5090_s21  ;;  %v1675_v20 = vadd.f32 %v1673_v7, %v1660_v40 }
 0x51e   : > { %3015 = vrot.lane.b32.xlu0 %v3007_v22, %s5090_s21  ;;  %v1736_v22 = vsel %vm842_vm2, %v5215_v19, %v5214_v3  ;;  %v1709_v41 = vadd.f32 %v1707_v6, %v1675_v20 }
 0x51f   : > { %v1740_v59 = vmul.f32 %v1736_v22, %v5217_v0 }
 0x521   : > { %v3028_v35 = vld [vmem:[#allocation3] sm:$0xff]  ;;  %v3029_v48 = vld [vmem:[#allocation3 + $0x8] sm:$0xf] }
 0x522   : > { %v3032_v2 = vcombine.high %v3028_v35, %v3028_v35  ;;  %3033 = vrot.lane.b32.xlu1 %v3028_v35, %s5095_s24  ;;  %v1708_v35 = vadd.f32 %v1706_v18, %v1674_v28 }
 0x524   : > { %3035 = vrot.lane.b32.xlu0 %v3032_v2, %s5095_s24  ;;  %v1742_v10 = vadd.f32 %v1740_v59, %v1708_v35 }
 0x526   : > { %3037 = vrot.lane.b32.xlu1 %v3029_v48, %s5095_s24  ;;  %v5216_v48 = vld [vmem:[#allocation19_spill] sm:$0xff]  ;;  %v1768_v23 = vadd.f32 %v1766_v46, %v1742_v10 }
 0x527   : > { %v1737_v5 = vsel %vm842_vm2, %v5214_v3, %v5216_v48 }
 0x528   : > { %v1741_v15 = vmul.f32 %v1737_v5, %v5217_v0  ;;  %v1802_v31 = vadd.f32 %v1800_v44, %v1768_v23 }
 0x52a   : > { %v1743_v12 = vadd.f32 %v1741_v15, %v1709_v41  ;;  %v1810_v56 = vadd.f32 %v1808_v55, %v1802_v31 }
 0x52c   : > { %v1769_v49 = vadd.f32 %v1767_v38, %v1743_v12  ;;  %v1818_v21 = vmul.f32 %v1816_v25, %v1810_v56 }
 0x52e   : > { %v1803_v11 = vadd.f32 %v1801_v58, %v1769_v49 }
 0x530   : > { %v1811_v8 = vadd.f32 %v1808_v55, %v1803_v11 }
 0x532   : > { %v1819_v61 = vmul.f32 %v1816_v25, %v1811_v8 }
 0x584   : > { %v2990_v4 = vpop.permute.xlu1 %2989 }
 0x586   : > { %v2992_v2 = vpop.permute.xlu0 %2991 }
 0x587   : > { %v2995_v45 = vsel %vm965_vm5, %v2990_v4, %v2992_v2 }
 0x588   : > { %v2994_v17 = vpop.permute.xlu1 %2993  ;;  %v2999_v13 = vadd.f32 %v2995_v45, %v4886_v50 }
 0x589   : > { %v2996_v14 = vsel %vm965_vm5, %v2992_v2, %v2994_v17 }
 0x58a   : > { %v3000_v9 = vadd.f32 %v2996_v14, %v4888_v37 }
 0x58c   : > { %v3012_v32 = vpop.permute.xlu0 %3011 }
 0x58e   : > { %v3014_v1 = vpop.permute.xlu1 %3013 }
 0x58f   : > { %v3017_v47 = vsel %vm661_vm8, %v3012_v32, %v3014_v1 }
 0x590   : > { %v3016_v16 = vpop.permute.xlu0 %3015  ;;  %v3021_v53 = vadd.f32 %v3017_v47, %v2999_v13 }
 0x591   : > { %v3018_v30 = vsel %vm661_vm8, %v3014_v1, %v3016_v16 }
 0x592   : > { %v3022_v63 = vadd.f32 %v3018_v30, %v3000_v9 }
 0x594   : > { %v3034_v24 = vpop.permute.xlu1 %3033 }
 0x596   : > { %v3036_v27 = vpop.permute.xlu0 %3035 }
 0x597   : > { %v3039_v34 = vsel %vm750_vm7, %v3034_v24, %v3036_v27 }
 0x598   : > { %v3043_v40 = vadd.f32 %v3039_v34, %v3021_v53  ;;  %v3038_v62 = vpop.permute.xlu1 %3037 }
 0x599   : > { %v3040_v51 = vsel %vm750_vm7, %v3036_v27, %v3038_v62 }
 0x59a   : > { %v3045_v50 = vadd.f32 %v3043_v40, %v1818_v21  ;;  %v3044_v52 = vadd.f32 %v3040_v51, %v3022_v63 }
 0x59c   : > { %v3046_v18 = vadd.f32 %v3044_v52, %v1819_v61  ;;  %v3047_v33 = vsel %vm525_vm0, %v3045_v50, 0.0 }
 0x59e   : > { %v3048_v7 = vsel %vm525_vm0, %v3046_v18, 0.0 }
 0x59f   : > { %v3049_v37 = vadd.f32 %v3048_v7, %v3047_v33 }
 0x5a1   : > { %3050 = vadd.xlane.f32.xlu0 %v3049_v37 }
 0x62a   : > { %v3051_v28 = vpop.xlane.xlu0 %3050 }
 0x62b   : > { %v3053_v6 = vmul.f32 0.00390625, %v3051_v28 }
 0x62d   : > { %v3054_v4 = vsub.f32 %v3045_v50, %v3053_v6  ;;  %v3055_v55 = vsub.f32 %v3046_v18, %v3053_v6 }
 0x62f   : > { %v3056_v3 = vmul.f32 %v3054_v4, %v3054_v4  ;;  %v3057_v19 = vmul.f32 %v3055_v55, %v3055_v55 }
 0x631   : > { %v3058_v22 = vsel %vm525_vm0, %v3056_v3, 0.0  ;;  %v3059_v20 = vsel %vm525_vm0, %v3057_v19, 0.0 }
 0x632   : > { %v3060_v25 = vadd.f32 %v3059_v20, %v3058_v22 }
 0x634   : > { %3061 = vadd.xlane.f32.xlu1 %v3060_v25 }
 0x6bd   : > { %v3062_v35 = vpop.xlane.xlu1 %3061 }
 0x6be   : > { %v3064_v2 = vmul.f32 0.003921569, %v3062_v35 }
 0x6c0   : > { %v3065_v48 = vadd.f32 0.0001, %v3064_v2 }
 0x6c2   : > { %v3066_v5 = vmul.f32 4.0, %v3065_v48 }
 0x6c4   : > { %3345 = vrcp.f32 %v3066_v5 }
 0x6d1   : > { %v3346_v0 = vpop.eup %3345 }
 0x6d2   : > { %v3068_v59 = vmul.f32 %v3346_v0, %v3056_v3  ;;  %v3069_v41 = vmul.f32 %v3346_v0, %v3057_v19 }
 0x6d4   : > { %v3070_v15 = vadd.f32 0.5, %v3068_v59  ;;  %v3071_v10 = vadd.f32 0.5, %v3069_v41 }
 0x6d6   : > { %v3270_v17 = vmul.f32 -1.442695, %v3070_v15  ;;  %v3271_v32 = vmul.f32 -1.442695, %v3071_v10 }
 0x6d8   : > { %3347 = vpow2.f32 %v3270_v17 }
 0x6d9   : > { %3349 = vpow2.f32 %v3271_v32 }
 0x6e5   : > { %v3348_v12 = vpop.eup %3347 }
 0x6e6   : > { %v3350_v42 = vpop.eup %3349  ;;  %v3078_v39 = vadd.f32 1.0, %v3348_v12 }
 0x6e7   : > { %v3079_v46 = vadd.f32 1.0, %v3350_v42 }
 0x6e8   : > { %3351 = vrcp.f32 %v3078_v39 }
 0x6e9   : > { %3353 = vrcp.f32 %v3079_v46 }
 0x6f5   : > { %v3352_v60 = vpop.eup %3351 }
 0x6f6   : > { %v3354_v54 = vpop.eup %3353  ;;  %v3084_v57 = vmul.f32 %v3352_v60, %v3045_v50 }
 0x6f7   : > { %v3085_v26 = vmul.f32 %v3354_v54, %v3046_v18 }
 0x6f8   : > { %v3093_v38 = vrot.slane %v3084_v57, 4 }
 0x6f9   : > { %v3094_v23 = vrot.slane %v3085_v26, 4 }
 0x6fa   : > { %3097 = vst [vmem:[%s3620_s19] sm:$0xf0] %v3093_v38 }
 0x6fb   : > { %3098 = vst [vmem:[%s3620_s19 + $0x8] sm:$0xf0] %v3094_v23 }
 0x6fc PF: > { %s25_s25 = sadd.s32 1, %s3452_s25  }
 0x6fd   : > { %p22_p5 = scmp.ge.s32.totalorder %s25_s25, 4  }
 0x6ff   :  { %24 = sbr.rel (!%p22_p5) target bundleno = 2 (0x2), region = 173 }
 0x704   :  { %3120 = vsyncpa [#allocation5], 1 }
 0x705   :  { %3122 = vsyncpa [#allocation5 + $0x1], 1 }
 0x706   :  { %3123 = vsyncpa [#allocation7], 1 }

</bundles_post_ra>
